<compile_context>
chip_gen: v6e
topology: v6e:2x2x1
jax: 0.10.0
libtpu: 0.0.40
codegen_flags: <defaults>
</compile_context>

<pallas_src>
import jax
import jax.numpy as jnp
from jax.experimental import pallas as pl
from jax.experimental.pallas import tpu as pltpu

HIDDEN = 1024   # hidden width from the PyTorch spec
LANE = 128      # TPU lane width; output padded to a multiple of this


def _round_up(x, m):
    return ((x + m - 1) // m) * m


def _device_budget():
    """(max batch-tile rows, scoped VMEM limit) per TPU generation."""
    try:
        kind = jax.devices()[0].device_kind.lower()
    except Exception:
        kind = ""
    if "v5" in kind or "v6" in kind:
        # 128 MiB physical VMEM: bigger tiles amortize the ~0.35 us/step overhead.
        return 1024, 64 * 1024 * 1024
    # v7x (64 MiB physical, 32 MiB scoped default) and unknown chips: conservative.
    return 512, 32 * 1024 * 1024


def _choose_tile_b(B, max_tile):
    """Batch tile (multiple of 8): as large as allowed, but aim for >= 2 grid
    steps when B > 8 so v7x's two TensorCores both run."""
    if B <= 8:
        return 8
    return min(max_tile, _round_up(pl.cdiv(B, 2), 8))


def _mlp_kernel(x_ref, w1_ref, b1_ref, w2_ref, b2_ref, w3_ref, b3_ref, o_ref):
    # One batch tile of the fused 3-layer MLP. bf16 operands feed the MXU,
    # accumulation + bias + ReLU stay in f32.
    x = x_ref[...].astype(jnp.bfloat16)                       # in-kernel cast (free VPU work)
    h1 = jnp.dot(x, w1_ref[...], preferred_element_type=jnp.float32) + b1_ref[...]
    h1 = jnp.maximum(h1, 0.0).astype(jnp.bfloat16)
    h2 = jnp.dot(h1, w2_ref[...], preferred_element_type=jnp.float32) + b2_ref[...]
    h2 = jnp.maximum(h2, 0.0).astype(jnp.bfloat16)
    o_ref[...] = (
        jnp.dot(h2, w3_ref[...], preferred_element_type=jnp.float32) + b3_ref[...]
    ).astype(o_ref.dtype)


def imitation_mlp_forward(x, params):
    """Run the fused MLP Pallas kernel.

    x:      (B, input_dim) float32
    params: w1 (input_dim, 1024) bf16, b1 (1, 1024) f32,
            w2 (1024, 1024)      bf16, b2 (1, 1024) f32,
            w3 (1024, out_pad)   bf16, b3 (1, out_pad) f32  (pre-padded to 128 lanes),
            out_dim: true output width (int)
    returns (B, output_dim) float32
    """
    w1, b1 = params["w1"], params["b1"]
    w2, b2 = params["w2"], params["b2"]
    w3, b3 = params["w3"], params["b3"]
    out_dim = int(params.get("out_dim", w3.shape[1]))

    B, in_dim = x.shape

    # Fallback: pad the last projection to a 128-lane multiple if the caller
    # didn't pre-pad (normally done once in init_params).
    out_pad = w3.shape[1]
    if out_pad % LANE != 0:
        new_pad = _round_up(out_pad, LANE)
        w3 = jnp.pad(w3, ((0, 0), (0, new_pad - out_pad)))
        b3 = jnp.pad(b3, ((0, 0), (0, new_pad - out_pad)))
        out_pad = new_pad

    max_tile, vmem_limit = _device_budget()
    tile_b = _choose_tile_b(B, max_tile)
    grid = (pl.cdiv(B, tile_b),)   # ragged last block handled by Pallas; no batch pad

    flops = 2 * B * (in_dim * HIDDEN + HIDDEN * HIDDEN + HIDDEN * out_pad)
    bytes_accessed = (
        x.size * x.dtype.itemsize
        + w1.size * w1.dtype.itemsize
        + w2.size * w2.dtype.itemsize
        + w3.size * w3.dtype.itemsize
        + (b1.size + b2.size + b3.size) * 4
        + B * out_pad * 2                      # bf16 output
    )

    out = pl.pallas_call(
        _mlp_kernel,
        out_shape=jax.ShapeDtypeStruct((B, out_pad), jnp.bfloat16),
        grid=grid,
        in_specs=[
            pl.BlockSpec((tile_b, in_dim), lambda i: (i, 0)),   # x: tiled along batch
            pl.BlockSpec(w1.shape, lambda i: (0, 0)),           # weights/biases: VMEM-resident
            pl.BlockSpec(b1.shape, lambda i: (0, 0)),
            pl.BlockSpec(w2.shape, lambda i: (0, 0)),
            pl.BlockSpec(b2.shape, lambda i: (0, 0)),
            pl.BlockSpec(w3.shape, lambda i: (0, 0)),
            pl.BlockSpec(b3.shape, lambda i: (0, 0)),
        ],
        out_specs=pl.BlockSpec((tile_b, out_pad), lambda i: (i, 0)),
        compiler_params=pltpu.CompilerParams(
            dimension_semantics=("parallel",),   # batch axis shards across v7x's 2 TCs
            vmem_limit_bytes=vmem_limit,
        ),
        cost_estimate=pl.CostEstimate(
            flops=flops, transcendentals=0, bytes_accessed=bytes_accessed
        ),
    )(x, w1, b1, w2, b2, w3, b3)

    return out[:, :out_dim].astype(jnp.float32)


def init_params(key, input_dim, output_dim):
    """Deterministic init matching nn.Linear's uniform(-1/sqrt(fan_in), 1/sqrt(fan_in)).
    Weights stored transposed (in, out), cast to bf16; biases kept f32.
    w3/b3 are zero-padded to a 128-lane multiple once here (not per forward call)."""
    ks = jax.random.split(key, 6)

    def uniform(k, shape, fan_in):
        bound = 1.0 / jnp.sqrt(jnp.float32(fan_in))
        return jax.random.uniform(
            k, shape, dtype=jnp.float32, minval=-bound, maxval=bound
        )

    out_pad = _round_up(output_dim, LANE)
    w3 = uniform(ks[4], (HIDDEN, output_dim), HIDDEN).astype(jnp.bfloat16)
    b3 = uniform(ks[5], (1, output_dim), HIDDEN)
    if out_pad != output_dim:
        w3 = jnp.pad(w3, ((0, 0), (0, out_pad - output_dim)))
        b3 = jnp.pad(b3, ((0, 0), (0, out_pad - output_dim)))

    return {
        "w1": uniform(ks[0], (input_dim, HIDDEN), input_dim).astype(jnp.bfloat16),
        "b1": uniform(ks[1], (1, HIDDEN), input_dim),
        "w2": uniform(ks[2], (HIDDEN, HIDDEN), HIDDEN).astype(jnp.bfloat16),
        "b2": uniform(ks[3], (1, HIDDEN), HIDDEN),
        "w3": w3,
        "b3": b3,
        "out_dim": output_dim,
    }


def reference_forward(x, params):
    """Pure-JAX reference mirroring the kernel's bf16-operand / f32-accumulate math
    (including the final bf16 output cast)."""
    out_dim = int(params["out_dim"])
    xb = x.astype(jnp.bfloat16)
    h1 = jnp.maximum(
        jnp.dot(xb, params["w1"], preferred_element_type=jnp.float32) + params["b1"], 0.0
    ).astype(jnp.bfloat16)
    h2 = jnp.maximum(
        jnp.dot(h1, params["w2"], preferred_element_type=jnp.float32) + params["b2"], 0.0
    ).astype(jnp.bfloat16)
    out = jnp.dot(h2, params["w3"], preferred_element_type=jnp.float32) + params["b3"]
    return out[:, :out_dim].astype(jnp.bfloat16).astype(jnp.float32)


if __name__ == "__main__":
    key = jax.random.PRNGKey(0)
    k_params, k_x1, k_x2 = jax.random.split(key, 3)

    input_dim = 32
    output_dim = 16
    params = init_params(k_params, input_dim, output_dim)

    # Case 1: small, tile-aligned batch.
    x1 = jax.random.normal(k_x1, (8, input_dim), dtype=jnp.float32)
    out1 = jax.block_until_ready(imitation_mlp_forward(x1, params))
    ref1 = reference_forward(x1, params)
    assert out1.shape == (8, output_dim)
    assert jnp.allclose(out1, ref1, atol=1e-2, rtol=1e-2)

    # Case 2: batch not a multiple of the tile -> exercises the cdiv / ragged-block path.
    x2 = jax.random.normal(k_x2, (13, input_dim), dtype=jnp.float32)
    out2 = jax.block_until_ready(imitation_mlp_forward(x2, params))
    ref2 = reference_forward(x2, params)
    assert out2.shape == (13, output_dim)
    assert jnp.allclose(out2, ref2, atol=1e-2, rtol=1e-2)

    print("KERNEL_OK")
</pallas_src>

<mosaic_0001>
module attributes {stable_mosaic.version = 11 : i64} {
  func.func @_mlp_kernel(%arg0: i32, %arg1: memref<8x32xf32, #tpu.memory_space<vmem>>, %arg2: memref<32x1024xbf16, #tpu.memory_space<vmem>>, %arg3: memref<1x1024xf32, #tpu.memory_space<vmem>>, %arg4: memref<1024x1024xbf16, #tpu.memory_space<vmem>>, %arg5: memref<1x1024xf32, #tpu.memory_space<vmem>>, %arg6: memref<1024x128xbf16, #tpu.memory_space<vmem>>, %arg7: memref<1x128xf32, #tpu.memory_space<vmem>>, %arg8: memref<8x128xbf16, #tpu.memory_space<vmem>>) attributes {dimension_semantics = [#tpu.dimension_semantics<parallel>], iteration_bounds = array<i64: 1>, scalar_prefetch = 0 : i64, scratch_operands = 0 : i64, tpu.core_type = #tpu.core_type<tc>, window_params = [{transform_indices = @transform_0, window_bounds = array<i64: 8, 32>}, {pipeline_mode = #tpu.pipeline_mode<synchronous>, transform_indices = @transform_1, window_bounds = array<i64: 32, 1024>}, {pipeline_mode = #tpu.pipeline_mode<synchronous>, transform_indices = @transform_2, window_bounds = array<i64: 1, 1024>}, {pipeline_mode = #tpu.pipeline_mode<synchronous>, transform_indices = @transform_3, window_bounds = array<i64: 1024, 1024>}, {pipeline_mode = #tpu.pipeline_mode<synchronous>, transform_indices = @transform_4, window_bounds = array<i64: 1, 1024>}, {pipeline_mode = #tpu.pipeline_mode<synchronous>, transform_indices = @transform_5, window_bounds = array<i64: 1024, 128>}, {pipeline_mode = #tpu.pipeline_mode<synchronous>, transform_indices = @transform_6, window_bounds = array<i64: 1, 128>}, {transform_indices = @transform_7, window_bounds = array<i64: 8, 128>}]} {
    %c0 = arith.constant 0 : index
    %c0_0 = arith.constant 0 : index
    %0 = vector.load %arg1[%c0, %c0_0] : memref<8x32xf32, #tpu.memory_space<vmem>>, vector<8x32xf32>
    %1 = arith.truncf %0 : vector<8x32xf32> to vector<8x32xbf16>
    %c0_1 = arith.constant 0 : index
    %c0_2 = arith.constant 0 : index
    %2 = vector.load %arg2[%c0_1, %c0_2] : memref<32x1024xbf16, #tpu.memory_space<vmem>>, vector<32x1024xbf16>
    %cst = arith.constant dense<0.000000e+00> : vector<8x1024xf32>
    %3 = tpu.matmul %1, %2, %cst {dimension_numbers = #tpu.dot_dimension_numbers<[1], [0], [0], [1], [0, 0, 1, 1], [], []>} : vector<8x32xbf16>, vector<32x1024xbf16>, vector<8x1024xf32> -> vector<8x1024xf32>
    %c0_3 = arith.constant 0 : index
    %c0_4 = arith.constant 0 : index
    %4 = vector.load %arg3[%c0_3, %c0_4] : memref<1x1024xf32, #tpu.memory_space<vmem>>, vector<1x1024xf32>
    %5 = vector.broadcast %4 : vector<1x1024xf32> to vector<8x1024xf32>
    %6 = arith.addf %3, %5 : vector<8x1024xf32>
    %cst_5 = arith.constant 0.000000e+00 : f32
    %7 = vector.broadcast %cst_5 : f32 to vector<8x1024xf32>
    %8 = arith.maximumf %6, %7 : vector<8x1024xf32>
    %9 = arith.truncf %8 : vector<8x1024xf32> to vector<8x1024xbf16>
    %c0_6 = arith.constant 0 : index
    %c0_7 = arith.constant 0 : index
    %10 = vector.load %arg4[%c0_6, %c0_7] : memref<1024x1024xbf16, #tpu.memory_space<vmem>>, vector<1024x1024xbf16>
    %cst_8 = arith.constant dense<0.000000e+00> : vector<8x1024xf32>
    %11 = tpu.matmul %9, %10, %cst_8 {dimension_numbers = #tpu.dot_dimension_numbers<[1], [0], [0], [1], [0, 0, 1, 1], [], []>} : vector<8x1024xbf16>, vector<1024x1024xbf16>, vector<8x1024xf32> -> vector<8x1024xf32>
    %c0_9 = arith.constant 0 : index
    %c0_10 = arith.constant 0 : index
    %12 = vector.load %arg5[%c0_9, %c0_10] : memref<1x1024xf32, #tpu.memory_space<vmem>>, vector<1x1024xf32>
    %13 = vector.broadcast %12 : vector<1x1024xf32> to vector<8x1024xf32>
    %14 = arith.addf %11, %13 : vector<8x1024xf32>
    %cst_11 = arith.constant 0.000000e+00 : f32
    %15 = vector.broadcast %cst_11 : f32 to vector<8x1024xf32>
    %16 = arith.maximumf %14, %15 : vector<8x1024xf32>
    %17 = arith.truncf %16 : vector<8x1024xf32> to vector<8x1024xbf16>
    %c0_12 = arith.constant 0 : index
    %c0_13 = arith.constant 0 : index
    %18 = vector.load %arg6[%c0_12, %c0_13] : memref<1024x128xbf16, #tpu.memory_space<vmem>>, vector<1024x128xbf16>
    %cst_14 = arith.constant dense<0.000000e+00> : vector<8x128xf32>
    %19 = tpu.matmul %17, %18, %cst_14 {dimension_numbers = #tpu.dot_dimension_numbers<[1], [0], [0], [1], [0, 0, 1, 1], [], []>} : vector<8x1024xbf16>, vector<1024x128xbf16>, vector<8x128xf32> -> vector<8x128xf32>
    %c0_15 = arith.constant 0 : index
    %c0_16 = arith.constant 0 : index
    %20 = vector.load %arg7[%c0_15, %c0_16] : memref<1x128xf32, #tpu.memory_space<vmem>>, vector<1x128xf32>
    %21 = vector.broadcast %20 : vector<1x128xf32> to vector<8x128xf32>
    %22 = arith.addf %19, %21 : vector<8x128xf32>
    %23 = arith.truncf %22 : vector<8x128xf32> to vector<8x128xbf16>
    %c0_17 = arith.constant 0 : index
    %c0_18 = arith.constant 0 : index
    %24 = vector.load %arg8[%c0_17, %c0_18] : memref<8x128xbf16, #tpu.memory_space<vmem>>, vector<8x128xbf16>
    tpu.vector_store %arg8[%c0_17, %c0_18], %23 {strides = array<i32>} : memref<8x128xbf16, #tpu.memory_space<vmem>>, vector<8x128xbf16>,
    return
  }
  func.func @transform_0(%arg0: i32) -> (i32, i32) {
    %c0_i32 = arith.constant 0 : i32
    %c0_i32_0 = arith.constant 0 : i32
    return %arg0, %c0_i32 : i32, i32
  }
  func.func @transform_1(%arg0: i32) -> (i32, i32) {
    %c0_i32 = arith.constant 0 : i32
    %c0_i32_0 = arith.constant 0 : i32
    %c0_i32_1 = arith.constant 0 : i32
    return %c0_i32, %c0_i32_0 : i32, i32
  }
  func.func @transform_2(%arg0: i32) -> (i32, i32) {
    %c0_i32 = arith.constant 0 : i32
    %c0_i32_0 = arith.constant 0 : i32
    %c0_i32_1 = arith.constant 0 : i32
    return %c0_i32, %c0_i32_0 : i32, i32
  }
  func.func @transform_3(%arg0: i32) -> (i32, i32) {
    %c0_i32 = arith.constant 0 : i32
    %c0_i32_0 = arith.constant 0 : i32
    %c0_i32_1 = arith.constant 0 : i32
    return %c0_i32, %c0_i32_0 : i32, i32
  }
  func.func @transform_4(%arg0: i32) -> (i32, i32) {
    %c0_i32 = arith.constant 0 : i32
    %c0_i32_0 = arith.constant 0 : i32
    %c0_i32_1 = arith.constant 0 : i32
    return %c0_i32, %c0_i32_0 : i32, i32
  }
  func.func @transform_5(%arg0: i32) -> (i32, i32) {
    %c0_i32 = arith.constant 0 : i32
    %c0_i32_0 = arith.constant 0 : i32
    %c0_i32_1 = arith.constant 0 : i32
    return %c0_i32, %c0_i32_0 : i32, i32
  }
  func.func @transform_6(%arg0: i32) -> (i32, i32) {
    %c0_i32 = arith.constant 0 : i32
    %c0_i32_0 = arith.constant 0 : i32
    %c0_i32_1 = arith.constant 0 : i32
    return %c0_i32, %c0_i32_0 : i32, i32
  }
  func.func @transform_7(%arg0: i32) -> (i32, i32) {
    %c0_i32 = arith.constant 0 : i32
    %c0_i32_0 = arith.constant 0 : i32
    return %arg0, %c0_i32 : i32, i32
  }
}

</mosaic_0001>

<bundles_post_ra>
// kernel: tpu_custom_call.1
= control target key start
LH: loop header
LB: loop body
LE: loop exit
PB: predicated region body
PF: predicated region fallthrough
CT: control target
= control target key end

     0   :  { %12 = vsyncpa [#allocation3], 0  ;;  %s6097_s0 = inlined_call_operand.hbm [shape: f32[8,32], index: 0, kind: input, shape index: {}]   ;;  %s6098_s1 = inlined_call_operand.hbm [shape: bf16[32,1024], index: 1, kind: input, shape index: {}]   ;;  %s6099_s2 = inlined_call_operand.hbm [shape: f32[1,1024], index: 2, kind: input, shape index: {}]   ;;  %s6100_s3 = inlined_call_operand.hbm [shape: bf16[1024,1024], index: 3, kind: input, shape index: {}]   ;;  %s6101_s4 = inlined_call_operand.hbm [shape: f32[1,1024], index: 4, kind: input, shape index: {}]   ;;  %s6102_s5 = inlined_call_operand.hbm [shape: bf16[1024,128], index: 5, kind: input, shape index: {}]   ;;  %s6103_s6 = inlined_call_operand.hbm [shape: f32[1,128], index: 6, kind: input, shape index: {}]   ;;  %s6104_s7 = inlined_call_operand.hbm [shape: bf16[8,128], index: 7, kind: output, shape index: {}]  }
   0x1   :  { %13 = vsyncpa [#allocation6], 0 }
   0x2   :  { %14 = vsyncpa [#allocation9], 0 }
   0x3   :  { %15 = vsyncpa [#allocation12], 0 }
   0x4   :  { %16 = vsyncpa [#allocation4], 0  ;;  %s5857_s24 = smov [#allocation5]  }
   0x5   :  { %s32_s25 = sshll.u32 %s5857_s24, 4  ;;  %s33_s25 = int_to_ptr.vmem [resolvable:$true] %s32_s25 }
   0x6   :  { %s5695_s26 = scalar_lea.vmem %s33_s25, 2048  ;;  %p5700_p1 = scmp.lt.s32.totalorder %s33_s25, %s33_s25 }
   0x7   :  { %p5696_p0 = scmp.ne.s32.totalorder %s33_s25, %s5695_s26  ;;  %p5701_p2 = scmp.lt.s32.totalorder %s5695_s26, %s5695_s26 }
   0x9   :  { %p5702_p3 = por %p5701_p2, %p5700_p1 }
   0xb   :  { %p5703_p4 = pnand %p5702_p3, %p5696_p0 }
   0xd   :  { %5706 = shalt.err (!%p5703_p4)
}
   0xe   :  { %s5858_s27 = smov 512   ;;  %s5859_s28 = smov 32  }
   0xf   :  { %38 = dma.hbm_to_vmem [thread:$0]  %s6098_s1, 2048, %s33_s25, [#allocation6], %s5858_s27, %s5858_s27, %s5859_s28  }
  0x10   :  { %s5860_s8 = smov [#allocation8]   ;;  %s5861_s10 = smov [#allocation11]  }
  0x11   :  { %s54_s9 = sshll.u32 %s5860_s8, 4  ;;  %s76_s11 = sshll.u32 %s5861_s10, 4  ;;  %s55_s9 = int_to_ptr.vmem [resolvable:$true] %s54_s9  ;;  %s77_s11 = int_to_ptr.vmem [resolvable:$true] %s76_s11 }
  0x12   :  { %s5715_s12 = scalar_lea.vmem %s55_s9, 65536  ;;  %p5720_p6 = scmp.lt.s32.totalorder %s55_s9, %s55_s9 }
  0x13   :  { %p5716_p5 = scmp.ne.s32.totalorder %s55_s9, %s5715_s12  ;;  %p5721_p7 = scmp.lt.s32.totalorder %s5715_s12, %s5715_s12 }
  0x15   :  { %p5722_p8 = por %p5721_p7, %p5720_p6 }
  0x17   :  { %p5723_p9 = pnand %p5722_p8, %p5716_p5 }
  0x19   :  { %5726 = shalt.err (!%p5723_p9)
}
  0x1a   :  { %60 = dma.hbm_to_vmem [thread:$0]  %s6100_s3, 65536, %s55_s9, [#allocation9], %s5858_s27, %s5858_s27, %s5859_s28  }
  0x1b   :  { %s5735_s15 = scalar_lea.vmem %s77_s11, 8192  ;;  %p5740_p11 = scmp.lt.s32.totalorder %s77_s11, %s77_s11 }
  0x1c   :  { %p5736_p10 = scmp.ne.s32.totalorder %s77_s11, %s5735_s15  ;;  %p5741_p12 = scmp.lt.s32.totalorder %s5735_s15, %s5735_s15 }
  0x1e   :  { %p5742_p13 = por %p5741_p12, %p5740_p11 }
  0x20   :  { %p5743_p0 = pnand %p5742_p13, %p5736_p10 }
  0x22   :  { %5746 = shalt.err (!%p5743_p0)
}
  0x23   :  { %s5862_s1 = smov 64   ;;  %s5863_s16 = smov 4  }
  0x24   :  { %82 = dma.hbm_to_vmem [thread:$0]  %s6102_s5, 8192, %s77_s11, [#allocation12], %s5862_s1, %s5862_s1, %s5863_s16  }
  0x25   :  { %s5864_s19 = smov [#allocation2]   ;;  %s5865_s21 = smov [#allocation7]  }
  0x26   :  { %s23_s20 = sshll.u32 %s5864_s19, 4  ;;  %s45_s22 = sshll.u32 %s5865_s21, 4  ;;  %s24_s20 = int_to_ptr.vmem [resolvable:$true] %s23_s20  ;;  %s46_s22 = int_to_ptr.vmem [resolvable:$true] %s45_s22 }
  0x27   :  { %s5755_s3 = scalar_lea.vmem %s24_s20, 128  ;;  %p5760_p2 = scmp.lt.s32.totalorder %s24_s20, %s24_s20 }
  0x28   :  { %p5756_p1 = scmp.ne.s32.totalorder %s24_s20, %s5755_s3  ;;  %p5761_p3 = scmp.lt.s32.totalorder %s5755_s3, %s5755_s3 }
  0x2a   :  { %p5762_p4 = por %p5761_p3, %p5760_p2 }
  0x2c   :  { %p5763_p5 = pnand %p5762_p4, %p5756_p1 }
  0x2e   :  { %5766 = shalt.err (!%p5763_p5)
}
  0x2f   :  { %26 = dma.hbm_to_vmem [thread:$0]  %s6097_s0, 128, %s24_s20, [#allocation3]  }
  0x30   :  { %s5775_s25 = scalar_lea.vmem %s46_s22, 128  ;;  %p5780_p7 = scmp.lt.s32.totalorder %s46_s22, %s46_s22 }
  0x31   :  { %p5776_p6 = scmp.ne.s32.totalorder %s46_s22, %s5775_s25  ;;  %p5781_p8 = scmp.lt.s32.totalorder %s5775_s25, %s5775_s25 }
  0x33   :  { %p5782_p9 = por %p5781_p8, %p5780_p7 }
  0x35   :  { %p5783_p10 = pnand %p5782_p9, %p5776_p6 }
  0x37   :  { %5786 = shalt.err (!%p5783_p10)
}
  0x38   :  { %48 = dma.hbm_to_vmem [thread:$0]  %s6099_s2, 128, %s46_s22, [#allocation6]  }
  0x39   :  { %s5866_s27 = smov [#allocation10]   ;;  %s5867_s29 = smov [#allocation13]  }
  0x3a   :  { %s67_s28 = sshll.u32 %s5866_s27, 4  ;;  %s89_s30 = sshll.u32 %s5867_s29, 4  ;;  %s68_s28 = int_to_ptr.vmem [resolvable:$true] %s67_s28  ;;  %s90_s30 = int_to_ptr.vmem [resolvable:$true] %s89_s30 }
  0x3b   :  { %s5795_s8 = scalar_lea.vmem %s68_s28, 128  ;;  %p5800_p12 = scmp.lt.s32.totalorder %s68_s28, %s68_s28 }
  0x3c   :  { %p5796_p11 = scmp.ne.s32.totalorder %s68_s28, %s5795_s8  ;;  %p5801_p13 = scmp.lt.s32.totalorder %s5795_s8, %s5795_s8 }
  0x3e   :  { %p5802_p0 = por %p5801_p13, %p5800_p12 }
  0x40   :  { %p5803_p1 = pnand %p5802_p0, %p5796_p11 }
  0x42   :  { %5806 = shalt.err (!%p5803_p1)
}
  0x43   :  { %70 = dma.hbm_to_vmem [thread:$0]  %s6101_s4, 128, %s68_s28, [#allocation9]  }
  0x44   :  { %s5815_s10 = scalar_lea.vmem %s90_s30, 16  ;;  %s5819_s2 = scalar_lea.vmem %s90_s30, 32 }
  0x45   :  { %p5816_p2 = scmp.ne.s32.totalorder %s90_s30, %s5815_s10  ;;  %p5820_p3 = scmp.lt.s32.totalorder %s90_s30, %s90_s30 }
  0x46   :  { %p5821_p4 = scmp.lt.s32.totalorder %s5819_s2, %s5815_s10 }
  0x48   :  { %p5822_p5 = por %p5821_p4, %p5820_p3 }
  0x4a   :  { %p5823_p6 = pnand %p5822_p5, %p5816_p2 }
  0x4c   :  { %5826 = shalt.err (!%p5823_p6)
}
  0x4d   :  { %92 = dma.hbm_to_vmem [thread:$0]  %s6103_s6, 16, %s90_s30, [#allocation12]  }
  0x4e   :  { %5847 = dma.done.wait [#allocation3], 128  }
  0x4f   :  { %5848 = vsyncadd [#allocation3], 4294967168 }
  0x50   :  { %5849 = dma.done.wait [#allocation6], 2176  }
  0x51   :  { %5850 = vsyncadd [#allocation6], 4294965120 }
  0x52   :  { %5851 = dma.done.wait [#allocation9], 65664  }
  0x53   :  { %5852 = vsyncadd [#allocation9], 4294901632 }
  0x54   :  { %5853 = dma.done.wait [#allocation12], 8208  }
  0x55   :  { %5854 = vsyncadd [#allocation12], 4294959088  ;;  %v5868_v0 = vmov 0   ;;  %v125_v1 = vld [vmem:[#allocation5 + $0x40] sm:$0xff]  ;;  %v126_v3 = vld [vmem:[#allocation5 + $0x48] sm:$0xff]  ;;  %vm255_vm0 = vcmask 261120  }
  0x56   :  { %291 = vmatprep.mubr.bf16.mxu0 %v5868_v0  ;;  %332 = vmatprep.mubr.bf16.mxu1 %v5868_v0  ;;  %v129_v2 = vld [vmem:[#allocation5 + $0x60] sm:$0xff]  ;;  %v130_v5 = vld [vmem:[#allocation5 + $0x68] sm:$0xff]  ;;  %v127_v15 = vld [vmem:[#allocation5 + $0x50] sm:$0xff]  ;;  %s5869_s4 = smov [#allocation14]  }
  0x57   :  { %v4933_v4 = vcombine.high %v125_v1, %v129_v2  ;;  %v4932_v6 = vcombine.low %v125_v1, %v129_v2  ;;  %v117_v7 = vld [vmem:[#allocation5] sm:$0xff]  ;;  %v4935_v9 = vcombine.high %v126_v3, %v130_v5  ;;  %v4934_v10 = vcombine.low %v126_v3, %v130_v5  ;;  %v118_v12 = vld [vmem:[#allocation5 + $0x8] sm:$0xff]  ;;  %v131_v16 = vld [vmem:[#allocation5 + $0x70] sm:$0xff]  ;;  %s4912_s6 = sshll.u32 %s5869_s4, 4  ;;  %s4913_s6 = int_to_ptr.vmem [resolvable:$true] %s4912_s6 }
  0x58   :  { %v121_v8 = vld [vmem:[#allocation5 + $0x20] sm:$0xff]  ;;  %v122_v13 = vld [vmem:[#allocation5 + $0x28] sm:$0xff]  ;;  %v128_v17 = vld [vmem:[#allocation5 + $0x58] sm:$0xff]  ;;  %v4937_v22 = vcombine.high %v127_v15, %v131_v16  ;;  %v4936_v29 = vcombine.low %v127_v15, %v131_v16  ;;  %s5827_s13 = scalar_lea.vmem %s4913_s6, 64  ;;  %p5832_p8 = scmp.lt.s32.totalorder %s4913_s6, %s4913_s6 }
  0x59   :  { %v4925_v11 = vcombine.high %v117_v7, %v121_v8  ;;  %271 = vmatprep.subr.bf16.mxu0 %v4933_v4  ;;  %v4927_v14 = vcombine.high %v118_v12, %v122_v13  ;;  %312 = vmatprep.subr.bf16.mxu1 %v4935_v9  ;;  %v4924_v18 = vcombine.low %v117_v7, %v121_v8  ;;  %v115_v19 = vld [vmem:[#allocation2] sm:$0xff]  ;;  %v119_v24 = vld [vmem:[#allocation5 + $0x10] sm:$0xff]  ;;  %v495_v33 = vld [vmem:[#allocation8 + $0x1c0] sm:$0xff]  ;;  %p5828_p7 = scmp.ne.s32.totalorder %s4913_s6, %s5827_s13  ;;  %p5833_p9 = scmp.lt.s32.totalorder %s5827_s13, %s5827_s13 }
  0x5a   :  { %272 = vmatpush1.bf16.msra.mxu0 %v4932_v6  ;;  %v132_v20 = vld [vmem:[#allocation5 + $0x78] sm:$0xff]  ;;  %313 = vmatpush1.bf16.msra.mxu1 %v4934_v10  ;;  %v4926_v21 = vcombine.low %v118_v12, %v122_v13  ;;  %v123_v25 = vld [vmem:[#allocation5 + $0x30] sm:$0xff]  ;;  %v116_v26 = vpack.c.bf16 %v115_v19, %v115_v19  ;;  %v499_v34 = vld [vmem:[#allocation8 + $0x1e0] sm:$0xff] }
  0x5b   :  { %273 = vmatprep.subr.bf16.mxu0 %v4925_v11  ;;  %314 = vmatprep.subr.bf16.mxu1 %v4927_v14  ;;  %v4939_v23 = vcombine.high %v128_v17, %v132_v20  ;;  %v120_v27 = vld [vmem:[#allocation5 + $0x18] sm:$0xff]  ;;  %v4938_v30 = vcombine.low %v128_v17, %v132_v20  ;;  %v4929_v31 = vcombine.high %v119_v24, %v123_v25  ;;  %v623_v35 = vld [vmem:[#allocation8 + $0x5c0] sm:$0xff]  ;;  %p5834_p10 = por %p5833_p9, %p5832_p8 }
  0x5c   :  { %v124_v28 = vld [vmem:[#allocation5 + $0x38] sm:$0xff]  ;;  %v627_v36 = vld [vmem:[#allocation8 + $0x5e0] sm:$0xff]  ;;  %v4928_v37 = vcombine.low %v119_v24, %v123_v25  ;;  %v5001_v39 = vcombine.high %v495_v33, %v499_v34  ;;  %v5000_v45 = vcombine.low %v495_v33, %v499_v34 }
  0x5d   :  { %v4931_v32 = vcombine.high %v120_v27, %v124_v28  ;;  %v4930_v38 = vcombine.low %v120_v27, %v124_v28  ;;  %v5129_v40 = vcombine.high %v623_v35, %v627_v36  ;;  %v487_v41 = vld [vmem:[#allocation8 + $0x180] sm:$0xff]  ;;  %v5128_v46 = vcombine.low %v623_v35, %v627_v36  ;;  %p5835_p11 = pnand %p5834_p10, %p5828_p7 }
  0x5e   :  { %274 = vmatpush1.bf16.msra.mxu0 %v4924_v18  ;;  %315 = vmatpush1.bf16.msra.mxu1 %v4926_v21  ;;  %v491_v42 = vld [vmem:[#allocation8 + $0x1a0] sm:$0xff] }
  0x5f   :  { %353 = vmatprep.subr.bf16.mxu0 %v4937_v22  ;;  %394 = vmatprep.subr.bf16.mxu1 %v4939_v23  ;;  %v615_v43 = vld [vmem:[#allocation8 + $0x580] sm:$0xff]  ;;  %v4993_v47 = vcombine.high %v487_v41, %v491_v42  ;;  %v4992_v53 = vcombine.low %v487_v41, %v491_v42 }
  0x60   :  { %v619_v44 = vld [vmem:[#allocation8 + $0x5a0] sm:$0xff] }
  0x61   :  { %4940 = vmatmul.mubr.msk.bf16.vlgmr.msra.gmra.mxu0 %vm255_vm0, %v116_v26  ;;  %4941 = vmatmul.mubr.msk.bf16.vlgmr.msra.gmra.mxu1 %vm255_vm0, %v116_v26  ;;  %v5121_v48 = vcombine.high %v615_v43, %v619_v44  ;;  %v479_v49 = vld [vmem:[#allocation8 + $0x140] sm:$0xff]  ;;  %v5120_v54 = vcombine.low %v615_v43, %v619_v44 }
  0x62   :  { %354 = vmatpush1.bf16.msra.mxu0 %v4936_v29  ;;  %395 = vmatpush1.bf16.msra.mxu1 %v4938_v30  ;;  %v483_v50 = vld [vmem:[#allocation8 + $0x160] sm:$0xff] }
  0x63   :  { %355 = vmatprep.subr.bf16.mxu0 %v4929_v31  ;;  %396 = vmatprep.subr.bf16.mxu1 %v4931_v32  ;;  %v607_v51 = vld [vmem:[#allocation8 + $0x540] sm:$0xff]  ;;  %v4985_v55 = vcombine.high %v479_v49, %v483_v50  ;;  %v4984_v61 = vcombine.low %v479_v49, %v483_v50 }
  0x64   :  { %373 = vmatprep.mubr.bf16.mxu0 %v5868_v0  ;;  %414 = vmatprep.mubr.bf16.mxu1 %v5868_v0  ;;  %v611_v52 = vld [vmem:[#allocation8 + $0x560] sm:$0xff] }
  0x65   :  { %v5113_v56 = vcombine.high %v607_v51, %v611_v52  ;;  %v471_v57 = vld [vmem:[#allocation8 + $0x100] sm:$0xff]  ;;  %v5112_v0 = vcombine.low %v607_v51, %v611_v52 }
  0x66   :  { %356 = vmatpush1.bf16.msra.mxu0 %v4928_v37  ;;  %397 = vmatpush1.bf16.msra.mxu1 %v4930_v38  ;;  %v475_v58 = vld [vmem:[#allocation8 + $0x120] sm:$0xff] }
  0x67   :  { %3553 = vmatprep.subr.bf16.mxu0 %v5001_v39  ;;  %3594 = vmatprep.subr.bf16.mxu1 %v5129_v40  ;;  %v599_v59 = vld [vmem:[#allocation8 + $0x500] sm:$0xff]  ;;  %v4977_v1 = vcombine.high %v471_v57, %v475_v58  ;;  %v4976_v5 = vcombine.low %v471_v57, %v475_v58 }
  0x68   :  { %v603_v60 = vld [vmem:[#allocation8 + $0x520] sm:$0xff] }
  0x69   :  { %4942 = vmatmul.mubr.msk.bf16.vlgmr.msra.gmra.mxu0 %vm255_vm0, %v116_v26  ;;  %4943 = vmatmul.mubr.msk.bf16.vlgmr.msra.gmra.mxu1 %vm255_vm0, %v116_v26  ;;  %v463_v62 = vld [vmem:[#allocation8 + $0xc0] sm:$0xff]  ;;  %v5105_v4 = vcombine.high %v599_v59, %v603_v60  ;;  %v5104_v8 = vcombine.low %v599_v59, %v603_v60 }
  0x6a   :  { %3554 = vmatpush1.bf16.msra.mxu0 %v5000_v45  ;;  %3595 = vmatpush1.bf16.msra.mxu1 %v5128_v46  ;;  %v467_v63 = vld [vmem:[#allocation8 + $0xe0] sm:$0xff] }
  0x6b   :  { %3555 = vmatprep.subr.bf16.mxu0 %v4993_v47  ;;  %3596 = vmatprep.subr.bf16.mxu1 %v5121_v48  ;;  %v591_v2 = vld [vmem:[#allocation8 + $0x4c0] sm:$0xff]  ;;  %v4969_v9 = vcombine.high %v463_v62, %v467_v63  ;;  %v4968_v13 = vcombine.low %v463_v62, %v467_v63 }
  0x6c   :  { %v595_v3 = vld [vmem:[#allocation8 + $0x4e0] sm:$0xff] }
  0x6d   :  { %v455_v6 = vld [vmem:[#allocation8 + $0x80] sm:$0xff]  ;;  %v5097_v12 = vcombine.high %v591_v2, %v595_v3  ;;  %v5096_v16 = vcombine.low %v591_v2, %v595_v3 }
  0x6e   :  { %3556 = vmatpush1.bf16.msra.mxu0 %v4992_v53  ;;  %3597 = vmatpush1.bf16.msra.mxu1 %v5120_v54  ;;  %v459_v7 = vld [vmem:[#allocation8 + $0xa0] sm:$0xff] }
  0x6f   :  { %3557 = vmatprep.subr.bf16.mxu0 %v4985_v55  ;;  %3598 = vmatprep.subr.bf16.mxu1 %v5113_v56  ;;  %v583_v10 = vld [vmem:[#allocation8 + $0x480] sm:$0xff]  ;;  %v4961_v17 = vcombine.high %v455_v6, %v459_v7  ;;  %v4960_v21 = vcombine.low %v455_v6, %v459_v7 }
  0x70   :  { %v587_v11 = vld [vmem:[#allocation8 + $0x4a0] sm:$0xff] }
  0x71   :  { %v447_v14 = vld [vmem:[#allocation8 + $0x40] sm:$0xff]  ;;  %v5089_v20 = vcombine.high %v583_v10, %v587_v11  ;;  %v5088_v24 = vcombine.low %v583_v10, %v587_v11 }
  0x72   :  { %3558 = vmatpush1.bf16.msra.mxu0 %v4984_v61  ;;  %3599 = vmatpush1.bf16.msra.mxu1 %v5112_v0  ;;  %v451_v15 = vld [vmem:[#allocation8 + $0x60] sm:$0xff] }
  0x73   :  { %3559 = vmatprep.subr.bf16.mxu0 %v4977_v1  ;;  %3600 = vmatprep.subr.bf16.mxu1 %v5105_v4  ;;  %v575_v18 = vld [vmem:[#allocation8 + $0x440] sm:$0xff]  ;;  %v4953_v25 = vcombine.high %v447_v14, %v451_v15  ;;  %v4952_v29 = vcombine.low %v447_v14, %v451_v15 }
  0x74   :  { %v579_v19 = vld [vmem:[#allocation8 + $0x460] sm:$0xff] }
  0x75   :  { %v439_v22 = vld [vmem:[#allocation8] sm:$0xff]  ;;  %v5081_v28 = vcombine.high %v575_v18, %v579_v19  ;;  %v5080_v32 = vcombine.low %v575_v18, %v579_v19 }
  0x76   :  { %3560 = vmatpush1.bf16.msra.mxu0 %v4976_v5  ;;  %3601 = vmatpush1.bf16.msra.mxu1 %v5104_v8  ;;  %v443_v23 = vld [vmem:[#allocation8 + $0x20] sm:$0xff] }
  0x77   :  { %3561 = vmatprep.subr.bf16.mxu0 %v4969_v9  ;;  %3602 = vmatprep.subr.bf16.mxu1 %v5097_v12  ;;  %v567_v26 = vld [vmem:[#allocation8 + $0x400] sm:$0xff]  ;;  %v4945_v33 = vcombine.high %v439_v22, %v443_v23  ;;  %v4944_v37 = vcombine.low %v439_v22, %v443_v23 }
  0x78   :  { %v571_v27 = vld [vmem:[#allocation8 + $0x420] sm:$0xff] }
  0x79   :  { %v559_v30 = vld [vmem:[#allocation8 + $0x3c0] sm:$0xff]  ;;  %v5073_v36 = vcombine.high %v567_v26, %v571_v27  ;;  %v5072_v40 = vcombine.low %v567_v26, %v571_v27 }
  0x7a   :  { %3562 = vmatpush1.bf16.msra.mxu0 %v4968_v13  ;;  %3603 = vmatpush1.bf16.msra.mxu1 %v5096_v16  ;;  %v563_v31 = vld [vmem:[#allocation8 + $0x3e0] sm:$0xff] }
  0x7b   :  { %3563 = vmatprep.subr.bf16.mxu0 %v4961_v17  ;;  %3604 = vmatprep.subr.bf16.mxu1 %v5089_v20  ;;  %v687_v34 = vld [vmem:[#allocation8 + $0x7c0] sm:$0xff]  ;;  %v5065_v41 = vcombine.high %v559_v30, %v563_v31  ;;  %v5064_v45 = vcombine.low %v559_v30, %v563_v31 }
  0x7c   :  { %v691_v35 = vld [vmem:[#allocation8 + $0x7e0] sm:$0xff] }
  0x7d   :  { %v551_v38 = vld [vmem:[#allocation8 + $0x380] sm:$0xff]  ;;  %v5193_v44 = vcombine.high %v687_v34, %v691_v35  ;;  %v5192_v48 = vcombine.low %v687_v34, %v691_v35 }
  0x7e   :  { %3564 = vmatpush1.bf16.msra.mxu0 %v4960_v21  ;;  %3605 = vmatpush1.bf16.msra.mxu1 %v5088_v24  ;;  %v555_v39 = vld [vmem:[#allocation8 + $0x3a0] sm:$0xff] }
  0x7f   :  { %3565 = vmatprep.subr.bf16.mxu0 %v4953_v25  ;;  %3606 = vmatprep.subr.bf16.mxu1 %v5081_v28  ;;  %v679_v42 = vld [vmem:[#allocation8 + $0x780] sm:$0xff]  ;;  %v5057_v49 = vcombine.high %v551_v38, %v555_v39  ;;  %v5056_v53 = vcombine.low %v551_v38, %v555_v39 }
  0x80   :  { %v683_v43 = vld [vmem:[#allocation8 + $0x7a0] sm:$0xff] }
  0x81   :  { %v543_v46 = vld [vmem:[#allocation8 + $0x340] sm:$0xff]  ;;  %v5185_v52 = vcombine.high %v679_v42, %v683_v43  ;;  %v5184_v56 = vcombine.low %v679_v42, %v683_v43  ;;  %v135_v43 = vlaneseq }
  0x82   :  { %3566 = vmatpush1.bf16.msra.mxu0 %v4952_v29  ;;  %3607 = vmatpush1.bf16.msra.mxu1 %v5080_v32  ;;  %v547_v47 = vld [vmem:[#allocation8 + $0x360] sm:$0xff] }
  0x83   :  { %3567 = vmatprep.subr.bf16.mxu0 %v4945_v33  ;;  %3608 = vmatprep.subr.bf16.mxu1 %v5073_v36  ;;  %v671_v50 = vld [vmem:[#allocation8 + $0x740] sm:$0xff]  ;;  %v5049_v57 = vcombine.high %v543_v46, %v547_v47  ;;  %v5048_v61 = vcombine.low %v543_v46, %v547_v47  ;;  %v5946_v46 = vld [vmem:[#allocation7] sm:$0xff] }
  0x84   :  { %v675_v51 = vld [vmem:[#allocation8 + $0x760] sm:$0xff] }
  0x85   :  { %v535_v54 = vld [vmem:[#allocation8 + $0x300] sm:$0xff]  ;;  %v5177_v60 = vcombine.high %v671_v50, %v675_v51  ;;  %v5176_v0 = vcombine.low %v671_v50, %v675_v51 }
  0x86   :  { %3568 = vmatpush1.bf16.msra.mxu0 %v4944_v37  ;;  %3609 = vmatpush1.bf16.msra.mxu1 %v5072_v40  ;;  %v539_v55 = vld [vmem:[#allocation8 + $0x320] sm:$0xff] }
  0x87   :  { %3569 = vmatprep.subr.bf16.mxu0 %v5065_v41  ;;  %3610 = vmatprep.subr.bf16.mxu1 %v5193_v44  ;;  %v663_v58 = vld [vmem:[#allocation8 + $0x700] sm:$0xff]  ;;  %v5041_v1 = vcombine.high %v535_v54, %v539_v55  ;;  %v5040_v5 = vcombine.low %v535_v54, %v539_v55  ;;  %v5943_v44 = vshrl.u32 %v135_v43, 7 }
  0x88   :  { %v667_v59 = vld [vmem:[#allocation8 + $0x720] sm:$0xff] }
  0x89   :  { %v527_v62 = vld [vmem:[#allocation8 + $0x2c0] sm:$0xff]  ;;  %v5169_v4 = vcombine.high %v663_v58, %v667_v59  ;;  %v5168_v8 = vcombine.low %v663_v58, %v667_v59  ;;  %v145_v47 = vsub.s32 2, %v5943_v44 }
  0x8a   :  { %3570 = vmatpush2.bf16.msra.mxu0 %v5064_v45  ;;  %3611 = vmatpush2.bf16.msra.mxu1 %v5192_v48  ;;  %v531_v63 = vld [vmem:[#allocation8 + $0x2e0] sm:$0xff]  ;;  %v137_v45 = vsub.s32 0, %v5943_v44  ;;  %v141_v48 = vsub.s32 1, %v5943_v44 }
  0x8b   :  { %3571 = vmatprep.subr.bf16.mxu0 %v5057_v49  ;;  %3612 = vmatprep.subr.bf16.mxu1 %v5185_v52  ;;  %v655_v2 = vld [vmem:[#allocation8 + $0x6c0] sm:$0xff]  ;;  %v5033_v9 = vcombine.high %v527_v62, %v531_v63  ;;  %v5032_v13 = vcombine.low %v527_v62, %v531_v63  ;;  %v149_v49 = vsub.s32 3, %v5943_v44  ;;  %v146_v51 = vrot.slane %v5946_v46, %v145_v47 }
  0x8c   :  { %v659_v3 = vld [vmem:[#allocation8 + $0x6e0] sm:$0xff]  ;;  %v138_v50 = vrot.slane %v5946_v46, %v137_v45  ;;  %v142_v52 = vrot.slane %v5946_v46, %v141_v48 }
  0x8d   :  { %v519_v6 = vld [vmem:[#allocation8 + $0x280] sm:$0xff]  ;;  %v5161_v12 = vcombine.high %v655_v2, %v659_v3  ;;  %v5160_v14 = vcombine.low %v655_v2, %v659_v3  ;;  %v150_v54 = vrot.slane %v5946_v46, %v149_v49  ;;  %v165_v2 = vsub.s32 7, %v5943_v44 }
  0x8e   :  { %3572 = vmatpush2.bf16.msra.mxu0 %v5056_v53  ;;  %3613 = vmatpush2.bf16.msra.mxu1 %v5184_v56  ;;  %v523_v7 = vld [vmem:[#allocation8 + $0x2a0] sm:$0xff] }
  0x8f   :  { %3573 = vmatprep.subr.bf16.mxu0 %v5049_v57  ;;  %3614 = vmatprep.subr.bf16.mxu1 %v5177_v60  ;;  %v647_v10 = vld [vmem:[#allocation8 + $0x680] sm:$0xff]  ;;  %v5025_v15 = vcombine.high %v519_v6, %v523_v7  ;;  %v5024_v17 = vcombine.low %v519_v6, %v523_v7 }
  0x90   :  { %v651_v11 = vld [vmem:[#allocation8 + $0x6a0] sm:$0xff] }
  0x91   :  { %v5153_v16 = vcombine.high %v647_v10, %v651_v11  ;;  %v5152_v18 = vcombine.low %v647_v10, %v651_v11  ;;  %v511_v19 = vld [vmem:[#allocation8 + $0x240] sm:$0xff] }
  0x92   :  { %3574 = vmatpush2.bf16.msra.mxu0 %v5048_v61  ;;  %3615 = vmatpush2.bf16.msra.mxu1 %v5176_v0  ;;  %v515_v20 = vld [vmem:[#allocation8 + $0x260] sm:$0xff]  ;;  %v157_v61 = vsub.s32 5, %v5943_v44 }
  0x93   :  { %3575 = vmatprep.subr.bf16.mxu0 %v5041_v1  ;;  %3616 = vmatprep.subr.bf16.mxu1 %v5169_v4  ;;  %v639_v21 = vld [vmem:[#allocation8 + $0x640] sm:$0xff]  ;;  %v5017_v22 = vcombine.high %v511_v19, %v515_v20  ;;  %v5016_v24 = vcombine.low %v511_v19, %v515_v20  ;;  %v166_v19 = vrot.slane %v5946_v46, %v165_v2 }
  0x94   :  { %v643_v23 = vld [vmem:[#allocation8 + $0x660] sm:$0xff] }
  0x95   :  { %v5144_v25 = vcombine.low %v639_v21, %v643_v23  ;;  %v5145_v26 = vcombine.high %v639_v21, %v643_v23  ;;  %v503_v27 = vld [vmem:[#allocation8 + $0x200] sm:$0xff] }
  0x96   :  { %3576 = vmatpush2.bf16.msra.mxu0 %v5040_v5  ;;  %3617 = vmatpush2.bf16.msra.mxu1 %v5168_v8  ;;  %v507_v28 = vld [vmem:[#allocation8 + $0x220] sm:$0xff] }
  0x97   :  { %3577 = vmatprep.subr.bf16.mxu0 %v5033_v9  ;;  %3618 = vmatprep.subr.bf16.mxu1 %v5161_v12  ;;  %v631_v29 = vld [vmem:[#allocation8 + $0x600] sm:$0xff]  ;;  %v5009_v30 = vcombine.high %v503_v27, %v507_v28  ;;  %v5008_v32 = vcombine.low %v503_v27, %v507_v28 }
  0x98   :  { %v635_v31 = vld [vmem:[#allocation8 + $0x620] sm:$0xff] }
  0x99   :  { %v5136_v33 = vcombine.low %v631_v29, %v635_v31  ;;  %v5137_v34 = vcombine.high %v631_v29, %v635_v31  ;;  %v5935_v35 = vld [vmem:[#allocation8 + $0x9c0] sm:$0xff] }
  0x9a   :  { %3578 = vmatpush2.bf16.msra.mxu0 %v5032_v13  ;;  %3619 = vmatpush2.bf16.msra.mxu1 %v5160_v14  ;;  %v755_v36 = vld [vmem:[#allocation8 + $0x9e0] sm:$0xff]  ;;  %v158_v14 = vrot.slane %v5946_v46, %v157_v61 }
  0x9b   :  { %3579 = vmatprep.subr.bf16.mxu0 %v5025_v15  ;;  %3620 = vmatprep.subr.bf16.mxu1 %v5153_v16  ;;  %v5937_v37 = vld [vmem:[#allocation8 + $0xdc0] sm:$0xff]  ;;  %v5257_v38 = vcombine.high %v5935_v35, %v755_v36  ;;  %v5256_v40 = vcombine.low %v5935_v35, %v755_v36 }
  0x9c   :  { %v883_v39 = vld [vmem:[#allocation8 + $0xde0] sm:$0xff] }
  0x9d   :  { %v5384_v41 = vcombine.low %v5937_v37, %v883_v39  ;;  %v5385_v42 = vcombine.high %v5937_v37, %v883_v39  ;;  %v743_v5 = vld [vmem:[#allocation8 + $0x980] sm:$0xff] }
  0x9e   :  { %3580 = vmatpush2.bf16.msra.mxu0 %v5024_v17  ;;  %3621 = vmatpush2.bf16.msra.mxu1 %v5152_v18  ;;  %v747_v6 = vld [vmem:[#allocation8 + $0x9a0] sm:$0xff] }
  0x9f   :  { %3581 = vmatprep.subr.bf16.mxu0 %v5017_v22  ;;  %3622 = vmatprep.subr.bf16.mxu1 %v5145_v26  ;;  %v871_v9 = vld [vmem:[#allocation8 + $0xd80] sm:$0xff]  ;;  %v5249_v17 = vcombine.high %v743_v5, %v747_v6  ;;  %v5248_v27 = vcombine.low %v743_v5, %v747_v6 }
  0xa0   :  { %v875_v10 = vld [vmem:[#allocation8 + $0xda0] sm:$0xff] }
  0xa1   :  { %v5377_v20 = vcombine.high %v871_v9, %v875_v10  ;;  %v735_v21 = vld [vmem:[#allocation8 + $0x940] sm:$0xff] }
  0xa2   :  { %3582 = vmatpush2.bf16.msra.mxu0 %v5016_v24  ;;  %3623 = vmatpush2.bf16.msra.mxu1 %v5144_v25  ;;  %v739_v22 = vld [vmem:[#allocation8 + $0x960] sm:$0xff] }
  0xa3   :  { %3583 = vmatprep.subr.bf16.mxu0 %v5009_v30  ;;  %3624 = vmatprep.subr.bf16.mxu1 %v5137_v34  ;;  %v863_v24 = vld [vmem:[#allocation8 + $0xd40] sm:$0xff]  ;;  %v5376_v30 = vcombine.low %v871_v9, %v875_v10  ;;  %v5241_v31 = vcombine.high %v735_v21, %v739_v22 }
  0xa4   :  { %v867_v25 = vld [vmem:[#allocation8 + $0xd60] sm:$0xff] }
  0xa5   :  { %v5369_v34 = vcombine.high %v863_v24, %v867_v25  ;;  %v727_v35 = vld [vmem:[#allocation8 + $0x900] sm:$0xff] }
  0xa6   :  { %3584 = vmatpush2.bf16.msra.mxu0 %v5008_v32  ;;  %3625 = vmatpush2.bf16.msra.mxu1 %v5136_v33  ;;  %v731_v36 = vld [vmem:[#allocation8 + $0x920] sm:$0xff] }
  0xa7   :  { %3635 = vmatprep.subr.bf16.mxu0 %v5257_v38  ;;  %3676 = vmatprep.subr.bf16.mxu1 %v5385_v42  ;;  %v855_v39 = vld [vmem:[#allocation8 + $0xd00] sm:$0xff] }
  0xa8   :  { %v859_v42 = vld [vmem:[#allocation8 + $0xd20] sm:$0xff] }
  0xa9   :  { %v843_v5 = vld [vmem:[#allocation8 + $0xca0] sm:$0xff] }
  0xaa   :  { %v703_v10 = vld [vmem:[#allocation8 + $0x840] sm:$0xff] }
 0x121   :  { %v293_v53 = vpop.f32.mrf.mxu0  ;;  %v334_v56 = vpop.f32.mrf.mxu1 }
 0x122   :  { %v294_v55 = vadd.f32 %v293_v53, %v138_v50  ;;  %v335_v57 = vadd.f32 %v334_v56, %v146_v51  ;;  %v5233_v53 = vcombine.high %v727_v35, %v731_v36  ;;  %v719_v56 = vld [vmem:[#allocation8 + $0x8c0] sm:$0xff] }
 0x123   :  { %v295_v58 = vpop.f32.mrf.mxu0  ;;  %v336_v60 = vpop.f32.mrf.mxu1 }
 0x124   :  { %v296_v59 = vadd.f32 %v295_v58, %v142_v52  ;;  %v423_v62 = vmax.f32 %v294_v55, 0.0  ;;  %v425_v63 = vmax.f32 %v335_v57, 0.0  ;;  %v337_v0 = vadd.f32 %v336_v60, %v150_v54  ;;  %v723_v57 = vld [vmem:[#allocation8 + $0x8e0] sm:$0xff] }
 0x125   :  { %v297_v1 = vpop.f32.mrf.mxu0  ;;  %v338_v4 = vpop.f32.mrf.mxu1  ;;  %v5368_v52 = vcombine.low %v863_v24, %v867_v25  ;;  %v5361_v55 = vcombine.high %v855_v39, %v859_v42  ;;  %v847_v58 = vld [vmem:[#allocation8 + $0xcc0] sm:$0xff]  ;;  %v5232_v60 = vcombine.low %v727_v35, %v731_v36  ;;  %v5224_v6 = vcombine.low %v719_v56, %v723_v57 }
 0x126   :  { %v424_v3 = vmax.f32 %v296_v59, 0.0  ;;  %v426_v7 = vmax.f32 %v337_v0, 0.0  ;;  %v5965_v11 = vpack.c.bf16 %v425_v63, %v425_v63  ;;  %v5972_v15 = vpack.c.bf16 %v423_v62, %v423_v62  ;;  %v851_v59 = vld [vmem:[#allocation8 + $0xce0] sm:$0xff] }
 0x127   :  { %v298_v8 = vpop.f32.mrf.mxu0  ;;  %v339_v13 = vpop.f32.mrf.mxu1  ;;  %v5360_v62 = vcombine.low %v855_v39, %v859_v42  ;;  %v5225_v63 = vcombine.high %v719_v56, %v723_v57  ;;  %v5353_v0 = vcombine.high %v847_v58, %v851_v59  ;;  %v711_v1 = vld [vmem:[#allocation8 + $0x880] sm:$0xff] }
 0x128   :  { %v5967_v12 = vpack.c.bf16 %v424_v3, %v424_v3  ;;  %v5974_v16 = vpack.c.bf16 %v426_v7, %v426_v7  ;;  %v715_v3 = vld [vmem:[#allocation8 + $0x8a0] sm:$0xff]  ;;  %v5352_v7 = vcombine.low %v847_v58, %v851_v59 }
 0x129   :  { %v5976_v18 = vpop.f32.mrf.mxu0  ;;  %v5982_v23 = vpop.f32.mrf.mxu1  ;;  %v839_v4 = vld [vmem:[#allocation8 + $0xc80] sm:$0xff]  ;;  %v5217_v8 = vcombine.high %v711_v1, %v715_v3 }
 0x12a   :  { %3585 = vmatprep.mubr.bf16.mxu0 %v5967_v12  ;;  %3626 = vmatprep.mubr.bf16.mxu1 %v5974_v16  ;;  %v5345_v9 = vcombine.high %v839_v4, %v843_v5  ;;  %v707_v13 = vld [vmem:[#allocation8 + $0x860] sm:$0xff] }
 0x12b   :  { %3586 = vmatmul.mubr.bf16.vlgmr.msra.gmra.mxu0 %v5972_v15  ;;  %v377_v26 = vpop.f32.mrf.mxu0  ;;  %3627 = vmatmul.mubr.bf16.vlgmr.msra.gmra.mxu1 %v5965_v11  ;;  %v418_v29 = vpop.f32.mrf.mxu1  ;;  %v695_v24 = vld [vmem:[#allocation8 + $0x800] sm:$0xff] }
 0x12c   :  { %3636 = vmatpush1.bf16.msra.mxu0 %v5256_v40  ;;  %v378_v28 = vadd.f32 %v377_v26, %v158_v14  ;;  %3677 = vmatpush1.bf16.msra.mxu1 %v5384_v41  ;;  %v419_v33 = vadd.f32 %v418_v29, %v166_v19  ;;  %v5240_v40 = vcombine.low %v735_v21, %v739_v22  ;;  %v831_v14 = vld [vmem:[#allocation8 + $0xc40] sm:$0xff] }
 0x12d   :  { %3637 = vmatprep.subr.bf16.mxu0 %v5249_v17  ;;  %v379_v32 = vpop.f32.mrf.mxu0  ;;  %3678 = vmatprep.subr.bf16.mxu1 %v5377_v20  ;;  %v420_v38 = vpop.f32.mrf.mxu1  ;;  %v835_v17 = vld [vmem:[#allocation8 + $0xc60] sm:$0xff]  ;;  %v5216_v19 = vcombine.low %v711_v1, %v715_v3  ;;  %v5344_v20 = vcombine.low %v839_v4, %v843_v5  ;;  %v5209_v21 = vcombine.high %v703_v10, %v707_v13 }
 0x12e   :  { %v428_v37 = vmax.f32 %v378_v28, 0.0  ;;  %v430_v43 = vmax.f32 %v419_v33, 0.0  ;;  %v5337_v22 = vcombine.high %v831_v14, %v835_v17  ;;  %v699_v25 = vld [vmem:[#allocation8 + $0x820] sm:$0xff]  ;;  %v5208_v28 = vcombine.low %v703_v10, %v707_v13 }
 0x12f   :  { %v380_v50 = vpop.f32.mrf.mxu0  ;;  %v421_v41 = vpop.f32.mrf.mxu1  ;;  %v823_v26 = vld [vmem:[#allocation8 + $0xc00] sm:$0xff]  ;;  %v5336_v29 = vcombine.low %v831_v14, %v835_v17  ;;  %v5200_v36 = vcombine.low %v695_v24, %v699_v25 }
 0x130   :  { %3638 = vmatpush1.bf16.msra.mxu0 %v5248_v27  ;;  %v5987_v51 = vpack.c.bf16 %v428_v37, %v428_v37  ;;  %3679 = vmatpush1.bf16.msra.mxu1 %v5376_v30  ;;  %v5989_v54 = vpack.c.bf16 %v430_v43, %v430_v43  ;;  %v827_v27 = vld [vmem:[#allocation8 + $0xc20] sm:$0xff]  ;;  %v5201_v30 = vcombine.high %v695_v24, %v699_v25 }
 0x131   :  { %3639 = vmatprep.subr.bf16.mxu0 %v5241_v31  ;;  %3680 = vmatprep.subr.bf16.mxu1 %v5369_v34  ;;  %v5329_v31 = vcombine.high %v823_v26, %v827_v27  ;;  %v815_v32 = vld [vmem:[#allocation8 + $0xbc0] sm:$0xff]  ;;  %v5328_v37 = vcombine.low %v823_v26, %v827_v27 }
 0x132   :  { %3667 = vmatprep.mubr.bf16.mxu0 %v5987_v51  ;;  %3708 = vmatprep.mubr.bf16.mxu1 %v5989_v54  ;;  %v819_v33 = vld [vmem:[#allocation8 + $0xbe0] sm:$0xff] }
 0x133   :  { %v943_v34 = vld [vmem:[#allocation8 + $0xfc0] sm:$0xff]  ;;  %v5321_v38 = vcombine.high %v815_v32, %v819_v33  ;;  %v5320_v41 = vcombine.low %v815_v32, %v819_v33 }
 0x134   :  { %3640 = vmatpush1.bf16.msra.mxu0 %v5240_v40  ;;  %3681 = vmatpush1.bf16.msra.mxu1 %v5368_v52  ;;  %v947_v35 = vld [vmem:[#allocation8 + $0xfe0] sm:$0xff] }
 0x135   :  { %3641 = vmatprep.subr.bf16.mxu0 %v5233_v53  ;;  %3682 = vmatprep.subr.bf16.mxu1 %v5361_v55  ;;  %v5449_v39 = vcombine.high %v943_v34, %v947_v35  ;;  %v807_v42 = vld [vmem:[#allocation8 + $0xb80] sm:$0xff]  ;;  %v5448_v52 = vcombine.low %v943_v34, %v947_v35 }
 0x136   :  { %v811_v43 = vld [vmem:[#allocation8 + $0xba0] sm:$0xff] }
 0x137   :  { %v935_v50 = vld [vmem:[#allocation8 + $0xf80] sm:$0xff]  ;;  %v5313_v53 = vcombine.high %v807_v42, %v811_v43 }
 0x138   :  { %3642 = vmatpush1.bf16.msra.mxu0 %v5232_v60  ;;  %3683 = vmatpush1.bf16.msra.mxu1 %v5360_v62  ;;  %v939_v40 = vld [vmem:[#allocation8 + $0xfa0] sm:$0xff]  ;;  %v5312_v60 = vcombine.low %v807_v42, %v811_v43 }
 0x139   :  { %3643 = vmatprep.subr.bf16.mxu0 %v5225_v63  ;;  %3684 = vmatprep.subr.bf16.mxu1 %v5353_v0  ;;  %v5441_v55 = vcombine.high %v935_v50, %v939_v40  ;;  %v799_v56 = vld [vmem:[#allocation8 + $0xb40] sm:$0xff]  ;;  %v5440_v62 = vcombine.low %v935_v50, %v939_v40 }
 0x13a   :  { %v803_v57 = vld [vmem:[#allocation8 + $0xb60] sm:$0xff] }
 0x13b   :  { %v927_v58 = vld [vmem:[#allocation8 + $0xf40] sm:$0xff]  ;;  %v5305_v63 = vcombine.high %v799_v56, %v803_v57 }
 0x13c   :  { %3644 = vmatpush1.bf16.msra.mxu0 %v5224_v6  ;;  %3685 = vmatpush1.bf16.msra.mxu1 %v5352_v7  ;;  %v931_v59 = vld [vmem:[#allocation8 + $0xf60] sm:$0xff]  ;;  %v5304_v6 = vcombine.low %v799_v56, %v803_v57 }
 0x13d   :  { %3645 = vmatprep.subr.bf16.mxu0 %v5217_v8  ;;  %3686 = vmatprep.subr.bf16.mxu1 %v5345_v9  ;;  %v5433_v0 = vcombine.high %v927_v58, %v931_v59  ;;  %v791_v1 = vld [vmem:[#allocation8 + $0xb00] sm:$0xff]  ;;  %v5432_v7 = vcombine.low %v927_v58, %v931_v59 }
 0x13e   :  { %v795_v3 = vld [vmem:[#allocation8 + $0xb20] sm:$0xff] }
 0x13f   :  { %v919_v4 = vld [vmem:[#allocation8 + $0xf00] sm:$0xff]  ;;  %v5297_v8 = vcombine.high %v791_v1, %v795_v3 }
 0x140   :  { %3646 = vmatpush1.bf16.msra.mxu0 %v5216_v19  ;;  %3687 = vmatpush1.bf16.msra.mxu1 %v5344_v20  ;;  %v923_v5 = vld [vmem:[#allocation8 + $0xf20] sm:$0xff]  ;;  %v5296_v19 = vcombine.low %v791_v1, %v795_v3  ;;  %v628_v1 = vld [vmem:[#allocation8 + $0x5e8] sm:$0xff] }
 0x141   :  { %3647 = vmatprep.subr.bf16.mxu0 %v5209_v21  ;;  %3688 = vmatprep.subr.bf16.mxu1 %v5337_v22  ;;  %v5425_v9 = vcombine.high %v919_v4, %v923_v5  ;;  %v783_v10 = vld [vmem:[#allocation8 + $0xac0] sm:$0xff]  ;;  %v5424_v20 = vcombine.low %v919_v4, %v923_v5 }
 0x142   :  { %v787_v13 = vld [vmem:[#allocation8 + $0xae0] sm:$0xff] }
 0x143   :  { %v911_v14 = vld [vmem:[#allocation8 + $0xec0] sm:$0xff]  ;;  %v5289_v21 = vcombine.high %v783_v10, %v787_v13 }
 0x144   :  { %3648 = vmatpush1.bf16.msra.mxu0 %v5208_v28  ;;  %3689 = vmatpush1.bf16.msra.mxu1 %v5336_v29  ;;  %v915_v17 = vld [vmem:[#allocation8 + $0xee0] sm:$0xff]  ;;  %v5288_v28 = vcombine.low %v783_v10, %v787_v13  ;;  %v161_v29 = vsub.s32 6, %v5943_v44  ;;  %v616_v13 = vld [vmem:[#allocation8 + $0x588] sm:$0xff] }
 0x145   :  { %3649 = vmatprep.subr.bf16.mxu0 %v5201_v30  ;;  %3690 = vmatprep.subr.bf16.mxu1 %v5329_v31  ;;  %v5417_v22 = vcombine.high %v911_v14, %v915_v17  ;;  %v775_v24 = vld [vmem:[#allocation8 + $0xa80] sm:$0xff]  ;;  %v5416_v30 = vcombine.low %v911_v14, %v915_v17  ;;  %v153_v31 = vsub.s32 4, %v5943_v44  ;;  %v620_v14 = vld [vmem:[#allocation8 + $0x5a8] sm:$0xff] }
 0x146   :  { %v779_v25 = vld [vmem:[#allocation8 + $0xaa0] sm:$0xff] }
 0x147   :  { %v903_v26 = vld [vmem:[#allocation8 + $0xe80] sm:$0xff]  ;;  %v5281_v32 = vcombine.high %v775_v24, %v779_v25  ;;  %v154_v42 = vrot.slane %v5946_v46, %v153_v31 }
 0x148   :  { %3650 = vmatpush1.bf16.msra.mxu0 %v5200_v36  ;;  %3691 = vmatpush1.bf16.msra.mxu1 %v5328_v37  ;;  %v907_v27 = vld [vmem:[#allocation8 + $0xea0] sm:$0xff] }
 0x149   :  { %3651 = vmatprep.subr.bf16.mxu0 %v5321_v38  ;;  %3692 = vmatprep.subr.bf16.mxu1 %v5449_v39  ;;  %v5409_v33 = vcombine.high %v903_v26, %v907_v27  ;;  %v767_v34 = vld [vmem:[#allocation8 + $0xa40] sm:$0xff]  ;;  %v162_v38 = vrot.slane %v5946_v46, %v161_v29  ;;  %v5280_v39 = vcombine.low %v775_v24, %v779_v25  ;;  %v608_v25 = vld [vmem:[#allocation8 + $0x548] sm:$0xff] }
 0x14a   :  { %v771_v35 = vld [vmem:[#allocation8 + $0xa60] sm:$0xff]  ;;  %v5408_v43 = vcombine.low %v903_v26, %v907_v27  ;;  %v376_v58 = vadd.f32 %v5976_v18, %v154_v42  ;;  %v5123_v24 = vcombine.high %v616_v13, %v620_v14  ;;  %v612_v26 = vld [vmem:[#allocation8 + $0x568] sm:$0xff] }
 0x14b   :  { %v895_v36 = vld [vmem:[#allocation8 + $0xe40] sm:$0xff]  ;;  %v5273_v50 = vcombine.high %v767_v34, %v771_v35  ;;  %v417_v56 = vadd.f32 %v5982_v23, %v162_v38  ;;  %v5272_v57 = vcombine.low %v767_v34, %v771_v35  ;;  %v476_v34 = vld [vmem:[#allocation8 + $0x128] sm:$0xff]  ;;  %v5114_v38 = vcombine.low %v608_v25, %v612_v26 }
 0x14c   :  { %3652 = vmatpush2.bf16.msra.mxu0 %v5320_v41  ;;  %3693 = vmatpush2.bf16.msra.mxu1 %v5448_v52  ;;  %v899_v37 = vld [vmem:[#allocation8 + $0xe60] sm:$0xff]  ;;  %v427_v5 = vmax.f32 %v376_v58, 0.0  ;;  %v600_v35 = vld [vmem:[#allocation8 + $0x508] sm:$0xff] }
 0x14d   :  { %3653 = vmatprep.subr.bf16.mxu0 %v5313_v53  ;;  %3694 = vmatprep.subr.bf16.mxu1 %v5441_v55  ;;  %v5401_v40 = vcombine.high %v895_v36, %v899_v37  ;;  %v759_v41 = vld [vmem:[#allocation8 + $0xa00] sm:$0xff]  ;;  %v5400_v59 = vcombine.low %v895_v36, %v899_v37  ;;  %v429_v3 = vmax.f32 %v417_v56, 0.0  ;;  %v604_v36 = vld [vmem:[#allocation8 + $0x528] sm:$0xff] }
 0x14e   :  { %v763_v52 = vld [vmem:[#allocation8 + $0xa20] sm:$0xff]  ;;  %v6005_v17 = vpack.c.bf16 %v427_v5, %v427_v5  ;;  %v5107_v42 = vcombine.high %v600_v35, %v604_v36  ;;  %v460_v58 = vld [vmem:[#allocation8 + $0xa8] sm:$0xff] }
 0x14f   :  { %v887_v53 = vld [vmem:[#allocation8 + $0xe00] sm:$0xff]  ;;  %v5265_v46 = vcombine.high %v759_v41, %v763_v52  ;;  %v5264_v4 = vcombine.low %v759_v41, %v763_v52  ;;  %v596_v41 = vld [vmem:[#allocation8 + $0x4e8] sm:$0xff] }
 0x150   :  { %3654 = vmatpush2.bf16.msra.mxu0 %v5312_v60  ;;  %3695 = vmatpush2.bf16.msra.mxu1 %v5440_v62  ;;  %v891_v55 = vld [vmem:[#allocation8 + $0xe20] sm:$0xff]  ;;  %v496_v62 = vld [vmem:[#allocation8 + $0x1c8] sm:$0xff] }
 0x151   :  { %3655 = vmatprep.subr.bf16.mxu0 %v5305_v63  ;;  %3696 = vmatprep.subr.bf16.mxu1 %v5433_v0  ;;  %v5393_v60 = vcombine.high %v887_v53, %v891_v55  ;;  %v500_v63 = vld [vmem:[#allocation8 + $0x1e8] sm:$0xff]  ;;  %v5392_v23 = vcombine.low %v887_v53, %v891_v55  ;;  %v5106_v53 = vcombine.low %v600_v35, %v604_v36 }
 0x152   :  { %v624_v0 = vld [vmem:[#allocation8 + $0x5c8] sm:$0xff]  ;;  %v5002_v10 = vcombine.low %v496_v62, %v500_v63 }
 0x153   :  { %v5131_v18 = vcombine.high %v624_v0, %v628_v1  ;;  %v580_v5 = vld [vmem:[#allocation8 + $0x468] sm:$0xff] }
 0x154   :  { %3656 = vmatpush2.bf16.msra.mxu0 %v5304_v6  ;;  %3697 = vmatpush2.bf16.msra.mxu1 %v5432_v7  ;;  %v5003_v6 = vcombine.high %v496_v62, %v500_v63  ;;  %v488_v7 = vld [vmem:[#allocation8 + $0x188] sm:$0xff] }
 0x155   :  { %3657 = vmatprep.subr.bf16.mxu0 %v5297_v8  ;;  %3698 = vmatprep.subr.bf16.mxu1 %v5425_v9  ;;  %v492_v8 = vld [vmem:[#allocation8 + $0x1a8] sm:$0xff]  ;;  %v6003_v9 = vpack.c.bf16 %v429_v3, %v429_v3 }
 0x156   :  { %v4994_v27 = vcombine.low %v488_v7, %v492_v8  ;;  %v452_v3 = vld [vmem:[#allocation8 + $0x68] sm:$0xff] }
 0x157   :  { %v556_v35 = vld [vmem:[#allocation8 + $0x3a8] sm:$0xff] }
 0x158   :  { %3658 = vmatpush2.bf16.msra.mxu0 %v5296_v19  ;;  %3699 = vmatpush2.bf16.msra.mxu1 %v5424_v20  ;;  %v5130_v19 = vcombine.low %v624_v0, %v628_v1  ;;  %v4995_v20 = vcombine.high %v488_v7, %v492_v8  ;;  %v448_v1 = vld [vmem:[#allocation8 + $0x48] sm:$0xff] }
 0x159   :  { %3659 = vmatprep.subr.bf16.mxu0 %v5289_v21  ;;  %3700 = vmatprep.subr.bf16.mxu1 %v5417_v22  ;;  %v480_v21 = vld [vmem:[#allocation8 + $0x148] sm:$0xff] }
 0x15a   :  { %v484_v22 = vld [vmem:[#allocation8 + $0x168] sm:$0xff] }
 0x15b   :  { %v4986_v37 = vcombine.low %v480_v21, %v484_v22  ;;  %v440_v8 = vld [vmem:[#allocation8 + $0x8] sm:$0xff] }
 0x15c   :  { %3660 = vmatpush2.bf16.msra.mxu0 %v5288_v28  ;;  %3701 = vmatpush2.bf16.msra.mxu1 %v5416_v30  ;;  %v5122_v28 = vcombine.low %v616_v13, %v620_v14  ;;  %v4987_v30 = vcombine.high %v480_v21, %v484_v22  ;;  %v568_v13 = vld [vmem:[#allocation8 + $0x408] sm:$0xff] }
 0x15d   :  { %3661 = vmatprep.subr.bf16.mxu0 %v5281_v32  ;;  %3702 = vmatprep.subr.bf16.mxu1 %v5409_v33  ;;  %v5115_v32 = vcombine.high %v608_v25, %v612_v26  ;;  %v472_v33 = vld [vmem:[#allocation8 + $0x108] sm:$0xff] }
 0x15e   :  { %v4978_v52 = vcombine.low %v472_v33, %v476_v34  ;;  %v572_v14 = vld [vmem:[#allocation8 + $0x428] sm:$0xff] }
 0x15f   :  { %v5075_v22 = vcombine.high %v568_v13, %v572_v14  ;;  %v564_v25 = vld [vmem:[#allocation8 + $0x3e8] sm:$0xff] }
 0x160   :  { %3662 = vmatpush2.bf16.msra.mxu0 %v5280_v39  ;;  %3703 = vmatpush2.bf16.msra.mxu1 %v5408_v43  ;;  %v4979_v39 = vcombine.high %v472_v33, %v476_v34  ;;  %v464_v43 = vld [vmem:[#allocation8 + $0xc8] sm:$0xff] }
 0x161   :  { %3663 = vmatprep.subr.bf16.mxu0 %v5273_v50  ;;  %3704 = vmatprep.subr.bf16.mxu1 %v5401_v40  ;;  %v468_v50 = vld [vmem:[#allocation8 + $0xe8] sm:$0xff] }
 0x162   :  { %v592_v40 = vld [vmem:[#allocation8 + $0x4c8] sm:$0xff]  ;;  %v4971_v55 = vcombine.high %v464_v43, %v468_v50 }
 0x163   :  { %v5099_v56 = vcombine.high %v592_v40, %v596_v41  ;;  %v5098_v62 = vcombine.low %v592_v40, %v596_v41  ;;  %v688_v26 = vld [vmem:[#allocation8 + $0x7c8] sm:$0xff] }
 0x164   :  { %3664 = vmatpush2.bf16.msra.mxu0 %v5272_v57  ;;  %3705 = vmatpush2.bf16.msra.mxu1 %v5400_v59  ;;  %v456_v57 = vld [vmem:[#allocation8 + $0x88] sm:$0xff] }
 0x165   :  { %3665 = vmatprep.subr.bf16.mxu0 %v5265_v46  ;;  %3706 = vmatprep.subr.bf16.mxu1 %v5393_v60  ;;  %v584_v59 = vld [vmem:[#allocation8 + $0x488] sm:$0xff]  ;;  %v4970_v60 = vcombine.low %v464_v43, %v468_v50  ;;  %v4963_v63 = vcombine.high %v456_v57, %v460_v58 }
 0x166   :  { %v588_v46 = vld [vmem:[#allocation8 + $0x4a8] sm:$0xff] }
 0x167   :  { %v5091_v0 = vcombine.high %v584_v59, %v588_v46  ;;  %v552_v34 = vld [vmem:[#allocation8 + $0x388] sm:$0xff] }
 0x168   :  { %3666 = vmatpush2.bf16.msra.mxu0 %v5264_v4  ;;  %3707 = vmatpush2.bf16.msra.mxu1 %v5392_v23  ;;  %v576_v4 = vld [vmem:[#allocation8 + $0x448] sm:$0xff]  ;;  %v4962_v23 = vcombine.low %v456_v57, %v460_v58 }
 0x169   :  { %3717 = vmatprep.subr.bf16.mxu0 %v5003_v6  ;;  %3758 = vmatprep.subr.bf16.mxu1 %v5131_v18  ;;  %v5090_v6 = vcombine.low %v584_v59, %v588_v46  ;;  %v4955_v18 = vcombine.high %v448_v1, %v452_v3  ;;  %v5083_v7 = vcombine.high %v576_v4, %v580_v5  ;;  %v680_v36 = vld [vmem:[#allocation8 + $0x788] sm:$0xff] }
 0x16a   :  { %v544_v50 = vld [vmem:[#allocation8 + $0x348] sm:$0xff] }
 0x16b   :  { %3668 = vmatmul.mubr.bf16.vlgmr.msra.gmra.mxu0 %v6005_v17  ;;  %3709 = vmatmul.mubr.bf16.vlgmr.msra.gmra.mxu1 %v6003_v9  ;;  %v548_v40 = vld [vmem:[#allocation8 + $0x368] sm:$0xff] }
 0x16c   :  { %3718 = vmatpush1.bf16.msra.mxu0 %v5002_v10  ;;  %3749 = vmatprep.mubr.bf16.mxu0 %v5967_v12  ;;  %v444_v10 = vld [vmem:[#allocation8 + $0x28] sm:$0xff] }
 0x16d   :  { %3759 = vmatpush1.bf16.msra.mxu1 %v5130_v19  ;;  %3790 = vmatprep.mubr.bf16.mxu1 %v5974_v16  ;;  %v4954_v19 = vcombine.low %v448_v1, %v452_v3  ;;  %v4947_v21 = vcombine.high %v440_v8, %v444_v10  ;;  %v672_v41 = vld [vmem:[#allocation8 + $0x748] sm:$0xff] }
 0x16e   :  { %3719 = vmatprep.subr.bf16.mxu0 %v4995_v20  ;;  %3760 = vmatprep.subr.bf16.mxu1 %v5123_v24  ;;  %v5082_v20 = vcombine.low %v576_v4, %v580_v5  ;;  %v560_v24 = vld [vmem:[#allocation8 + $0x3c8] sm:$0xff] }
 0x16f   :  { %v536_v58 = vld [vmem:[#allocation8 + $0x308] sm:$0xff] }
 0x170   :  { %3720 = vmatpush1.bf16.msra.mxu0 %v4994_v27  ;;  %v692_v27 = vld [vmem:[#allocation8 + $0x7e8] sm:$0xff] }
 0x171   :  { %3761 = vmatpush1.bf16.msra.mxu1 %v5122_v28  ;;  %3721 = vmatprep.subr.bf16.mxu0 %v4987_v30  ;;  %v4946_v28 = vcombine.low %v440_v8, %v444_v10  ;;  %v5074_v30 = vcombine.low %v568_v13, %v572_v14  ;;  %v5195_v33 = vcombine.high %v688_v26, %v692_v27  ;;  %v540_v59 = vld [vmem:[#allocation8 + $0x328] sm:$0xff] }
 0x172   :  { %3762 = vmatprep.subr.bf16.mxu1 %v5115_v32  ;;  %v5067_v32 = vcombine.high %v560_v24, %v564_v25  ;;  %v664_v46 = vld [vmem:[#allocation8 + $0x708] sm:$0xff] }
 0x173   :  { %v528_v3 = vld [vmem:[#allocation8 + $0x2c8] sm:$0xff] }
 0x174   :  { %3722 = vmatpush1.bf16.msra.mxu0 %v4986_v37  ;;  %v684_v37 = vld [vmem:[#allocation8 + $0x7a8] sm:$0xff] }
 0x175   :  { %3763 = vmatpush1.bf16.msra.mxu1 %v5114_v38  ;;  %3723 = vmatprep.subr.bf16.mxu0 %v4979_v39  ;;  %v5066_v38 = vcombine.low %v560_v24, %v564_v25  ;;  %v5194_v39 = vcombine.low %v688_v26, %v692_v27  ;;  %v5187_v43 = vcombine.high %v680_v36, %v684_v37  ;;  %v532_v4 = vld [vmem:[#allocation8 + $0x2e8] sm:$0xff] }
 0x176   :  { %3764 = vmatprep.subr.bf16.mxu1 %v5107_v42  ;;  %v5059_v42 = vcombine.high %v552_v34, %v556_v35  ;;  %v656_v5 = vld [vmem:[#allocation8 + $0x6c8] sm:$0xff] }
 0x177   :  { %v520_v10 = vld [vmem:[#allocation8 + $0x288] sm:$0xff] }
 0x178   :  { %3724 = vmatpush1.bf16.msra.mxu0 %v4978_v52  ;;  %v676_v52 = vld [vmem:[#allocation8 + $0x768] sm:$0xff] }
 0x179   :  { %3765 = vmatpush1.bf16.msra.mxu1 %v5106_v53  ;;  %3725 = vmatprep.subr.bf16.mxu0 %v4971_v55  ;;  %v5058_v53 = vcombine.low %v552_v34, %v556_v35  ;;  %v5186_v55 = vcombine.low %v680_v36, %v684_v37  ;;  %v5179_v57 = vcombine.high %v672_v41, %v676_v52  ;;  %v524_v13 = vld [vmem:[#allocation8 + $0x2a8] sm:$0xff] }
 0x17a   :  { %3766 = vmatprep.subr.bf16.mxu1 %v5099_v56  ;;  %v5051_v56 = vcombine.high %v544_v50, %v548_v40  ;;  %v648_v14 = vld [vmem:[#allocation8 + $0x688] sm:$0xff] }
 0x17b   :  { %v512_v25 = vld [vmem:[#allocation8 + $0x248] sm:$0xff] }
 0x17c   :  { %3726 = vmatpush1.bf16.msra.mxu0 %v4970_v60  ;;  %v668_v60 = vld [vmem:[#allocation8 + $0x728] sm:$0xff] }
 0x17d   :  { %3767 = vmatpush1.bf16.msra.mxu1 %v5098_v62  ;;  %3727 = vmatprep.subr.bf16.mxu0 %v4963_v63  ;;  %v5050_v62 = vcombine.low %v544_v50, %v548_v40  ;;  %v5178_v63 = vcombine.low %v672_v41, %v676_v52  ;;  %v5171_v1 = vcombine.high %v664_v46, %v668_v60  ;;  %v516_v26 = vld [vmem:[#allocation8 + $0x268] sm:$0xff] }
 0x17e   :  { %3768 = vmatprep.subr.bf16.mxu1 %v5091_v0  ;;  %v5043_v0 = vcombine.high %v536_v58, %v540_v59  ;;  %v640_v27 = vld [vmem:[#allocation8 + $0x648] sm:$0xff] }
 0x17f   :  { %v504_v35 = vld [vmem:[#allocation8 + $0x208] sm:$0xff] }
 0x180   :  { %3728 = vmatpush1.bf16.msra.mxu0 %v4962_v23  ;;  %v660_v23 = vld [vmem:[#allocation8 + $0x6e8] sm:$0xff] }
 0x181   :  { %3769 = vmatpush1.bf16.msra.mxu1 %v5090_v6  ;;  %3729 = vmatprep.subr.bf16.mxu0 %v4955_v18  ;;  %v5042_v6 = vcombine.low %v536_v58, %v540_v59  ;;  %v5170_v18 = vcombine.low %v664_v46, %v668_v60  ;;  %v5163_v8 = vcombine.high %v656_v5, %v660_v23  ;;  %v508_v36 = vld [vmem:[#allocation8 + $0x228] sm:$0xff] }
 0x182   :  { %3770 = vmatprep.subr.bf16.mxu1 %v5083_v7  ;;  %v5035_v7 = vcombine.high %v528_v3, %v532_v4  ;;  %v632_v37 = vld [vmem:[#allocation8 + $0x608] sm:$0xff] }
 0x183   :  { %v752_v40 = vld [vmem:[#allocation8 + $0x9c8] sm:$0xff] }
 0x184   :  { %3730 = vmatpush1.bf16.msra.mxu0 %v4954_v19  ;;  %v652_v19 = vld [vmem:[#allocation8 + $0x6a8] sm:$0xff] }
 0x185   :  { %3771 = vmatpush1.bf16.msra.mxu1 %v5082_v20  ;;  %3731 = vmatprep.subr.bf16.mxu0 %v4947_v21  ;;  %v5034_v20 = vcombine.low %v528_v3, %v532_v4  ;;  %v5162_v21 = vcombine.low %v656_v5, %v660_v23  ;;  %v5155_v24 = vcombine.high %v648_v14, %v652_v19  ;;  %v756_v41 = vld [vmem:[#allocation8 + $0x9e8] sm:$0xff] }
 0x186   :  { %3772 = vmatprep.subr.bf16.mxu1 %v5075_v22  ;;  %v5027_v22 = vcombine.high %v520_v10, %v524_v13  ;;  %v880_v52 = vld [vmem:[#allocation8 + $0xdc8] sm:$0xff]  ;;  %v5258_v60 = vcombine.low %v752_v40, %v756_v41 }
 0x187   :  { %v744_v59 = vld [vmem:[#allocation8 + $0x988] sm:$0xff] }
 0x188   :  { %3732 = vmatpush1.bf16.msra.mxu0 %v4946_v28  ;;  %v644_v28 = vld [vmem:[#allocation8 + $0x668] sm:$0xff] }
 0x189   :  { %3773 = vmatpush1.bf16.msra.mxu1 %v5074_v30  ;;  %3733 = vmatprep.subr.bf16.mxu0 %v5067_v32  ;;  %v5026_v30 = vcombine.low %v520_v10, %v524_v13  ;;  %v5154_v32 = vcombine.low %v648_v14, %v652_v19  ;;  %v5147_v34 = vcombine.high %v640_v27, %v644_v28  ;;  %v748_v46 = vld [vmem:[#allocation8 + $0x9a8] sm:$0xff] }
 0x18a   :  { %3774 = vmatprep.subr.bf16.mxu1 %v5195_v33  ;;  %v5019_v33 = vcombine.high %v512_v25, %v516_v26  ;;  %v736_v3 = vld [vmem:[#allocation8 + $0x948] sm:$0xff] }
 0x18b   :  { %v740_v4 = vld [vmem:[#allocation8 + $0x968] sm:$0xff] }
 0x18c   :  { %3734 = vmatpush2.bf16.msra.mxu0 %v5066_v38  ;;  %v636_v38 = vld [vmem:[#allocation8 + $0x628] sm:$0xff] }
 0x18d   :  { %3775 = vmatpush2.bf16.msra.mxu1 %v5194_v39  ;;  %3735 = vmatprep.subr.bf16.mxu0 %v5059_v42  ;;  %v5018_v39 = vcombine.low %v512_v25, %v516_v26  ;;  %v5146_v42 = vcombine.low %v640_v27, %v644_v28  ;;  %v5139_v50 = vcombine.high %v632_v37, %v636_v38  ;;  %v864_v23 = vld [vmem:[#allocation8 + $0xd48] sm:$0xff] }
 0x18e   :  { %3776 = vmatprep.subr.bf16.mxu1 %v5187_v43  ;;  %v5011_v43 = vcombine.high %v504_v35, %v508_v36  ;;  %v728_v13 = vld [vmem:[#allocation8 + $0x908] sm:$0xff] }
 0x18f   :  { %v732_v14 = vld [vmem:[#allocation8 + $0x928] sm:$0xff] }
 0x190   :  { %3736 = vmatpush2.bf16.msra.mxu0 %v5058_v53  ;;  %v884_v53 = vld [vmem:[#allocation8 + $0xde8] sm:$0xff] }
 0x191   :  { %3777 = vmatpush2.bf16.msra.mxu1 %v5186_v55  ;;  %3737 = vmatprep.subr.bf16.mxu0 %v5051_v56  ;;  %v5010_v55 = vcombine.low %v504_v35, %v508_v36  ;;  %v5138_v56 = vcombine.low %v632_v37, %v636_v38  ;;  %v5387_v58 = vcombine.high %v880_v52, %v884_v53  ;;  %v856_v19 = vld [vmem:[#allocation8 + $0xd08] sm:$0xff] }
 0x192   :  { %3778 = vmatprep.subr.bf16.mxu1 %v5179_v57  ;;  %v5259_v57 = vcombine.high %v752_v40, %v756_v41  ;;  %v720_v26 = vld [vmem:[#allocation8 + $0x8c8] sm:$0xff] }
 0x193   :  { %v724_v27 = vld [vmem:[#allocation8 + $0x8e8] sm:$0xff] }
 0x194   :  { %3738 = vmatpush2.bf16.msra.mxu0 %v5050_v62  ;;  %v872_v62 = vld [vmem:[#allocation8 + $0xd88] sm:$0xff] }
 0x195   :  { %3779 = vmatpush2.bf16.msra.mxu1 %v5178_v63  ;;  %3739 = vmatprep.subr.bf16.mxu0 %v5043_v0  ;;  %v876_v63 = vld [vmem:[#allocation8 + $0xda8] sm:$0xff]  ;;  %v5386_v0 = vcombine.low %v880_v52, %v884_v53 }
 0x196   :  { %3780 = vmatprep.subr.bf16.mxu1 %v5171_v1  ;;  %v5251_v1 = vcombine.high %v744_v59, %v748_v46  ;;  %v5379_v5 = vcombine.high %v872_v62, %v876_v63  ;;  %v848_v28 = vld [vmem:[#allocation8 + $0xcc8] sm:$0xff] }
 0x197   :  { %v712_v36 = vld [vmem:[#allocation8 + $0x888] sm:$0xff] }
 0x198   :  { %3740 = vmatpush2.bf16.msra.mxu0 %v5042_v6  ;;  %v868_v6 = vld [vmem:[#allocation8 + $0xd68] sm:$0xff] }
 0x199   :  { %3781 = vmatpush2.bf16.msra.mxu1 %v5170_v18  ;;  %3741 = vmatprep.subr.bf16.mxu0 %v5035_v7  ;;  %v5250_v18 = vcombine.low %v744_v59, %v748_v46  ;;  %v5378_v7 = vcombine.low %v872_v62, %v876_v63  ;;  %v5371_v10 = vcombine.high %v864_v23, %v868_v6  ;;  %v716_v37 = vld [vmem:[#allocation8 + $0x8a8] sm:$0xff] }
 0x19a   :  { %3782 = vmatprep.subr.bf16.mxu1 %v5163_v8  ;;  %v5243_v8 = vcombine.high %v736_v3, %v740_v4  ;;  %v840_v38 = vld [vmem:[#allocation8 + $0xc88] sm:$0xff] }
 0x19b   :  { %v704_v41 = vld [vmem:[#allocation8 + $0x848] sm:$0xff] }
 0x19c   :  { %3742 = vmatpush2.bf16.msra.mxu0 %v5034_v20  ;;  %v860_v20 = vld [vmem:[#allocation8 + $0xd28] sm:$0xff] }
 0x19d   :  { %3783 = vmatpush2.bf16.msra.mxu1 %v5162_v21  ;;  %3743 = vmatprep.subr.bf16.mxu0 %v5027_v22  ;;  %v5242_v21 = vcombine.low %v736_v3, %v740_v4  ;;  %v5370_v22 = vcombine.low %v864_v23, %v868_v6  ;;  %v5363_v25 = vcombine.high %v856_v19, %v860_v20  ;;  %v708_v52 = vld [vmem:[#allocation8 + $0x868] sm:$0xff] }
 0x19e   :  { %3784 = vmatprep.subr.bf16.mxu1 %v5155_v24  ;;  %v5235_v24 = vcombine.high %v728_v13, %v732_v14  ;;  %v832_v53 = vld [vmem:[#allocation8 + $0xc48] sm:$0xff] }
 0x19f   :  { %v696_v46 = vld [vmem:[#allocation8 + $0x808] sm:$0xff] }
 0x1a0   :  { %3744 = vmatpush2.bf16.msra.mxu0 %v5026_v30  ;;  %v852_v30 = vld [vmem:[#allocation8 + $0xce8] sm:$0xff] }
 0x1a1   :  { %3785 = vmatpush2.bf16.msra.mxu1 %v5154_v32  ;;  %3745 = vmatprep.subr.bf16.mxu0 %v5019_v33  ;;  %v5234_v32 = vcombine.low %v728_v13, %v732_v14  ;;  %v5362_v33 = vcombine.low %v856_v19, %v860_v20  ;;  %v5355_v35 = vcombine.high %v848_v28, %v852_v30  ;;  %v824_v62 = vld [vmem:[#allocation8 + $0xc08] sm:$0xff] }
 0x1a2   :  { %3786 = vmatprep.subr.bf16.mxu1 %v5147_v34  ;;  %v5227_v34 = vcombine.high %v720_v26, %v724_v27  ;;  %v828_v63 = vld [vmem:[#allocation8 + $0xc28] sm:$0xff] }
 0x1a3   :  { %v5331_v4 = vcombine.high %v824_v62, %v828_v63  ;;  %v820_v23 = vld [vmem:[#allocation8 + $0xbe8] sm:$0xff] }
 0x1a4   :  { %3746 = vmatpush2.bf16.msra.mxu0 %v5018_v39  ;;  %v844_v39 = vld [vmem:[#allocation8 + $0xca8] sm:$0xff] }
 0x1a5   :  { %3787 = vmatpush2.bf16.msra.mxu1 %v5146_v42  ;;  %3747 = vmatprep.subr.bf16.mxu0 %v5011_v43  ;;  %v5226_v42 = vcombine.low %v720_v26, %v724_v27  ;;  %v5354_v43 = vcombine.low %v848_v28, %v852_v30  ;;  %v5347_v40 = vcombine.high %v840_v38, %v844_v39  ;;  %v944_v6 = vld [vmem:[#allocation8 + $0xfc8] sm:$0xff] }
 0x1a6   :  { %3788 = vmatprep.subr.bf16.mxu1 %v5139_v50  ;;  %v5219_v50 = vcombine.high %v712_v36, %v716_v37  ;;  %v808_v14 = vld [vmem:[#allocation8 + $0xb88] sm:$0xff] }
 0x1a7   :  { %v812_v19 = vld [vmem:[#allocation8 + $0xba8] sm:$0xff] }
 0x1a8   :  { %3748 = vmatpush2.bf16.msra.mxu0 %v5010_v55  ;;  %v836_v55 = vld [vmem:[#allocation8 + $0xc68] sm:$0xff] }
 0x1a9   :  { %3789 = vmatpush2.bf16.msra.mxu1 %v5138_v56  ;;  %3799 = vmatprep.subr.bf16.mxu0 %v5259_v57  ;;  %v5218_v56 = vcombine.low %v712_v36, %v716_v37  ;;  %v5346_v57 = vcombine.low %v840_v38, %v844_v39  ;;  %v5339_v59 = vcombine.high %v832_v53, %v836_v55  ;;  %v936_v20 = vld [vmem:[#allocation8 + $0xf88] sm:$0xff] }
 0x1aa   :  { %3840 = vmatprep.subr.bf16.mxu1 %v5387_v58  ;;  %v5211_v58 = vcombine.high %v704_v41, %v708_v52  ;;  %v800_v27 = vld [vmem:[#allocation8 + $0xb48] sm:$0xff] }
 0x1ab   :  { %3750 = vmatmul.mubr.bf16.vlgmr.msra.gmra.mxu0 %v5972_v15  ;;  %v804_v28 = vld [vmem:[#allocation8 + $0xb68] sm:$0xff] }
 0x1ac   :  { %3791 = vmatmul.mubr.bf16.vlgmr.msra.gmra.mxu1 %v5965_v11  ;;  %3800 = vmatpush1.bf16.msra.mxu0 %v5258_v60  ;;  %v700_v60 = vld [vmem:[#allocation8 + $0x828] sm:$0xff] }
 0x1ad   :  { %3831 = vmatprep.mubr.bf16.mxu0 %v5987_v51  ;;  %3841 = vmatpush1.bf16.msra.mxu1 %v5386_v0  ;;  %v5210_v0 = vcombine.low %v704_v41, %v708_v52  ;;  %v5203_v3 = vcombine.high %v696_v46, %v700_v60  ;;  %v928_v30 = vld [vmem:[#allocation8 + $0xf48] sm:$0xff] }
 0x1ae   :  { %3872 = vmatprep.mubr.bf16.mxu1 %v5989_v54  ;;  %3801 = vmatprep.subr.bf16.mxu0 %v5251_v1  ;;  %v5338_v1 = vcombine.low %v832_v53, %v836_v55  ;;  %v792_v37 = vld [vmem:[#allocation8 + $0xb08] sm:$0xff] }
 0x1af   :  { %3842 = vmatprep.subr.bf16.mxu1 %v5379_v5  ;;  %v816_v5 = vld [vmem:[#allocation8 + $0xbc8] sm:$0xff] }
 0x1b0   :  { %3802 = vmatpush1.bf16.msra.mxu0 %v5250_v18  ;;  %v948_v18 = vld [vmem:[#allocation8 + $0xfe8] sm:$0xff] }
 0x1b1   :  { %3843 = vmatpush1.bf16.msra.mxu1 %v5378_v7  ;;  %3803 = vmatprep.subr.bf16.mxu0 %v5243_v8  ;;  %v5202_v7 = vcombine.low %v696_v46, %v700_v60  ;;  %v5330_v8 = vcombine.low %v824_v62, %v828_v63  ;;  %v5451_v13 = vcombine.high %v944_v6, %v948_v18  ;;  %v796_v38 = vld [vmem:[#allocation8 + $0xb28] sm:$0xff] }
 0x1b2   :  { %3844 = vmatprep.subr.bf16.mxu1 %v5371_v10  ;;  %v5323_v10 = vcombine.high %v816_v5, %v820_v23  ;;  %v920_v39 = vld [vmem:[#allocation8 + $0xf08] sm:$0xff] }
 0x1b3   :  { %v784_v52 = vld [vmem:[#allocation8 + $0xac8] sm:$0xff] }
 0x1b4   :  { %3804 = vmatpush1.bf16.msra.mxu0 %v5242_v21  ;;  %v940_v21 = vld [vmem:[#allocation8 + $0xfa8] sm:$0xff] }
 0x1b5   :  { %3845 = vmatpush1.bf16.msra.mxu1 %v5370_v22  ;;  %3805 = vmatprep.subr.bf16.mxu0 %v5235_v24  ;;  %v5322_v22 = vcombine.low %v816_v5, %v820_v23  ;;  %v5450_v24 = vcombine.low %v944_v6, %v948_v18  ;;  %v5443_v26 = vcombine.high %v936_v20, %v940_v21  ;;  %v788_v53 = vld [vmem:[#allocation8 + $0xae8] sm:$0xff] }
 0x1b6   :  { %3846 = vmatprep.subr.bf16.mxu1 %v5363_v25  ;;  %v5315_v25 = vcombine.high %v808_v14, %v812_v19  ;;  %v912_v55 = vld [vmem:[#allocation8 + $0xec8] sm:$0xff] }
 0x1b7   :  { %v776_v60 = vld [vmem:[#allocation8 + $0xa88] sm:$0xff] }
 0x1b8   :  { %3806 = vmatpush1.bf16.msra.mxu0 %v5234_v32  ;;  %v932_v32 = vld [vmem:[#allocation8 + $0xf68] sm:$0xff] }
 0x1b9   :  { %3847 = vmatpush1.bf16.msra.mxu1 %v5362_v33  ;;  %3807 = vmatprep.subr.bf16.mxu0 %v5227_v34  ;;  %v5314_v33 = vcombine.low %v808_v14, %v812_v19  ;;  %v5442_v34 = vcombine.low %v936_v20, %v940_v21  ;;  %v5435_v36 = vcombine.high %v928_v30, %v932_v32  ;;  %v780_v62 = vld [vmem:[#allocation8 + $0xaa8] sm:$0xff] }
 0x1ba   :  { %3848 = vmatprep.subr.bf16.mxu1 %v5355_v35  ;;  %v5307_v35 = vcombine.high %v800_v27, %v804_v28  ;;  %v904_v63 = vld [vmem:[#allocation8 + $0xe88] sm:$0xff] }
 0x1bb   :  { %v768_v23 = vld [vmem:[#allocation8 + $0xa48] sm:$0xff] }
 0x1bc   :  { %3808 = vmatpush1.bf16.msra.mxu0 %v5226_v42  ;;  %v924_v42 = vld [vmem:[#allocation8 + $0xf28] sm:$0xff] }
 0x1bd   :  { %3849 = vmatpush1.bf16.msra.mxu1 %v5354_v43  ;;  %3809 = vmatprep.subr.bf16.mxu0 %v5219_v50  ;;  %v5306_v43 = vcombine.low %v800_v27, %v804_v28  ;;  %v5434_v50 = vcombine.low %v928_v30, %v932_v32  ;;  %v5427_v41 = vcombine.high %v920_v39, %v924_v42  ;;  %v772_v6 = vld [vmem:[#allocation8 + $0xa68] sm:$0xff]  ;;  %v497_v28 = vld [vmem:[#allocation8 + $0x1d0] sm:$0xff] }
 0x1be   :  { %3850 = vmatprep.subr.bf16.mxu1 %v5347_v40  ;;  %v5299_v40 = vcombine.high %v792_v37, %v796_v38  ;;  %v896_v18 = vld [vmem:[#allocation8 + $0xe48] sm:$0xff]  ;;  %v501_v30 = vld [vmem:[#allocation8 + $0x1f0] sm:$0xff] }
 0x1bf   :  { %v760_v19 = vld [vmem:[#allocation8 + $0xa08] sm:$0xff]  ;;  %v625_v32 = vld [vmem:[#allocation8 + $0x5d0] sm:$0xff] }
 0x1c0   :  { %3810 = vmatpush1.bf16.msra.mxu0 %v5218_v56  ;;  %v916_v56 = vld [vmem:[#allocation8 + $0xee8] sm:$0xff] }
 0x1c1   :  { %3851 = vmatpush1.bf16.msra.mxu1 %v5346_v57  ;;  %3811 = vmatprep.subr.bf16.mxu0 %v5211_v58  ;;  %v5298_v57 = vcombine.low %v792_v37, %v796_v38  ;;  %v5426_v58 = vcombine.low %v920_v39, %v924_v42  ;;  %v5419_v46 = vcombine.high %v912_v55, %v916_v56  ;;  %v764_v20 = vld [vmem:[#allocation8 + $0xa28] sm:$0xff]  ;;  %v6015_v37 = vld [vmem:[#allocation10] sm:$0xff]  ;;  %v489_v39 = vld [vmem:[#allocation8 + $0x190] sm:$0xff] }
 0x1c2   :  { %3852 = vmatprep.subr.bf16.mxu1 %v5339_v59  ;;  %v5291_v59 = vcombine.high %v784_v52, %v788_v53  ;;  %v888_v21 = vld [vmem:[#allocation8 + $0xe08] sm:$0xff]  ;;  %v493_v42 = vld [vmem:[#allocation8 + $0x1b0] sm:$0xff] }
 0x1c4   :  { %3812 = vmatpush1.bf16.msra.mxu0 %v5210_v0  ;;  %v908_v0 = vld [vmem:[#allocation8 + $0xea8] sm:$0xff] }
 0x1c5   :  { %3853 = vmatpush1.bf16.msra.mxu1 %v5338_v1  ;;  %3813 = vmatprep.subr.bf16.mxu0 %v5203_v3  ;;  %v5290_v1 = vcombine.low %v784_v52, %v788_v53  ;;  %v5418_v3 = vcombine.low %v912_v55, %v916_v56  ;;  %v5411_v5 = vcombine.high %v904_v63, %v908_v0  ;;  %v481_v56 = vld [vmem:[#allocation8 + $0x150] sm:$0xff] }
 0x1c6   :  { %3854 = vmatprep.subr.bf16.mxu1 %v5331_v4  ;;  %v5283_v4 = vcombine.high %v776_v60, %v780_v62  ;;  %v960_v53 = vrot.slane %v6015_v37, %v141_v48  ;;  %v4997_v55 = vcombine.high %v489_v39, %v493_v42 }
 0x1c8   :  { %3814 = vmatpush1.bf16.msra.mxu0 %v5202_v7  ;;  %v900_v7 = vld [vmem:[#allocation8 + $0xe68] sm:$0xff] }
 0x1c9   :  { %3855 = vmatpush1.bf16.msra.mxu1 %v5330_v8  ;;  %3815 = vmatprep.subr.bf16.mxu0 %v5323_v10  ;;  %v5282_v8 = vcombine.low %v776_v60, %v780_v62  ;;  %v5410_v10 = vcombine.low %v904_v63, %v908_v0  ;;  %v5403_v14 = vcombine.high %v896_v18, %v900_v7  ;;  %v613_v60 = vld [vmem:[#allocation8 + $0x570] sm:$0xff] }
 0x1ca   :  { %3856 = vmatprep.subr.bf16.mxu1 %v5451_v13  ;;  %v5275_v13 = vcombine.high %v768_v23, %v772_v6  ;;  %v4996_v63 = vcombine.low %v489_v39, %v493_v42  ;;  %v585_v39 = vld [vmem:[#allocation8 + $0x490] sm:$0xff] }
 0x1cb   :  { %v589_v42 = vld [vmem:[#allocation8 + $0x4b0] sm:$0xff] }
 0x1cc   :  { %3816 = vmatpush2.bf16.msra.mxu0 %v5322_v22  ;;  %v892_v22 = vld [vmem:[#allocation8 + $0xe28] sm:$0xff] }
 0x1cd   :  { %3857 = vmatpush2.bf16.msra.mxu1 %v5450_v24  ;;  %3817 = vmatprep.subr.bf16.mxu0 %v5315_v25  ;;  %v5274_v24 = vcombine.low %v768_v23, %v772_v6  ;;  %v5402_v25 = vcombine.low %v896_v18, %v900_v7  ;;  %v5395_v27 = vcombine.high %v888_v21, %v892_v22  ;;  %v473_v6 = vld [vmem:[#allocation8 + $0x110] sm:$0xff] }
 0x1ce   :  { %3858 = vmatprep.subr.bf16.mxu1 %v5443_v26  ;;  %v5267_v26 = vcombine.high %v760_v19, %v764_v20  ;;  %v477_v18 = vld [vmem:[#allocation8 + $0x130] sm:$0xff] }
 0x1d0   :  { %3818 = vmatpush2.bf16.msra.mxu0 %v5314_v33  ;;  %v629_v33 = vld [vmem:[#allocation8 + $0x5f0] sm:$0xff] }
 0x1d1   :  { %3859 = vmatpush2.bf16.msra.mxu1 %v5442_v34  ;;  %3819 = vmatprep.subr.bf16.mxu0 %v5307_v35  ;;  %v5266_v34 = vcombine.low %v760_v19, %v764_v20  ;;  %v5394_v35 = vcombine.low %v888_v21, %v892_v22  ;;  %v5133_v38 = vcombine.high %v625_v32, %v629_v33 }
 0x1d2   :  { %3860 = vmatprep.subr.bf16.mxu1 %v5435_v36  ;;  %v5005_v36 = vcombine.high %v497_v28, %v501_v30  ;;  %v5132_v52 = vcombine.low %v625_v32, %v629_v33  ;;  %v4981_v22 = vcombine.high %v473_v6, %v477_v18  ;;  %v4980_v32 = vcombine.low %v473_v6, %v477_v18  ;;  %v689_v6 = vld [vmem:[#allocation8 + $0x7d0] sm:$0xff] }
 0x1d3   :  { %v693_v18 = vld [vmem:[#allocation8 + $0x7f0] sm:$0xff] }
 0x1d4   :  { %3820 = vmatpush2.bf16.msra.mxu0 %v5306_v43  ;;  %v5004_v43 = vcombine.low %v497_v28, %v501_v30  ;;  %v593_v28 = vld [vmem:[#allocation8 + $0x4d0] sm:$0xff] }
 0x1d5   :  { %3861 = vmatpush2.bf16.msra.mxu1 %v5434_v50  ;;  %3821 = vmatprep.subr.bf16.mxu0 %v5299_v40  ;;  %v956_v50 = vrot.slane %v6015_v37, %v137_v45  ;;  %v617_v40 = vld [vmem:[#allocation8 + $0x590] sm:$0xff] }
 0x1d6   :  { %3862 = vmatprep.subr.bf16.mxu1 %v5427_v41  ;;  %v621_v41 = vld [vmem:[#allocation8 + $0x5b0] sm:$0xff] }
 0x1d7   :  { %v5124_v48 = vcombine.low %v617_v40, %v621_v41  ;;  %v597_v30 = vld [vmem:[#allocation8 + $0x4f0] sm:$0xff] }
 0x1d8   :  { %3822 = vmatpush2.bf16.msra.mxu0 %v5298_v57  ;;  %v485_v57 = vld [vmem:[#allocation8 + $0x170] sm:$0xff] }
 0x1d9   :  { %3863 = vmatpush2.bf16.msra.mxu1 %v5426_v58  ;;  %3823 = vmatprep.subr.bf16.mxu0 %v5291_v59  ;;  %v5125_v59 = vcombine.high %v617_v40, %v621_v41  ;;  %v4988_v19 = vcombine.low %v481_v56, %v485_v57  ;;  %v5093_v41 = vcombine.high %v585_v39, %v589_v42 }
 0x1da   :  { %3864 = vmatprep.subr.bf16.mxu1 %v5419_v46  ;;  %v609_v46 = vld [vmem:[#allocation8 + $0x550] sm:$0xff] }
 0x1db   :  { %v5117_v23 = vcombine.high %v609_v46, %v613_v60  ;;  %v5116_v21 = vcombine.low %v609_v46, %v613_v60  ;;  %v441_v60 = vld [vmem:[#allocation8 + $0x10] sm:$0xff] }
 0x1dc   :  { %3824 = vmatpush2.bf16.msra.mxu0 %v5290_v1  ;;  %v4989_v1 = vcombine.high %v481_v56, %v485_v57  ;;  %v581_v56 = vld [vmem:[#allocation8 + $0x470] sm:$0xff] }
 0x1dd   :  { %3865 = vmatpush2.bf16.msra.mxu1 %v5418_v3  ;;  %3825 = vmatprep.subr.bf16.mxu0 %v5283_v4 }
 0x1de   :  { %3866 = vmatprep.subr.bf16.mxu1 %v5411_v5 }
 0x1e0   :  { %3826 = vmatpush2.bf16.msra.mxu0 %v5282_v8  ;;  %v601_v8 = vld [vmem:[#allocation8 + $0x510] sm:$0xff] }
 0x1e1   :  { %3867 = vmatpush2.bf16.msra.mxu1 %v5410_v10  ;;  %3827 = vmatprep.subr.bf16.mxu0 %v5275_v13  ;;  %v605_v10 = vld [vmem:[#allocation8 + $0x530] sm:$0xff] }
 0x1e2   :  { %3868 = vmatprep.subr.bf16.mxu1 %v5403_v14  ;;  %v5108_v33 = vcombine.low %v601_v8, %v605_v10 }
 0x1e4   :  { %3828 = vmatpush2.bf16.msra.mxu0 %v5274_v24 }
 0x1e5   :  { %3869 = vmatpush2.bf16.msra.mxu1 %v5402_v25  ;;  %3829 = vmatprep.subr.bf16.mxu0 %v5267_v26  ;;  %v5109_v25 = vcombine.high %v601_v8, %v605_v10  ;;  %v465_v26 = vld [vmem:[#allocation8 + $0xd0] sm:$0xff] }
 0x1e6   :  { %3870 = vmatprep.subr.bf16.mxu1 %v5395_v27  ;;  %v469_v27 = vld [vmem:[#allocation8 + $0xf0] sm:$0xff] }
 0x1e8   :  { %3830 = vmatpush2.bf16.msra.mxu0 %v5266_v34  ;;  %v4973_v34 = vcombine.high %v465_v26, %v469_v27 }
 0x1e9   :  { %3871 = vmatpush2.bf16.msra.mxu1 %v5394_v35  ;;  %3881 = vmatprep.subr.bf16.mxu0 %v5005_v36  ;;  %v5101_v35 = vcombine.high %v593_v28, %v597_v30  ;;  %v457_v36 = vld [vmem:[#allocation8 + $0x90] sm:$0xff] }
 0x1ea   :  { %3922 = vmatprep.subr.bf16.mxu1 %v5133_v38  ;;  %v461_v38 = vld [vmem:[#allocation8 + $0xb0] sm:$0xff] }
 0x1eb   :  { %3832 = vmatmul.mubr.bf16.vlgmr.msra.gmra.mxu0 %v6005_v17  ;;  %v3587_v58 = vpop.f32.mrf.mxu0  ;;  %v3628_v62 = vpop.f32.mrf.mxu1  ;;  %v4965_v40 = vcombine.high %v457_v36, %v461_v38  ;;  %v4964_v57 = vcombine.low %v457_v36, %v461_v38 }
 0x1ec   :  { %3873 = vmatmul.mubr.bf16.vlgmr.msra.gmra.mxu1 %v6003_v9  ;;  %v3588_v45 = vadd.f32 %v3587_v58, %v956_v50  ;;  %3882 = vmatpush1.bf16.msra.mxu0 %v5004_v43  ;;  %v4972_v43 = vcombine.low %v465_v26, %v469_v27  ;;  %v5100_v50 = vcombine.low %v593_v28, %v597_v30  ;;  %v545_v28 = vld [vmem:[#allocation8 + $0x350] sm:$0xff] }
 0x1ed   :  { %3913 = vmatprep.mubr.bf16.mxu0 %v5967_v12  ;;  %3923 = vmatpush1.bf16.msra.mxu1 %v5132_v52  ;;  %v3589_v0 = vpop.f32.mrf.mxu0  ;;  %v3630_v5 = vpop.f32.mrf.mxu1  ;;  %v449_v52 = vld [vmem:[#allocation8 + $0x50] sm:$0xff]  ;;  %v5092_v58 = vcombine.low %v585_v39, %v589_v42 }
 0x1ee   :  { %v6026_v3 = vadd.f32 %v3628_v62, %v3588_v45  ;;  %3954 = vmatprep.mubr.bf16.mxu1 %v5974_v16  ;;  %v3590_v4 = vadd.f32 %v3589_v0, %v960_v53  ;;  %3883 = vmatprep.subr.bf16.mxu0 %v4997_v55  ;;  %v453_v53 = vld [vmem:[#allocation8 + $0x70] sm:$0xff] }
 0x1ef   :  { %3924 = vmatprep.subr.bf16.mxu1 %v5125_v59  ;;  %v3591_v7 = vpop.f32.mrf.mxu0  ;;  %v3632_v14 = vpop.f32.mrf.mxu1  ;;  %v577_v55 = vld [vmem:[#allocation8 + $0x450] sm:$0xff]  ;;  %v4957_v59 = vcombine.high %v449_v52, %v453_v53  ;;  %v4956_v0 = vcombine.low %v449_v52, %v453_v53 }
 0x1f0   :  { %v6029_v13 = vadd.f32 %v3630_v5, %v3590_v4  ;;  %3884 = vmatpush1.bf16.msra.mxu0 %v4996_v63  ;;  %v5085_v46 = vcombine.high %v577_v55, %v581_v56  ;;  %v445_v45 = vld [vmem:[#allocation8 + $0x30] sm:$0xff]  ;;  %v5197_v14 = vcombine.high %v689_v6, %v693_v18 }
 0x1f1   :  { %3925 = vmatpush1.bf16.msra.mxu1 %v5124_v48  ;;  %v3592_v20 = vpop.f32.mrf.mxu0  ;;  %3885 = vmatprep.subr.bf16.mxu0 %v4989_v1  ;;  %v3633_v24 = vpop.f32.mrf.mxu1  ;;  %v569_v62 = vld [vmem:[#allocation8 + $0x410] sm:$0xff]  ;;  %v5084_v48 = vcombine.low %v577_v55, %v581_v56  ;;  %v4949_v1 = vcombine.high %v441_v60, %v445_v45  ;;  %v4948_v7 = vcombine.low %v441_v60, %v445_v45 }
 0x1f2   :  { %3926 = vmatprep.subr.bf16.mxu1 %v5117_v23  ;;  %v573_v63 = vld [vmem:[#allocation8 + $0x430] sm:$0xff] }
 0x1f3   :  { %v5077_v4 = vcombine.high %v569_v62, %v573_v63  ;;  %v561_v5 = vld [vmem:[#allocation8 + $0x3d0] sm:$0xff]  ;;  %v5076_v8 = vcombine.low %v569_v62, %v573_v63 }
 0x1f4   :  { %3886 = vmatpush1.bf16.msra.mxu0 %v4988_v19  ;;  %v565_v23 = vld [vmem:[#allocation8 + $0x3f0] sm:$0xff] }
 0x1f5   :  { %3927 = vmatpush1.bf16.msra.mxu1 %v5116_v21  ;;  %3887 = vmatprep.subr.bf16.mxu0 %v4981_v22  ;;  %v5069_v10 = vcombine.high %v561_v5, %v565_v23  ;;  %v553_v19 = vld [vmem:[#allocation8 + $0x390] sm:$0xff]  ;;  %v5068_v24 = vcombine.low %v561_v5, %v565_v23 }
 0x1f6   :  { %3928 = vmatprep.subr.bf16.mxu1 %v5109_v25  ;;  %v557_v20 = vld [vmem:[#allocation8 + $0x3b0] sm:$0xff]  ;;  %v5196_v25 = vcombine.low %v689_v6, %v693_v18 }
 0x1f7   :  { %v681_v21 = vld [vmem:[#allocation8 + $0x790] sm:$0xff]  ;;  %v5061_v26 = vcombine.high %v553_v19, %v557_v20 }
 0x1f8   :  { %3888 = vmatpush1.bf16.msra.mxu0 %v4980_v32  ;;  %v685_v22 = vld [vmem:[#allocation8 + $0x7b0] sm:$0xff] }
 0x1f9   :  { %3929 = vmatpush1.bf16.msra.mxu1 %v5108_v33  ;;  %3889 = vmatprep.subr.bf16.mxu0 %v4973_v34  ;;  %v5189_v27 = vcombine.high %v681_v21, %v685_v22  ;;  %v549_v30 = vld [vmem:[#allocation8 + $0x370] sm:$0xff]  ;;  %v5060_v34 = vcombine.low %v553_v19, %v557_v20 }
 0x1fa   :  { %3930 = vmatprep.subr.bf16.mxu1 %v5101_v35  ;;  %v673_v32 = vld [vmem:[#allocation8 + $0x750] sm:$0xff]  ;;  %v5188_v35 = vcombine.low %v681_v21, %v685_v22  ;;  %v5053_v36 = vcombine.high %v545_v28, %v549_v30 }
 0x1fb   :  { %v677_v33 = vld [vmem:[#allocation8 + $0x770] sm:$0xff] }
 0x1fc   :  { %3890 = vmatpush1.bf16.msra.mxu0 %v4972_v43  ;;  %v5181_v38 = vcombine.high %v673_v32, %v677_v33  ;;  %v537_v39 = vld [vmem:[#allocation8 + $0x310] sm:$0xff] }
 0x1fd   :  { %3931 = vmatpush1.bf16.msra.mxu1 %v5100_v50  ;;  %3891 = vmatprep.subr.bf16.mxu0 %v4965_v40  ;;  %v541_v42 = vld [vmem:[#allocation8 + $0x330] sm:$0xff]  ;;  %v5052_v40 = vcombine.low %v545_v28, %v549_v30 }
 0x1fe   :  { %3932 = vmatprep.subr.bf16.mxu1 %v5093_v41  ;;  %v665_v43 = vld [vmem:[#allocation8 + $0x710] sm:$0xff]  ;;  %v5180_v41 = vcombine.low %v673_v32, %v677_v33  ;;  %v5045_v52 = vcombine.high %v537_v39, %v541_v42 }
 0x1ff   :  { %v669_v50 = vld [vmem:[#allocation8 + $0x730] sm:$0xff] }
 0x200   :  { %3892 = vmatpush1.bf16.msra.mxu0 %v4964_v57  ;;  %v5173_v53 = vcombine.high %v665_v43, %v669_v50  ;;  %v529_v55 = vld [vmem:[#allocation8 + $0x2d0] sm:$0xff] }
 0x201   :  { %3933 = vmatpush1.bf16.msra.mxu1 %v5092_v58  ;;  %3893 = vmatprep.subr.bf16.mxu0 %v4957_v59  ;;  %v533_v56 = vld [vmem:[#allocation8 + $0x2f0] sm:$0xff]  ;;  %v5044_v59 = vcombine.low %v537_v39, %v541_v42 }
 0x202   :  { %3934 = vmatprep.subr.bf16.mxu1 %v5085_v46  ;;  %v657_v57 = vld [vmem:[#allocation8 + $0x6d0] sm:$0xff]  ;;  %v5172_v46 = vcombine.low %v665_v43, %v669_v50  ;;  %v5037_v60 = vcombine.high %v529_v55, %v533_v56 }
 0x203   :  { %v661_v58 = vld [vmem:[#allocation8 + $0x6f0] sm:$0xff] }
 0x204   :  { %3894 = vmatpush1.bf16.msra.mxu0 %v4956_v0  ;;  %v5165_v45 = vcombine.high %v657_v57, %v661_v58  ;;  %v521_v62 = vld [vmem:[#allocation8 + $0x290] sm:$0xff] }
 0x205   :  { %3935 = vmatpush1.bf16.msra.mxu1 %v5084_v48  ;;  %3895 = vmatprep.subr.bf16.mxu0 %v4949_v1  ;;  %v525_v63 = vld [vmem:[#allocation8 + $0x2b0] sm:$0xff]  ;;  %v5036_v1 = vcombine.low %v529_v55, %v533_v56 }
 0x206   :  { %3936 = vmatprep.subr.bf16.mxu1 %v5077_v4  ;;  %v649_v0 = vld [vmem:[#allocation8 + $0x690] sm:$0xff]  ;;  %v5164_v4 = vcombine.low %v657_v57, %v661_v58  ;;  %v5029_v5 = vcombine.high %v521_v62, %v525_v63 }
 0x207   :  { %v653_v48 = vld [vmem:[#allocation8 + $0x6b0] sm:$0xff] }
 0x208   :  { %3896 = vmatpush1.bf16.msra.mxu0 %v4948_v7  ;;  %v5157_v23 = vcombine.high %v649_v0, %v653_v48  ;;  %v513_v6 = vld [vmem:[#allocation8 + $0x250] sm:$0xff] }
 0x209   :  { %3937 = vmatpush1.bf16.msra.mxu1 %v5076_v8  ;;  %3897 = vmatprep.subr.bf16.mxu0 %v5069_v10  ;;  %v517_v18 = vld [vmem:[#allocation8 + $0x270] sm:$0xff]  ;;  %v5028_v10 = vcombine.low %v521_v62, %v525_v63 }
 0x20a   :  { %3938 = vmatprep.subr.bf16.mxu1 %v5197_v14  ;;  %v641_v7 = vld [vmem:[#allocation8 + $0x650] sm:$0xff]  ;;  %v5156_v14 = vcombine.low %v649_v0, %v653_v48  ;;  %v5021_v19 = vcombine.high %v513_v6, %v517_v18 }
 0x20b   :  { %v645_v8 = vld [vmem:[#allocation8 + $0x670] sm:$0xff] }
 0x20c   :  { %3898 = vmatpush2.bf16.msra.mxu0 %v5068_v24  ;;  %v5149_v20 = vcombine.high %v641_v7, %v645_v8  ;;  %v505_v21 = vld [vmem:[#allocation8 + $0x210] sm:$0xff] }
 0x20d   :  { %3939 = vmatpush2.bf16.msra.mxu1 %v5196_v25  ;;  %3899 = vmatprep.subr.bf16.mxu0 %v5061_v26  ;;  %v509_v22 = vld [vmem:[#allocation8 + $0x230] sm:$0xff]  ;;  %v5020_v26 = vcombine.low %v513_v6, %v517_v18 }
 0x20e   :  { %3940 = vmatprep.subr.bf16.mxu1 %v5189_v27  ;;  %v633_v24 = vld [vmem:[#allocation8 + $0x610] sm:$0xff]  ;;  %v5148_v27 = vcombine.low %v641_v7, %v645_v8  ;;  %v5013_v28 = vcombine.high %v505_v21, %v509_v22 }
 0x20f   :  { %v637_v25 = vld [vmem:[#allocation8 + $0x630] sm:$0xff] }
 0x210   :  { %3900 = vmatpush2.bf16.msra.mxu0 %v5060_v34  ;;  %v5141_v30 = vcombine.high %v633_v24, %v637_v25  ;;  %v753_v32 = vld [vmem:[#allocation8 + $0x9d0] sm:$0xff] }
 0x211   :  { %3941 = vmatpush2.bf16.msra.mxu1 %v5188_v35  ;;  %3901 = vmatprep.subr.bf16.mxu0 %v5053_v36  ;;  %v757_v33 = vld [vmem:[#allocation8 + $0x9f0] sm:$0xff]  ;;  %v5012_v36 = vcombine.low %v505_v21, %v509_v22 }
 0x212   :  { %3942 = vmatprep.subr.bf16.mxu1 %v5181_v38  ;;  %v881_v34 = vld [vmem:[#allocation8 + $0xdd0] sm:$0xff]  ;;  %v5140_v38 = vcombine.low %v633_v24, %v637_v25  ;;  %v5261_v39 = vcombine.high %v753_v32, %v757_v33 }
 0x213   :  { %v885_v35 = vld [vmem:[#allocation8 + $0xdf0] sm:$0xff] }
 0x214   :  { %3902 = vmatpush2.bf16.msra.mxu0 %v5052_v40  ;;  %v5389_v42 = vcombine.high %v881_v34, %v885_v35  ;;  %v745_v43 = vld [vmem:[#allocation8 + $0x990] sm:$0xff]  ;;  %v5260_v40 = vcombine.low %v753_v32, %v757_v33 }
 0x215   :  { %3943 = vmatpush2.bf16.msra.mxu1 %v5180_v41  ;;  %3903 = vmatprep.subr.bf16.mxu0 %v5045_v52  ;;  %v749_v50 = vld [vmem:[#allocation8 + $0x9b0] sm:$0xff] }
 0x216   :  { %3944 = vmatprep.subr.bf16.mxu1 %v5173_v53  ;;  %v873_v41 = vld [vmem:[#allocation8 + $0xd90] sm:$0xff]  ;;  %v5388_v53 = vcombine.low %v881_v34, %v885_v35  ;;  %v5253_v55 = vcombine.high %v745_v43, %v749_v50  ;;  %v5252_v63 = vcombine.low %v745_v43, %v749_v50 }
 0x217   :  { %v877_v52 = vld [vmem:[#allocation8 + $0xdb0] sm:$0xff] }
 0x218   :  { %3904 = vmatpush2.bf16.msra.mxu0 %v5044_v59  ;;  %v737_v56 = vld [vmem:[#allocation8 + $0x950] sm:$0xff]  ;;  %v5381_v59 = vcombine.high %v873_v41, %v877_v52  ;;  %v5380_v48 = vcombine.low %v873_v41, %v877_v52 }
 0x219   :  { %3945 = vmatpush2.bf16.msra.mxu1 %v5172_v46  ;;  %3905 = vmatprep.subr.bf16.mxu0 %v5037_v60  ;;  %v741_v57 = vld [vmem:[#allocation8 + $0x970] sm:$0xff] }
 0x21a   :  { %3946 = vmatprep.subr.bf16.mxu1 %v5165_v45  ;;  %v865_v46 = vld [vmem:[#allocation8 + $0xd50] sm:$0xff] }
 0x21b   :  { %v869_v60 = vld [vmem:[#allocation8 + $0xd70] sm:$0xff] }
 0x21c   :  { %3906 = vmatpush2.bf16.msra.mxu0 %v5036_v1  ;;  %v5245_v1 = vcombine.high %v737_v56, %v741_v57  ;;  %v729_v6 = vld [vmem:[#allocation8 + $0x910] sm:$0xff]  ;;  %v5372_v22 = vcombine.low %v865_v46, %v869_v60 }
 0x21d   :  { %3947 = vmatpush2.bf16.msra.mxu1 %v5164_v4  ;;  %3907 = vmatprep.subr.bf16.mxu0 %v5029_v5  ;;  %v733_v18 = vld [vmem:[#allocation8 + $0x930] sm:$0xff] }
 0x21e   :  { %3948 = vmatprep.subr.bf16.mxu1 %v5157_v23  ;;  %v857_v8 = vld [vmem:[#allocation8 + $0xd10] sm:$0xff]  ;;  %v5237_v24 = vcombine.high %v729_v6, %v733_v18  ;;  %v5236_v32 = vcombine.low %v729_v6, %v733_v18 }
 0x21f   :  { %v705_v52 = vld [vmem:[#allocation8 + $0x850] sm:$0xff] }
 0x220   :  { %3908 = vmatpush2.bf16.msra.mxu0 %v5028_v10  ;;  %v861_v10 = vld [vmem:[#allocation8 + $0xd30] sm:$0xff] }
 0x221   :  { %3949 = vmatpush2.bf16.msra.mxu1 %v5156_v14  ;;  %3909 = vmatprep.subr.bf16.mxu0 %v5021_v19  ;;  %v5365_v25 = vcombine.high %v857_v8, %v861_v10  ;;  %v5364_v33 = vcombine.low %v857_v8, %v861_v10  ;;  %v945_v6 = vld [vmem:[#allocation8 + $0xfd0] sm:$0xff] }
 0x222   :  { %3950 = vmatprep.subr.bf16.mxu1 %v5149_v20  ;;  %v5244_v20 = vcombine.low %v737_v56, %v741_v57  ;;  %v837_v56 = vld [vmem:[#allocation8 + $0xc70] sm:$0xff] }
 0x223   :  { %v949_v18 = vld [vmem:[#allocation8 + $0xff0] sm:$0xff] }
 0x224   :  { %3910 = vmatpush2.bf16.msra.mxu0 %v5020_v26  ;;  %v721_v26 = vld [vmem:[#allocation8 + $0x8d0] sm:$0xff] }
 0x225   :  { %3951 = vmatpush2.bf16.msra.mxu1 %v5148_v27  ;;  %3911 = vmatprep.subr.bf16.mxu0 %v5013_v28  ;;  %v725_v27 = vld [vmem:[#allocation8 + $0x8f0] sm:$0xff] }
 0x226   :  { %3952 = vmatprep.subr.bf16.mxu1 %v5141_v30  ;;  %v849_v28 = vld [vmem:[#allocation8 + $0xcd0] sm:$0xff]  ;;  %v5229_v34 = vcombine.high %v721_v26, %v725_v27  ;;  %v5228_v43 = vcombine.low %v721_v26, %v725_v27 }
 0x227   :  { %v853_v30 = vld [vmem:[#allocation8 + $0xcf0] sm:$0xff] }
 0x228   :  { %3912 = vmatpush2.bf16.msra.mxu0 %v5012_v36  ;;  %v5357_v35 = vcombine.high %v849_v28, %v853_v30  ;;  %v713_v36 = vld [vmem:[#allocation8 + $0x890] sm:$0xff]  ;;  %v5356_v50 = vcombine.low %v849_v28, %v853_v30 }
 0x229   :  { %3953 = vmatpush2.bf16.msra.mxu1 %v5140_v38  ;;  %3963 = vmatprep.subr.bf16.mxu0 %v5261_v39  ;;  %v717_v38 = vld [vmem:[#allocation8 + $0x8b0] sm:$0xff] }
 0x22a   :  { %4004 = vmatprep.subr.bf16.mxu1 %v5389_v42  ;;  %v841_v39 = vld [vmem:[#allocation8 + $0xc90] sm:$0xff]  ;;  %v5220_v57 = vcombine.low %v713_v36, %v717_v38 }
 0x22b   :  { %v3669_v58 = vpop.f32.mrf.mxu0  ;;  %3914 = vmatmul.mubr.bf16.vlgmr.msra.gmra.mxu0 %v5972_v15  ;;  %v3710_v62 = vpop.f32.mrf.mxu1  ;;  %v845_v42 = vld [vmem:[#allocation8 + $0xcb0] sm:$0xff] }
 0x22c   :  { %v3670_v45 = vadd.f32 %v3669_v58, %v6026_v3  ;;  %3955 = vmatmul.mubr.bf16.vlgmr.msra.gmra.mxu1 %v5965_v11  ;;  %3964 = vmatpush1.bf16.msra.mxu0 %v5260_v40  ;;  %v5373_v3 = vcombine.high %v865_v46, %v869_v60  ;;  %v5221_v40 = vcombine.high %v713_v36, %v717_v38  ;;  %v697_v60 = vld [vmem:[#allocation8 + $0x810] sm:$0xff] }
 0x22d   :  { %3995 = vmatprep.mubr.bf16.mxu0 %v5987_v51  ;;  %4005 = vmatpush1.bf16.msra.mxu1 %v5388_v53  ;;  %v3671_v0 = vpop.f32.mrf.mxu0  ;;  %v3712_v23 = vpop.f32.mrf.mxu1  ;;  %v5349_v41 = vcombine.high %v841_v39, %v845_v42  ;;  %v709_v53 = vld [vmem:[#allocation8 + $0x870] sm:$0xff]  ;;  %v5348_v58 = vcombine.low %v841_v39, %v845_v42 }
 0x22e   :  { %v6035_v4 = vadd.f32 %v3710_v62, %v3670_v45  ;;  %4036 = vmatprep.mubr.bf16.mxu1 %v5989_v54  ;;  %v3672_v5 = vadd.f32 %v3671_v0, %v6029_v13  ;;  %3965 = vmatprep.subr.bf16.mxu0 %v5253_v55  ;;  %v833_v55 = vld [vmem:[#allocation8 + $0xc50] sm:$0xff]  ;;  %v5212_v0 = vcombine.low %v705_v52, %v709_v53 }
 0x22f   :  { %v3673_v7 = vpop.f32.mrf.mxu0  ;;  %4006 = vmatprep.subr.bf16.mxu1 %v5381_v59  ;;  %v3714_v19 = vpop.f32.mrf.mxu1  ;;  %v5213_v59 = vcombine.high %v705_v52, %v709_v53  ;;  %v5341_v46 = vcombine.high %v833_v55, %v837_v56  ;;  %v701_v45 = vld [vmem:[#allocation8 + $0x830] sm:$0xff] }
 0x230   :  { %v6039_v14 = vadd.f32 %v3712_v23, %v3672_v5  ;;  %3966 = vmatpush1.bf16.msra.mxu0 %v5252_v63  ;;  %v825_v62 = vld [vmem:[#allocation8 + $0xc10] sm:$0xff]  ;;  %v5204_v7 = vcombine.low %v697_v60, %v701_v45  ;;  %v5453_v19 = vcombine.high %v945_v6, %v949_v18 }
 0x231   :  { %4007 = vmatpush1.bf16.msra.mxu1 %v5380_v48  ;;  %v3674_v21 = vpop.f32.mrf.mxu0  ;;  %3967 = vmatprep.subr.bf16.mxu0 %v5245_v1  ;;  %v3715_v13 = vpop.f32.mrf.mxu1  ;;  %v829_v63 = vld [vmem:[#allocation8 + $0xc30] sm:$0xff]  ;;  %v5340_v48 = vcombine.low %v833_v55, %v837_v56  ;;  %v5205_v1 = vcombine.high %v697_v60, %v701_v45 }
 0x232   :  { %4008 = vmatprep.subr.bf16.mxu1 %v5373_v3  ;;  %v5333_v5 = vcombine.high %v825_v62, %v829_v63  ;;  %v817_v23 = vld [vmem:[#allocation8 + $0xbd0] sm:$0xff]  ;;  %v5332_v8 = vcombine.low %v825_v62, %v829_v63 }
 0x233   :  { %v821_v3 = vld [vmem:[#allocation8 + $0xbf0] sm:$0xff] }
 0x234   :  { %3968 = vmatpush1.bf16.msra.mxu0 %v5244_v20  ;;  %v5325_v10 = vcombine.high %v817_v23, %v821_v3  ;;  %v809_v20 = vld [vmem:[#allocation8 + $0xb90] sm:$0xff]  ;;  %v5324_v13 = vcombine.low %v817_v23, %v821_v3 }
 0x235   :  { %4009 = vmatpush1.bf16.msra.mxu1 %v5372_v22  ;;  %3969 = vmatprep.subr.bf16.mxu0 %v5237_v24  ;;  %v813_v21 = vld [vmem:[#allocation8 + $0xbb0] sm:$0xff] }
 0x236   :  { %4010 = vmatprep.subr.bf16.mxu1 %v5365_v25  ;;  %v937_v22 = vld [vmem:[#allocation8 + $0xf90] sm:$0xff]  ;;  %v5452_v25 = vcombine.low %v945_v6, %v949_v18  ;;  %v5317_v26 = vcombine.high %v809_v20, %v813_v21 }
 0x237   :  { %v941_v24 = vld [vmem:[#allocation8 + $0xfb0] sm:$0xff] }
 0x238   :  { %3970 = vmatpush1.bf16.msra.mxu0 %v5236_v32  ;;  %v5445_v27 = vcombine.high %v937_v22, %v941_v24  ;;  %v801_v28 = vld [vmem:[#allocation8 + $0xb50] sm:$0xff] }
 0x239   :  { %4011 = vmatpush1.bf16.msra.mxu1 %v5364_v33  ;;  %3971 = vmatprep.subr.bf16.mxu0 %v5229_v34  ;;  %v805_v30 = vld [vmem:[#allocation8 + $0xb70] sm:$0xff]  ;;  %v5316_v34 = vcombine.low %v809_v20, %v813_v21 }
 0x23a   :  { %4012 = vmatprep.subr.bf16.mxu1 %v5357_v35  ;;  %v929_v32 = vld [vmem:[#allocation8 + $0xf50] sm:$0xff]  ;;  %v5444_v35 = vcombine.low %v937_v22, %v941_v24  ;;  %v5309_v36 = vcombine.high %v801_v28, %v805_v30 }
 0x23b   :  { %v933_v33 = vld [vmem:[#allocation8 + $0xf70] sm:$0xff] }
 0x23c   :  { %3972 = vmatpush1.bf16.msra.mxu0 %v5228_v43  ;;  %v5437_v38 = vcombine.high %v929_v32, %v933_v33  ;;  %v793_v39 = vld [vmem:[#allocation8 + $0xb10] sm:$0xff] }
 0x23d   :  { %4013 = vmatpush1.bf16.msra.mxu1 %v5356_v50  ;;  %3973 = vmatprep.subr.bf16.mxu0 %v5221_v40  ;;  %v797_v42 = vld [vmem:[#allocation8 + $0xb30] sm:$0xff]  ;;  %v5308_v40 = vcombine.low %v801_v28, %v805_v30 }
 0x23e   :  { %4014 = vmatprep.subr.bf16.mxu1 %v5349_v41  ;;  %v921_v43 = vld [vmem:[#allocation8 + $0xf10] sm:$0xff]  ;;  %v5436_v41 = vcombine.low %v929_v32, %v933_v33  ;;  %v5301_v52 = vcombine.high %v793_v39, %v797_v42  ;;  %v498_v32 = vld [vmem:[#allocation8 + $0x1d8] sm:$0xff] }
 0x23f   :  { %v925_v50 = vld [vmem:[#allocation8 + $0xf30] sm:$0xff]  ;;  %v502_v33 = vld [vmem:[#allocation8 + $0x1f8] sm:$0xff] }
 0x240   :  { %3974 = vmatpush1.bf16.msra.mxu0 %v5220_v57  ;;  %v5429_v53 = vcombine.high %v921_v43, %v925_v50  ;;  %v785_v55 = vld [vmem:[#allocation8 + $0xad0] sm:$0xff] }
 0x241   :  { %4015 = vmatpush1.bf16.msra.mxu1 %v5348_v58  ;;  %3975 = vmatprep.subr.bf16.mxu0 %v5213_v59  ;;  %v789_v56 = vld [vmem:[#allocation8 + $0xaf0] sm:$0xff]  ;;  %v5300_v59 = vcombine.low %v793_v39, %v797_v42  ;;  %v5007_v39 = vcombine.high %v498_v32, %v502_v33 }
 0x242   :  { %4016 = vmatprep.subr.bf16.mxu1 %v5341_v46  ;;  %v913_v57 = vld [vmem:[#allocation8 + $0xed0] sm:$0xff]  ;;  %v5428_v46 = vcombine.low %v921_v43, %v925_v50  ;;  %v5293_v60 = vcombine.high %v785_v55, %v789_v56  ;;  %v490_v43 = vld [vmem:[#allocation8 + $0x198] sm:$0xff] }
 0x243   :  { %v917_v58 = vld [vmem:[#allocation8 + $0xef0] sm:$0xff]  ;;  %v494_v50 = vld [vmem:[#allocation8 + $0x1b8] sm:$0xff] }
 0x244   :  { %3976 = vmatpush1.bf16.msra.mxu0 %v5212_v0  ;;  %v5421_v45 = vcombine.high %v913_v57, %v917_v58  ;;  %v777_v62 = vld [vmem:[#allocation8 + $0xa90] sm:$0xff] }
 0x245   :  { %4017 = vmatpush1.bf16.msra.mxu1 %v5340_v48  ;;  %3977 = vmatprep.subr.bf16.mxu0 %v5205_v1  ;;  %v781_v63 = vld [vmem:[#allocation8 + $0xab0] sm:$0xff]  ;;  %v5292_v1 = vcombine.low %v785_v55, %v789_v56  ;;  %v968_v56 = vrot.slane %v6015_v37, %v149_v49 }
 0x246   :  { %4018 = vmatprep.subr.bf16.mxu1 %v5333_v5  ;;  %v905_v0 = vld [vmem:[#allocation8 + $0xe90] sm:$0xff]  ;;  %v5420_v5 = vcombine.low %v913_v57, %v917_v58  ;;  %v5285_v23 = vcombine.high %v777_v62, %v781_v63  ;;  %v4999_v57 = vcombine.high %v490_v43, %v494_v50  ;;  %v482_v58 = vld [vmem:[#allocation8 + $0x158] sm:$0xff] }
 0x247   :  { %v909_v48 = vld [vmem:[#allocation8 + $0xeb0] sm:$0xff] }
 0x248   :  { %3978 = vmatpush1.bf16.msra.mxu0 %v5204_v7  ;;  %v5413_v3 = vcombine.high %v905_v0, %v909_v48  ;;  %v769_v6 = vld [vmem:[#allocation8 + $0xa50] sm:$0xff] }
 0x249   :  { %4019 = vmatpush1.bf16.msra.mxu1 %v5332_v8  ;;  %3979 = vmatprep.subr.bf16.mxu0 %v5325_v10  ;;  %v773_v18 = vld [vmem:[#allocation8 + $0xa70] sm:$0xff]  ;;  %v5284_v10 = vcombine.low %v777_v62, %v781_v63 }
 0x24a   :  { %4020 = vmatprep.subr.bf16.mxu1 %v5453_v19  ;;  %v897_v7 = vld [vmem:[#allocation8 + $0xe50] sm:$0xff]  ;;  %v5412_v19 = vcombine.low %v905_v0, %v909_v48  ;;  %v5277_v20 = vcombine.high %v769_v6, %v773_v18  ;;  %v4998_v0 = vcombine.low %v490_v43, %v494_v50 }
 0x24b   :  { %v901_v8 = vld [vmem:[#allocation8 + $0xe70] sm:$0xff] }
 0x24c   :  { %3980 = vmatpush2.bf16.msra.mxu0 %v5324_v13  ;;  %v5405_v21 = vcombine.high %v897_v7, %v901_v8  ;;  %v761_v22 = vld [vmem:[#allocation8 + $0xa10] sm:$0xff] }
 0x24d   :  { %4021 = vmatpush2.bf16.msra.mxu1 %v5452_v25  ;;  %3981 = vmatprep.subr.bf16.mxu0 %v5317_v26  ;;  %v765_v24 = vld [vmem:[#allocation8 + $0xa30] sm:$0xff]  ;;  %v5276_v26 = vcombine.low %v769_v6, %v773_v18  ;;  %v474_v6 = vld [vmem:[#allocation8 + $0x118] sm:$0xff] }
 0x24e   :  { %4022 = vmatprep.subr.bf16.mxu1 %v5445_v27  ;;  %v889_v13 = vld [vmem:[#allocation8 + $0xe10] sm:$0xff]  ;;  %v5404_v27 = vcombine.low %v897_v7, %v901_v8  ;;  %v5269_v28 = vcombine.high %v761_v22, %v765_v24  ;;  %v478_v18 = vld [vmem:[#allocation8 + $0x138] sm:$0xff] }
 0x24f   :  { %v893_v25 = vld [vmem:[#allocation8 + $0xe30] sm:$0xff]  ;;  %v602_v8 = vld [vmem:[#allocation8 + $0x518] sm:$0xff] }
 0x250   :  { %3982 = vmatpush2.bf16.msra.mxu0 %v5316_v34  ;;  %v5397_v30 = vcombine.high %v889_v13, %v893_v25  ;;  %v626_v34 = vld [vmem:[#allocation8 + $0x5d8] sm:$0xff] }
 0x251   :  { %4023 = vmatpush2.bf16.msra.mxu1 %v5444_v35  ;;  %3983 = vmatprep.subr.bf16.mxu0 %v5309_v36  ;;  %v630_v35 = vld [vmem:[#allocation8 + $0x5f8] sm:$0xff]  ;;  %v5268_v36 = vcombine.low %v761_v22, %v765_v24 }
 0x252   :  { %4024 = vmatprep.subr.bf16.mxu1 %v5437_v38  ;;  %v5396_v38 = vcombine.low %v889_v13, %v893_v25  ;;  %v5135_v42 = vcombine.high %v626_v34, %v630_v35  ;;  %v5134_v55 = vcombine.low %v626_v34, %v630_v35  ;;  %v466_v25 = vld [vmem:[#allocation8 + $0xd8] sm:$0xff] }
 0x253   :  { %v458_v35 = vld [vmem:[#allocation8 + $0x98] sm:$0xff] }
 0x254   :  { %3984 = vmatpush2.bf16.msra.mxu0 %v5308_v40  ;;  %v964_v40 = vrot.slane %v6015_v37, %v145_v47  ;;  %v614_v47 = vld [vmem:[#allocation8 + $0x578] sm:$0xff] }
 0x255   :  { %4025 = vmatpush2.bf16.msra.mxu1 %v5436_v41  ;;  %3985 = vmatprep.subr.bf16.mxu0 %v5301_v52  ;;  %v5006_v41 = vcombine.low %v498_v32, %v502_v33  ;;  %v618_v52 = vld [vmem:[#allocation8 + $0x598] sm:$0xff] }
 0x256   :  { %4026 = vmatprep.subr.bf16.mxu1 %v5429_v53  ;;  %v622_v53 = vld [vmem:[#allocation8 + $0x5b8] sm:$0xff] }
 0x257   :  { %v5126_v49 = vcombine.low %v618_v52, %v622_v53 }
 0x258   :  { %3986 = vmatpush2.bf16.msra.mxu0 %v5300_v59  ;;  %v486_v59 = vld [vmem:[#allocation8 + $0x178] sm:$0xff] }
 0x259   :  { %4027 = vmatpush2.bf16.msra.mxu1 %v5428_v46  ;;  %3987 = vmatprep.subr.bf16.mxu0 %v5293_v60  ;;  %v5127_v60 = vcombine.high %v618_v52, %v622_v53  ;;  %v4991_v37 = vcombine.high %v482_v58, %v486_v59  ;;  %v454_v52 = vld [vmem:[#allocation8 + $0x78] sm:$0xff] }
 0x25a   :  { %4028 = vmatprep.subr.bf16.mxu1 %v5421_v45  ;;  %v610_v45 = vld [vmem:[#allocation8 + $0x558] sm:$0xff] }
 0x25b   :  { %v5118_v22 = vcombine.low %v610_v45, %v614_v47  ;;  %v578_v53 = vld [vmem:[#allocation8 + $0x458] sm:$0xff] }
 0x25c   :  { %3988 = vmatpush2.bf16.msra.mxu0 %v5292_v1 }
 0x25d   :  { %4029 = vmatpush2.bf16.msra.mxu1 %v5420_v5  ;;  %3989 = vmatprep.subr.bf16.mxu0 %v5285_v23 }
 0x25e   :  { %4030 = vmatprep.subr.bf16.mxu1 %v5413_v3  ;;  %v5119_v3 = vcombine.high %v610_v45, %v614_v47  ;;  %v570_v45 = vld [vmem:[#allocation8 + $0x418] sm:$0xff] }
 0x25f   :  { %v574_v47 = vld [vmem:[#allocation8 + $0x438] sm:$0xff] }
 0x260   :  { %3990 = vmatpush2.bf16.msra.mxu0 %v5284_v10  ;;  %v606_v10 = vld [vmem:[#allocation8 + $0x538] sm:$0xff] }
 0x261   :  { %4031 = vmatpush2.bf16.msra.mxu1 %v5412_v19  ;;  %3991 = vmatprep.subr.bf16.mxu0 %v5277_v20  ;;  %v4990_v20 = vcombine.low %v482_v58, %v486_v59  ;;  %v5111_v13 = vcombine.high %v602_v8, %v606_v10  ;;  %v5110_v32 = vcombine.low %v602_v8, %v606_v10  ;;  %v554_v8 = vld [vmem:[#allocation8 + $0x398] sm:$0xff] }
 0x262   :  { %4032 = vmatprep.subr.bf16.mxu1 %v5405_v21  ;;  %v558_v10 = vld [vmem:[#allocation8 + $0x3b8] sm:$0xff] }
 0x264   :  { %3992 = vmatpush2.bf16.msra.mxu0 %v5276_v26  ;;  %v470_v26 = vld [vmem:[#allocation8 + $0xf8] sm:$0xff] }
 0x265   :  { %4033 = vmatpush2.bf16.msra.mxu1 %v5404_v27  ;;  %3993 = vmatprep.subr.bf16.mxu0 %v5269_v28  ;;  %v594_v27 = vld [vmem:[#allocation8 + $0x4d8] sm:$0xff]  ;;  %v4975_v33 = vcombine.high %v466_v25, %v470_v26 }
 0x266   :  { %4034 = vmatprep.subr.bf16.mxu1 %v5397_v30  ;;  %v598_v28 = vld [vmem:[#allocation8 + $0x4f8] sm:$0xff]  ;;  %v4982_v30 = vcombine.low %v474_v6, %v478_v18 }
 0x267   :  { %v5103_v34 = vcombine.high %v594_v27, %v598_v28  ;;  %v5102_v43 = vcombine.low %v594_v27, %v598_v28  ;;  %v678_v27 = vld [vmem:[#allocation8 + $0x778] sm:$0xff]  ;;  %v5062_v28 = vcombine.low %v554_v8, %v558_v10 }
 0x268   :  { %3994 = vmatpush2.bf16.msra.mxu0 %v5268_v36  ;;  %v462_v36 = vld [vmem:[#allocation8 + $0xb8] sm:$0xff] }
 0x269   :  { %4035 = vmatpush2.bf16.msra.mxu1 %v5396_v38  ;;  %4045 = vmatprep.subr.bf16.mxu0 %v5007_v39  ;;  %v586_v38 = vld [vmem:[#allocation8 + $0x498] sm:$0xff]  ;;  %v4967_v50 = vcombine.high %v458_v35, %v462_v36 }
 0x26a   :  { %4086 = vmatprep.subr.bf16.mxu1 %v5135_v42  ;;  %v590_v39 = vld [vmem:[#allocation8 + $0x4b8] sm:$0xff]  ;;  %v4974_v42 = vcombine.low %v466_v25, %v470_v26 }
 0x26b   :  { %v3751_v46 = vpop.f32.mrf.mxu0  ;;  %3996 = vmatmul.mubr.bf16.vlgmr.msra.gmra.mxu0 %v6005_v17  ;;  %v550_v25 = vld [vmem:[#allocation8 + $0x378] sm:$0xff] }
 0x26c   :  { %v3752_v62 = vadd.f32 %v3751_v46, %v964_v40  ;;  %v3792_v63 = vpop.f32.mrf.mxu1  ;;  %4037 = vmatmul.mubr.bf16.vlgmr.msra.gmra.mxu1 %v6003_v9  ;;  %4046 = vmatpush1.bf16.msra.mxu0 %v5006_v41  ;;  %v5095_v40 = vcombine.high %v586_v38, %v590_v39  ;;  %v450_v41 = vld [vmem:[#allocation8 + $0x58] sm:$0xff] }
 0x26d   :  { %4077 = vmatprep.mubr.bf16.mxu0 %v5967_v12  ;;  %4087 = vmatpush1.bf16.msra.mxu1 %v5134_v55  ;;  %v3753_v48 = vpop.f32.mrf.mxu0  ;;  %v582_v55 = vld [vmem:[#allocation8 + $0x478] sm:$0xff]  ;;  %v4959_v58 = vcombine.high %v450_v41, %v454_v52 }
 0x26e   :  { %v6050_v1 = vadd.f32 %v3792_v63, %v3752_v62  ;;  %4118 = vmatprep.mubr.bf16.mxu1 %v5974_v16  ;;  %v3754_v5 = vadd.f32 %v3753_v48, %v968_v56  ;;  %v3794_v23 = vpop.f32.mrf.mxu1  ;;  %4047 = vmatprep.subr.bf16.mxu0 %v4999_v57  ;;  %v4983_v16 = vcombine.high %v474_v6, %v478_v18  ;;  %v442_v46 = vld [vmem:[#allocation8 + $0x18] sm:$0xff] }
 0x26f   :  { %v3755_v7 = vpop.f32.mrf.mxu0  ;;  %4088 = vmatprep.subr.bf16.mxu1 %v5127_v60  ;;  %v4966_v56 = vcombine.low %v458_v35, %v462_v36  ;;  %v5094_v57 = vcombine.low %v586_v38, %v590_v39  ;;  %v5087_v59 = vcombine.high %v578_v53, %v582_v55  ;;  %v446_v60 = vld [vmem:[#allocation8 + $0x38] sm:$0xff]  ;;  %v4958_v62 = vcombine.low %v450_v41, %v454_v52 }
 0x270   :  { %v6053_v19 = vadd.f32 %v3794_v23, %v3754_v5  ;;  %v3796_v12 = vpop.f32.mrf.mxu1  ;;  %4048 = vmatpush1.bf16.msra.mxu0 %v4998_v0  ;;  %v5086_v63 = vcombine.low %v578_v53, %v582_v55  ;;  %v4951_v0 = vcombine.high %v442_v46, %v446_v60  ;;  %v5079_v48 = vcombine.high %v570_v45, %v574_v47  ;;  %v690_v5 = vld [vmem:[#allocation8 + $0x7d8] sm:$0xff] }
 0x271   :  { %4089 = vmatpush1.bf16.msra.mxu1 %v5126_v49  ;;  %v3756_v21 = vpop.f32.mrf.mxu0  ;;  %4049 = vmatprep.subr.bf16.mxu0 %v4991_v37  ;;  %v562_v49 = vld [vmem:[#allocation8 + $0x3d8] sm:$0xff]  ;;  %v5078_v6 = vcombine.low %v570_v45, %v574_v47 }
 0x272   :  { %v3797_v24 = vpop.f32.mrf.mxu1  ;;  %4090 = vmatprep.subr.bf16.mxu1 %v5119_v3  ;;  %v566_v37 = vld [vmem:[#allocation8 + $0x3f8] sm:$0xff]  ;;  %v4950_v3 = vcombine.low %v442_v46, %v446_v60 }
 0x273   :  { %v694_v23 = vld [vmem:[#allocation8 + $0x7f8] sm:$0xff]  ;;  %v5071_v18 = vcombine.high %v562_v49, %v566_v37  ;;  %v5070_v21 = vcombine.low %v562_v49, %v566_v37 }
 0x274   :  { %4050 = vmatpush1.bf16.msra.mxu0 %v4990_v20  ;;  %v5199_v7 = vcombine.high %v690_v5, %v694_v23  ;;  %v682_v12 = vld [vmem:[#allocation8 + $0x798] sm:$0xff] }
 0x275   :  { %4091 = vmatpush1.bf16.msra.mxu1 %v5118_v22  ;;  %4051 = vmatprep.subr.bf16.mxu0 %v4983_v16  ;;  %v686_v20 = vld [vmem:[#allocation8 + $0x7b8] sm:$0xff]  ;;  %v5198_v22 = vcombine.low %v690_v5, %v694_v23  ;;  %v5063_v16 = vcombine.high %v554_v8, %v558_v10 }
 0x276   :  { %4092 = vmatprep.subr.bf16.mxu1 %v5111_v13  ;;  %v5191_v24 = vcombine.high %v682_v12, %v686_v20  ;;  %v546_v13 = vld [vmem:[#allocation8 + $0x358] sm:$0xff] }
 0x277   :  { %v674_v26 = vld [vmem:[#allocation8 + $0x758] sm:$0xff]  ;;  %v5054_v39 = vcombine.low %v546_v13, %v550_v25 }
 0x278   :  { %4052 = vmatpush1.bf16.msra.mxu0 %v4982_v30  ;;  %v5190_v30 = vcombine.low %v682_v12, %v686_v20  ;;  %v542_v35 = vld [vmem:[#allocation8 + $0x338] sm:$0xff] }
 0x279   :  { %4093 = vmatpush1.bf16.msra.mxu1 %v5110_v32  ;;  %4053 = vmatprep.subr.bf16.mxu0 %v4975_v33  ;;  %v5055_v32 = vcombine.high %v546_v13, %v550_v25  ;;  %v5183_v33 = vcombine.high %v674_v26, %v678_v27  ;;  %v666_v36 = vld [vmem:[#allocation8 + $0x718] sm:$0xff] }
 0x27a   :  { %4094 = vmatprep.subr.bf16.mxu1 %v5103_v34  ;;  %v538_v34 = vld [vmem:[#allocation8 + $0x318] sm:$0xff] }
 0x27b   :  { %v670_v38 = vld [vmem:[#allocation8 + $0x738] sm:$0xff]  ;;  %v5046_v55 = vcombine.low %v538_v34, %v542_v35 }
 0x27c   :  { %4054 = vmatpush1.bf16.msra.mxu0 %v4974_v42  ;;  %v5182_v42 = vcombine.low %v674_v26, %v678_v27  ;;  %v534_v41 = vld [vmem:[#allocation8 + $0x2f8] sm:$0xff] }
 0x27d   :  { %4095 = vmatpush1.bf16.msra.mxu1 %v5102_v43  ;;  %4055 = vmatprep.subr.bf16.mxu0 %v4967_v50  ;;  %v5047_v43 = vcombine.high %v538_v34, %v542_v35  ;;  %v5175_v50 = vcombine.high %v666_v36, %v670_v38  ;;  %v658_v52 = vld [vmem:[#allocation8 + $0x6d8] sm:$0xff] }
 0x27e   :  { %4096 = vmatprep.subr.bf16.mxu1 %v5095_v40  ;;  %v530_v40 = vld [vmem:[#allocation8 + $0x2d8] sm:$0xff] }
 0x27f   :  { %v662_v53 = vld [vmem:[#allocation8 + $0x6f8] sm:$0xff]  ;;  %v5038_v47 = vcombine.low %v530_v40, %v534_v41 }
 0x280   :  { %4056 = vmatpush1.bf16.msra.mxu0 %v4966_v56  ;;  %v5174_v56 = vcombine.low %v666_v36, %v670_v38  ;;  %v526_v46 = vld [vmem:[#allocation8 + $0x2b8] sm:$0xff] }
 0x281   :  { %4097 = vmatpush1.bf16.msra.mxu1 %v5094_v57  ;;  %4057 = vmatprep.subr.bf16.mxu0 %v4959_v58  ;;  %v5039_v57 = vcombine.high %v530_v40, %v534_v41  ;;  %v5167_v58 = vcombine.high %v658_v52, %v662_v53  ;;  %v650_v60 = vld [vmem:[#allocation8 + $0x698] sm:$0xff] }
 0x282   :  { %4098 = vmatprep.subr.bf16.mxu1 %v5087_v59  ;;  %v522_v59 = vld [vmem:[#allocation8 + $0x298] sm:$0xff] }
 0x283   :  { %v654_v45 = vld [vmem:[#allocation8 + $0x6b8] sm:$0xff]  ;;  %v5030_v23 = vcombine.low %v522_v59, %v526_v46 }
 0x284   :  { %4058 = vmatpush1.bf16.msra.mxu0 %v4958_v62  ;;  %v5166_v62 = vcombine.low %v658_v52, %v662_v53  ;;  %v518_v49 = vld [vmem:[#allocation8 + $0x278] sm:$0xff] }
 0x285   :  { %4099 = vmatpush1.bf16.msra.mxu1 %v5086_v63  ;;  %4059 = vmatprep.subr.bf16.mxu0 %v4951_v0  ;;  %v5031_v63 = vcombine.high %v522_v59, %v526_v46  ;;  %v5159_v0 = vcombine.high %v650_v60, %v654_v45  ;;  %v642_v37 = vld [vmem:[#allocation8 + $0x658] sm:$0xff] }
 0x286   :  { %4100 = vmatprep.subr.bf16.mxu1 %v5079_v48  ;;  %v514_v48 = vld [vmem:[#allocation8 + $0x258] sm:$0xff] }
 0x287   :  { %v646_v5 = vld [vmem:[#allocation8 + $0x678] sm:$0xff]  ;;  %v5022_v20 = vcombine.low %v514_v48, %v518_v49 }
 0x288   :  { %4060 = vmatpush1.bf16.msra.mxu0 %v4950_v3  ;;  %v5158_v3 = vcombine.low %v650_v60, %v654_v45  ;;  %v510_v8 = vld [vmem:[#allocation8 + $0x238] sm:$0xff] }
 0x289   :  { %4101 = vmatpush1.bf16.msra.mxu1 %v5078_v6  ;;  %4061 = vmatprep.subr.bf16.mxu0 %v5071_v18  ;;  %v5023_v6 = vcombine.high %v514_v48, %v518_v49  ;;  %v5151_v18 = vcombine.high %v642_v37, %v646_v5  ;;  %v634_v10 = vld [vmem:[#allocation8 + $0x618] sm:$0xff] }
 0x28a   :  { %4102 = vmatprep.subr.bf16.mxu1 %v5199_v7  ;;  %v506_v7 = vld [vmem:[#allocation8 + $0x218] sm:$0xff] }
 0x28b   :  { %v638_v12 = vld [vmem:[#allocation8 + $0x638] sm:$0xff]  ;;  %v5014_v27 = vcombine.low %v506_v7, %v510_v8 }
 0x28c   :  { %4062 = vmatpush2.bf16.msra.mxu0 %v5070_v21  ;;  %v5150_v21 = vcombine.low %v642_v37, %v646_v5  ;;  %v758_v13 = vld [vmem:[#allocation8 + $0x9f8] sm:$0xff] }
 0x28d   :  { %4103 = vmatpush2.bf16.msra.mxu1 %v5198_v22  ;;  %4063 = vmatprep.subr.bf16.mxu0 %v5063_v16  ;;  %v5015_v22 = vcombine.high %v506_v7, %v510_v8  ;;  %v5143_v16 = vcombine.high %v634_v10, %v638_v12  ;;  %v882_v25 = vld [vmem:[#allocation8 + $0xdd8] sm:$0xff] }
 0x28e   :  { %4104 = vmatprep.subr.bf16.mxu1 %v5191_v24  ;;  %v754_v24 = vld [vmem:[#allocation8 + $0x9d8] sm:$0xff] }
 0x28f   :  { %v886_v26 = vld [vmem:[#allocation8 + $0xdf8] sm:$0xff]  ;;  %v5262_v35 = vcombine.low %v754_v24, %v758_v13 }
 0x290   :  { %4064 = vmatpush2.bf16.msra.mxu0 %v5062_v28  ;;  %v5142_v28 = vcombine.low %v634_v10, %v638_v12  ;;  %v750_v34 = vld [vmem:[#allocation8 + $0x9b8] sm:$0xff] }
 0x291   :  { %4105 = vmatpush2.bf16.msra.mxu1 %v5190_v30  ;;  %4065 = vmatprep.subr.bf16.mxu0 %v5055_v32  ;;  %v5263_v30 = vcombine.high %v754_v24, %v758_v13  ;;  %v5391_v32 = vcombine.high %v882_v25, %v886_v26  ;;  %v874_v36 = vld [vmem:[#allocation8 + $0xd98] sm:$0xff] }
 0x292   :  { %4106 = vmatprep.subr.bf16.mxu1 %v5183_v33  ;;  %v746_v33 = vld [vmem:[#allocation8 + $0x998] sm:$0xff] }
 0x293   :  { %v878_v38 = vld [vmem:[#allocation8 + $0xdb8] sm:$0xff] }
 0x294   :  { %4066 = vmatpush2.bf16.msra.mxu0 %v5054_v39  ;;  %v5390_v39 = vcombine.low %v882_v25, %v886_v26  ;;  %v5383_v41 = vcombine.high %v874_v36, %v878_v38  ;;  %v866_v52 = vld [vmem:[#allocation8 + $0xd58] sm:$0xff]  ;;  %v5382_v59 = vcombine.low %v874_v36, %v878_v38 }
 0x295   :  { %4107 = vmatpush2.bf16.msra.mxu1 %v5182_v42  ;;  %4067 = vmatprep.subr.bf16.mxu0 %v5047_v43  ;;  %v5255_v42 = vcombine.high %v746_v33, %v750_v34  ;;  %v738_v43 = vld [vmem:[#allocation8 + $0x958] sm:$0xff] }
 0x296   :  { %4108 = vmatprep.subr.bf16.mxu1 %v5175_v50  ;;  %v742_v50 = vld [vmem:[#allocation8 + $0x978] sm:$0xff] }
 0x297   :  { %v870_v53 = vld [vmem:[#allocation8 + $0xd78] sm:$0xff]  ;;  %v5247_v46 = vcombine.high %v738_v43, %v742_v50 }
 0x298   :  { %4068 = vmatpush2.bf16.msra.mxu0 %v5046_v55  ;;  %v730_v45 = vld [vmem:[#allocation8 + $0x918] sm:$0xff]  ;;  %v5374_v49 = vcombine.low %v866_v52, %v870_v53 }
 0x299   :  { %4109 = vmatpush2.bf16.msra.mxu1 %v5174_v56  ;;  %4069 = vmatprep.subr.bf16.mxu0 %v5039_v57  ;;  %v5254_v57 = vcombine.low %v746_v33, %v750_v34  ;;  %v698_v38 = vld [vmem:[#allocation8 + $0x818] sm:$0xff] }
 0x29a   :  { %4110 = vmatprep.subr.bf16.mxu1 %v5167_v58 }
 0x29c   :  { %4070 = vmatpush2.bf16.msra.mxu0 %v5038_v47  ;;  %v734_v47 = vld [vmem:[#allocation8 + $0x938] sm:$0xff] }
 0x29d   :  { %4111 = vmatpush2.bf16.msra.mxu1 %v5166_v62  ;;  %4071 = vmatprep.subr.bf16.mxu0 %v5031_v63  ;;  %v858_v62 = vld [vmem:[#allocation8 + $0xd18] sm:$0xff]  ;;  %v5239_v37 = vcombine.high %v730_v45, %v734_v47  ;;  %v5238_v7 = vcombine.low %v730_v45, %v734_v47 }
 0x29e   :  { %4112 = vmatprep.subr.bf16.mxu1 %v5159_v0  ;;  %v862_v63 = vld [vmem:[#allocation8 + $0xd38] sm:$0xff]  ;;  %v5246_v0 = vcombine.low %v738_v43, %v742_v50 }
 0x29f   :  { %v5366_v8 = vcombine.low %v858_v62, %v862_v63  ;;  %v830_v43 = vld [vmem:[#allocation8 + $0xc38] sm:$0xff] }
 0x2a0   :  { %4072 = vmatpush2.bf16.msra.mxu0 %v5030_v23  ;;  %v722_v23 = vld [vmem:[#allocation8 + $0x8d8] sm:$0xff] }
 0x2a1   :  { %4113 = vmatpush2.bf16.msra.mxu1 %v5158_v3  ;;  %4073 = vmatprep.subr.bf16.mxu0 %v5023_v6  ;;  %v726_v3 = vld [vmem:[#allocation8 + $0x8f8] sm:$0xff] }
 0x2a2   :  { %4114 = vmatprep.subr.bf16.mxu1 %v5151_v18  ;;  %v850_v6 = vld [vmem:[#allocation8 + $0xcd8] sm:$0xff]  ;;  %v5231_v10 = vcombine.high %v722_v23, %v726_v3  ;;  %v5230_v24 = vcombine.low %v722_v23, %v726_v3 }
 0x2a3   :  { %v854_v18 = vld [vmem:[#allocation8 + $0xcf8] sm:$0xff] }
 0x2a4   :  { %4074 = vmatpush2.bf16.msra.mxu0 %v5022_v20  ;;  %v5359_v12 = vcombine.high %v850_v6, %v854_v18  ;;  %v714_v20 = vld [vmem:[#allocation8 + $0x898] sm:$0xff]  ;;  %v5358_v13 = vcombine.low %v850_v6, %v854_v18 }
 0x2a5   :  { %4115 = vmatpush2.bf16.msra.mxu1 %v5150_v21  ;;  %4075 = vmatprep.subr.bf16.mxu0 %v5015_v22  ;;  %v718_v21 = vld [vmem:[#allocation8 + $0x8b8] sm:$0xff] }
 0x2a6   :  { %4116 = vmatprep.subr.bf16.mxu1 %v5143_v16  ;;  %v842_v22 = vld [vmem:[#allocation8 + $0xc98] sm:$0xff]  ;;  %v5223_v25 = vcombine.high %v714_v20, %v718_v21  ;;  %v5222_v33 = vcombine.low %v714_v20, %v718_v21 }
 0x2a7   :  { %v846_v16 = vld [vmem:[#allocation8 + $0xcb8] sm:$0xff] }
 0x2a8   :  { %4076 = vmatpush2.bf16.msra.mxu0 %v5014_v27  ;;  %v5351_v26 = vcombine.high %v842_v22, %v846_v16  ;;  %v706_v27 = vld [vmem:[#allocation8 + $0x858] sm:$0xff]  ;;  %v5350_v34 = vcombine.low %v842_v22, %v846_v16 }
 0x2a9   :  { %4117 = vmatpush2.bf16.msra.mxu1 %v5142_v28  ;;  %4127 = vmatprep.subr.bf16.mxu0 %v5263_v30  ;;  %v710_v28 = vld [vmem:[#allocation8 + $0x878] sm:$0xff] }
 0x2aa   :  { %4168 = vmatprep.subr.bf16.mxu1 %v5391_v32  ;;  %v834_v30 = vld [vmem:[#allocation8 + $0xc58] sm:$0xff]  ;;  %v5214_v50 = vcombine.low %v706_v27, %v710_v28 }
 0x2ab   :  { %v3833_v40 = vpop.f32.mrf.mxu0  ;;  %4078 = vmatmul.mubr.bf16.vlgmr.msra.gmra.mxu0 %v5972_v15  ;;  %v838_v32 = vld [vmem:[#allocation8 + $0xc78] sm:$0xff] }
 0x2ac   :  { %v3834_v55 = vadd.f32 %v3833_v40, %v6050_v1  ;;  %v3874_v56 = vpop.f32.mrf.mxu1  ;;  %4119 = vmatmul.mubr.bf16.vlgmr.msra.gmra.mxu1 %v5965_v11  ;;  %4128 = vmatpush1.bf16.msra.mxu0 %v5262_v35  ;;  %v5375_v1 = vcombine.high %v866_v52, %v870_v53  ;;  %v5215_v35 = vcombine.high %v706_v27, %v710_v28  ;;  %v818_v53 = vld [vmem:[#allocation8 + $0xbd8] sm:$0xff] }
 0x2ad   :  { %4159 = vmatprep.mubr.bf16.mxu0 %v5987_v51  ;;  %4169 = vmatpush1.bf16.msra.mxu1 %v5390_v39  ;;  %v6059_v58 = vpop.f32.mrf.mxu0  ;;  %v5343_v36 = vcombine.high %v834_v30, %v838_v32  ;;  %v702_v39 = vld [vmem:[#allocation8 + $0x838] sm:$0xff]  ;;  %v5342_v40 = vcombine.low %v834_v30, %v838_v32 }
 0x2ae   :  { %v6061_v60 = vadd.f32 %v3874_v56, %v3834_v55  ;;  %4200 = vmatprep.mubr.bf16.mxu1 %v5989_v54  ;;  %v6064_v15 = vpop.f32.mrf.mxu1  ;;  %4129 = vmatprep.subr.bf16.mxu0 %v5255_v42  ;;  %v5367_v54 = vcombine.high %v858_v62, %v862_v63  ;;  %v826_v42 = vld [vmem:[#allocation8 + $0xc18] sm:$0xff] }
 0x2af   :  { %v3837_v11 = vpop.f32.mrf.mxu0  ;;  %4170 = vmatprep.subr.bf16.mxu1 %v5383_v41  ;;  %v5207_v41 = vcombine.high %v698_v38, %v702_v39  ;;  %v5335_v52 = vcombine.high %v826_v42, %v830_v43  ;;  %v822_v55 = vld [vmem:[#allocation8 + $0xbf8] sm:$0xff] }
 0x2b0   :  { %v3878_v51 = vpop.f32.mrf.mxu1  ;;  %4130 = vmatpush1.bf16.msra.mxu0 %v5254_v57  ;;  %v946_v56 = vld [vmem:[#allocation8 + $0xfd8] sm:$0xff] }
 0x2b1   :  { %4171 = vmatpush1.bf16.msra.mxu1 %v5382_v59  ;;  %v3838_v48 = vpop.f32.mrf.mxu0  ;;  %4131 = vmatprep.subr.bf16.mxu0 %v5247_v46  ;;  %v950_v57 = vld [vmem:[#allocation8 + $0xff8] sm:$0xff]  ;;  %v5206_v59 = vcombine.low %v698_v38, %v702_v39  ;;  %v5334_v46 = vcombine.low %v826_v42, %v830_v43  ;;  %v5326_v51 = vcombine.low %v818_v53, %v822_v55 }
 0x2b2   :  { %v3879_v5 = vpop.f32.mrf.mxu1  ;;  %4172 = vmatprep.subr.bf16.mxu1 %v5375_v1  ;;  %v5327_v1 = vcombine.high %v818_v53, %v822_v55  ;;  %v5455_v45 = vcombine.high %v946_v56, %v950_v57  ;;  %v810_v47 = vld [vmem:[#allocation8 + $0xb98] sm:$0xff] }
 0x2b3   :  { %v814_v11 = vld [vmem:[#allocation8 + $0xbb8] sm:$0xff] }
 0x2b4   :  { %4132 = vmatpush1.bf16.msra.mxu0 %v5246_v0  ;;  %v938_v62 = vld [vmem:[#allocation8 + $0xf98] sm:$0xff]  ;;  %v5454_v0 = vcombine.low %v946_v56, %v950_v57  ;;  %v5319_v48 = vcombine.high %v810_v47, %v814_v11  ;;  %v5318_v3 = vcombine.low %v810_v47, %v814_v11  ;;  %v3836_v11 = vadd.f32 %v6059_v58, %v6053_v19 }
 0x2b5   :  { %4173 = vmatpush1.bf16.msra.mxu1 %v5374_v49  ;;  %4133 = vmatprep.subr.bf16.mxu0 %v5239_v37  ;;  %v942_v63 = vld [vmem:[#allocation8 + $0xfb8] sm:$0xff]  ;;  %v4210_v19 = vmax.f32 %v6039_v14, 0.0 }
 0x2b6   :  { %4174 = vmatprep.subr.bf16.mxu1 %v5367_v54  ;;  %v5447_v49 = vcombine.high %v938_v62, %v942_v63  ;;  %v802_v37 = vld [vmem:[#allocation8 + $0xb58] sm:$0xff]  ;;  %v5446_v6 = vcombine.low %v938_v62, %v942_v63 }
 0x2b7   :  { %v806_v5 = vld [vmem:[#allocation8 + $0xb78] sm:$0xff] }
 0x2b8   :  { %4134 = vmatpush1.bf16.msra.mxu0 %v5238_v7  ;;  %v930_v54 = vld [vmem:[#allocation8 + $0xf58] sm:$0xff]  ;;  %v5311_v18 = vcombine.high %v802_v37, %v806_v5  ;;  %v5310_v21 = vcombine.low %v802_v37, %v806_v5  ;;  %v5622_v5 = vld [vmem:[#allocation11 + $0x78] sm:$0xff]  }
 0x2b9   :  { %4175 = vmatpush1.bf16.msra.mxu1 %v5366_v8  ;;  %4135 = vmatprep.subr.bf16.mxu0 %v5231_v10  ;;  %v934_v23 = vld [vmem:[#allocation8 + $0xf78] sm:$0xff] }
 0x2ba   :  { %4176 = vmatprep.subr.bf16.mxu1 %v5359_v12  ;;  %v5439_v7 = vcombine.high %v930_v54, %v934_v23  ;;  %v794_v8 = vld [vmem:[#allocation8 + $0xb18] sm:$0xff]  ;;  %v5438_v22 = vcombine.low %v930_v54, %v934_v23  ;;  %v5623_v54 = vld [vmem:[#allocation11 + $0xf8] sm:$0xff]  }
 0x2bb   :  { %v798_v10 = vld [vmem:[#allocation8 + $0xb38] sm:$0xff]  ;;  %v5624_v23 = vld [vmem:[#allocation11 + $0x38] sm:$0xff]  }
 0x2bc   :  { %4136 = vmatpush1.bf16.msra.mxu0 %v5230_v24  ;;  %v922_v12 = vld [vmem:[#allocation8 + $0xf18] sm:$0xff]  ;;  %v5303_v16 = vcombine.high %v794_v8, %v798_v10  ;;  %v5302_v28 = vcombine.low %v794_v8, %v798_v10 }
 0x2bd   :  { %4177 = vmatpush1.bf16.msra.mxu1 %v5358_v13  ;;  %4137 = vmatprep.subr.bf16.mxu0 %v5223_v25  ;;  %v926_v20 = vld [vmem:[#allocation8 + $0xf38] sm:$0xff] }
 0x2be   :  { %4178 = vmatprep.subr.bf16.mxu1 %v5351_v26  ;;  %v5431_v24 = vcombine.high %v922_v12, %v926_v20  ;;  %v786_v13 = vld [vmem:[#allocation8 + $0xad8] sm:$0xff]  ;;  %v5430_v30 = vcombine.low %v922_v12, %v926_v20 }
 0x2bf   :  { %v790_v25 = vld [vmem:[#allocation8 + $0xaf8] sm:$0xff] }
 0x2c0   :  { %4138 = vmatpush1.bf16.msra.mxu0 %v5222_v33  ;;  %v914_v26 = vld [vmem:[#allocation8 + $0xed8] sm:$0xff]  ;;  %v5295_v32 = vcombine.high %v786_v13, %v790_v25  ;;  %v5294_v39 = vcombine.low %v786_v13, %v790_v25  ;;  %v5632_v13 = vld [vmem:[#allocation11 + $0x28] sm:$0xff]  }
 0x2c1   :  { %4179 = vmatpush1.bf16.msra.mxu1 %v5350_v34  ;;  %4139 = vmatprep.subr.bf16.mxu0 %v5215_v35  ;;  %v918_v27 = vld [vmem:[#allocation8 + $0xef8] sm:$0xff]  ;;  %v5633_v25 = vld [vmem:[#allocation11 + $0xa8] sm:$0xff]  }
 0x2c2   :  { %4180 = vmatprep.subr.bf16.mxu1 %v5343_v36  ;;  %v5423_v33 = vcombine.high %v914_v26, %v918_v27  ;;  %v778_v34 = vld [vmem:[#allocation8 + $0xa98] sm:$0xff]  ;;  %v5422_v42 = vcombine.low %v914_v26, %v918_v27  ;;  %v5634_v26 = vld [vmem:[#allocation11 + $0x60] sm:$0xff]  }
 0x2c3   :  { %v782_v35 = vld [vmem:[#allocation8 + $0xab8] sm:$0xff] }
 0x2c4   :  { %4140 = vmatpush1.bf16.msra.mxu0 %v5214_v50  ;;  %v906_v36 = vld [vmem:[#allocation8 + $0xe98] sm:$0xff]  ;;  %v5287_v43 = vcombine.high %v778_v34, %v782_v35  ;;  %v5286_v55 = vcombine.low %v778_v34, %v782_v35  ;;  %v5639_v34 = vld [vmem:[#allocation11 + $0xd8] sm:$0xff]  }
 0x2c5   :  { %4181 = vmatpush1.bf16.msra.mxu1 %v5342_v40  ;;  %4141 = vmatprep.subr.bf16.mxu0 %v5207_v41  ;;  %v910_v38 = vld [vmem:[#allocation8 + $0xeb8] sm:$0xff]  ;;  %v5640_v35 = vld [vmem:[#allocation11 + $0x18] sm:$0xff]  }
 0x2c6   :  { %4182 = vmatprep.subr.bf16.mxu1 %v5335_v52  ;;  %v5415_v50 = vcombine.high %v906_v36, %v910_v38  ;;  %v770_v40 = vld [vmem:[#allocation8 + $0xa58] sm:$0xff]  ;;  %v5414_v56 = vcombine.low %v906_v36, %v910_v38  ;;  %v5641_v36 = vld [vmem:[#allocation11 + $0x98] sm:$0xff]  }
 0x2c7   :  { %v774_v41 = vld [vmem:[#allocation8 + $0xa78] sm:$0xff] }
 0x2c8   :  { %4142 = vmatpush1.bf16.msra.mxu0 %v5206_v59  ;;  %v898_v52 = vld [vmem:[#allocation8 + $0xe58] sm:$0xff]  ;;  %v5279_v57 = vcombine.high %v770_v40, %v774_v41  ;;  %v5278_v62 = vcombine.low %v770_v40, %v774_v41  ;;  %v5647_v40 = vld [vmem:[#allocation11 + $0xc8] sm:$0xff]  }
 0x2c9   :  { %4183 = vmatpush1.bf16.msra.mxu1 %v5334_v46  ;;  %4143 = vmatprep.subr.bf16.mxu0 %v5327_v1  ;;  %v902_v53 = vld [vmem:[#allocation8 + $0xe78] sm:$0xff]  ;;  %v5648_v41 = vld [vmem:[#allocation11 + $0x8] sm:$0xff]  }
 0x2ca   :  { %4184 = vmatprep.subr.bf16.mxu1 %v5455_v45  ;;  %v5407_v59 = vcombine.high %v898_v52, %v902_v53  ;;  %v762_v46 = vld [vmem:[#allocation8 + $0xa18] sm:$0xff]  ;;  %v5406_v63 = vcombine.low %v898_v52, %v902_v53  ;;  %v5649_v52 = vld [vmem:[#allocation11 + $0x88] sm:$0xff]   ;;  %v5650_v53 = vld [vmem:[#allocation11 + $0x40] sm:$0xff]  }
 0x2cb   :  { %v766_v1 = vld [vmem:[#allocation8 + $0xa38] sm:$0xff] }
 0x2cc   :  { %4144 = vmatpush2.bf16.msra.mxu0 %v5326_v51  ;;  %v890_v45 = vld [vmem:[#allocation8 + $0xe18] sm:$0xff]  ;;  %v5271_v51 = vcombine.high %v762_v46, %v766_v1 }
 0x2cd   :  { %4185 = vmatpush2.bf16.msra.mxu1 %v5454_v0  ;;  %4145 = vmatprep.subr.bf16.mxu0 %v5319_v48  ;;  %v894_v47 = vld [vmem:[#allocation8 + $0xe38] sm:$0xff]  ;;  %v3877_v48 = vadd.f32 %v6064_v15, %v3836_v11 }
 0x2ce   :  { %4186 = vmatprep.subr.bf16.mxu1 %v5447_v49  ;;  %v5399_v0 = vcombine.high %v890_v45, %v894_v47  ;;  %v5270_v49 = vcombine.low %v762_v46, %v766_v1  ;;  %v5398_v37 = vcombine.low %v890_v45, %v894_v47  ;;  %v5628_v14 = vld [vmem:[#allocation11 + $0x30] sm:$0xff]   ;;  %v5654_v46 = vld [vmem:[#allocation11 + $0x178] sm:$0xff]   ;;  %v4211_v1 = vmax.f32 %v6061_v60, 0.0 }
 0x2cf   :  { %v4212_v58 = vmax.f32 %v3877_v48, 0.0  ;;  %v5629_v20 = vld [vmem:[#allocation11 + $0xb0] sm:$0xff]   ;;  %v5670_v45 = vld [vmem:[#allocation11 + $0x1f8] sm:$0xff]   ;;  %v5658_v48 = vld [vmem:[#allocation11 + $0x168] sm:$0xff]  }
 0x2d0   :  { %4146 = vmatpush2.bf16.msra.mxu0 %v5318_v3  ;;  %v5625_v3 = vld [vmem:[#allocation11 + $0xb8] sm:$0xff]   ;;  %v5642_v38 = vld [vmem:[#allocation11 + $0x50] sm:$0xff]  }
 0x2d1   :  { %4187 = vmatpush2.bf16.msra.mxu1 %v5446_v6  ;;  %4147 = vmatprep.subr.bf16.mxu0 %v5311_v18  ;;  %v5626_v6 = vld [vmem:[#allocation11 + $0x70] sm:$0xff]   ;;  %v4218_v18 = vpack.c.bf16 %v4210_v19, %v4210_v19  ;;  %v4220_v8 = vpack.c.bf16 %v4212_v58, %v4212_v58  ;;  %v5655_v47 = vld [vmem:[#allocation11 + $0x138] sm:$0xff]   ;;  %v5676_v19 = vld [vmem:[#allocation11 + $0x1e0] sm:$0xff]  }
 0x2d2   :  { %4188 = vmatprep.subr.bf16.mxu1 %v5439_v7  ;;  %v5627_v7 = vld [vmem:[#allocation11 + $0xf0] sm:$0xff]   ;;  %v5661_v58 = vld [vmem:[#allocation11 + $0x120] sm:$0xff]  }
 0x2d3   :  { %v5673_v60 = vld [vmem:[#allocation11 + $0x1b0] sm:$0xff]  }
 0x2d4   :  { %4148 = vmatpush2.bf16.msra.mxu0 %v5310_v21  ;;  %v5630_v21 = vld [vmem:[#allocation11 + $0x68] sm:$0xff]  }
 0x2d5   :  { %4189 = vmatpush2.bf16.msra.mxu1 %v5438_v22  ;;  %4149 = vmatprep.subr.bf16.mxu0 %v5303_v16  ;;  %v5631_v16 = vld [vmem:[#allocation11 + $0xe8] sm:$0xff]  }
 0x2d6   :  { %4190 = vmatprep.subr.bf16.mxu1 %v5431_v24 }
 0x2d8   :  { %4150 = vmatpush2.bf16.msra.mxu0 %v5302_v28  ;;  %v5635_v28 = vld [vmem:[#allocation11 + $0xe0] sm:$0xff]  }
 0x2d9   :  { %4191 = vmatpush2.bf16.msra.mxu1 %v5430_v30  ;;  %4151 = vmatprep.subr.bf16.mxu0 %v5295_v32  ;;  %v5636_v30 = vld [vmem:[#allocation11 + $0x20] sm:$0xff]  }
 0x2da   :  { %4192 = vmatprep.subr.bf16.mxu1 %v5423_v33  ;;  %v5637_v32 = vld [vmem:[#allocation11 + $0xa0] sm:$0xff]   ;;  %v5638_v33 = vld [vmem:[#allocation11 + $0x58] sm:$0xff]  }
 0x2dc   :  { %4152 = vmatpush2.bf16.msra.mxu0 %v5294_v39  ;;  %v5643_v39 = vld [vmem:[#allocation11 + $0xd0] sm:$0xff]  }
 0x2dd   :  { %4193 = vmatpush2.bf16.msra.mxu1 %v5422_v42  ;;  %4153 = vmatprep.subr.bf16.mxu0 %v5287_v43  ;;  %v5644_v42 = vld [vmem:[#allocation11 + $0x10] sm:$0xff]  }
 0x2de   :  { %4194 = vmatprep.subr.bf16.mxu1 %v5415_v50  ;;  %v5645_v43 = vld [vmem:[#allocation11 + $0x90] sm:$0xff]   ;;  %v5646_v50 = vld [vmem:[#allocation11 + $0x48] sm:$0xff]  }
 0x2e0   :  { %4154 = vmatpush2.bf16.msra.mxu0 %v5286_v55  ;;  %v5651_v55 = vld [vmem:[#allocation11 + $0xc0] sm:$0xff]  }
 0x2e1   :  { %4195 = vmatpush2.bf16.msra.mxu1 %v5414_v56  ;;  %4155 = vmatprep.subr.bf16.mxu0 %v5279_v57  ;;  %v5652_v56 = vld [vmem:[#allocation11] sm:$0xff]   ;;  %v4209_v57 = vmax.f32 %v6035_v4, 0.0  ;;  %v5657_v4 = vld [vmem:[#allocation11 + $0x130] sm:$0xff]  }
 0x2e2   :  { %4196 = vmatprep.subr.bf16.mxu1 %v5407_v59  ;;  %v5653_v59 = vld [vmem:[#allocation11 + $0x80] sm:$0xff]  }
 0x2e3   :  { %v4217_v11 = vpack.c.bf16 %v4209_v57, %v4209_v57 }
 0x2e4   :  { %4156 = vmatpush2.bf16.msra.mxu0 %v5278_v62  ;;  %v5656_v62 = vld [vmem:[#allocation11 + $0x170] sm:$0xff]  }
 0x2e5   :  { %4197 = vmatpush2.bf16.msra.mxu1 %v5406_v63  ;;  %4157 = vmatprep.subr.bf16.mxu0 %v5271_v51  ;;  %v5671_v63 = vld [vmem:[#allocation11 + $0x1b8] sm:$0xff]   ;;  %v4219_v51 = vpack.c.bf16 %v4211_v1, %v4211_v1 }
 0x2e6   :  { %4198 = vmatprep.subr.bf16.mxu1 %v5399_v0  ;;  %v5672_v0 = vld [vmem:[#allocation11 + $0x1f0] sm:$0xff]  }
 0x2e8   :  { %4158 = vmatpush2.bf16.msra.mxu0 %v5270_v49  ;;  %v5674_v49 = vld [vmem:[#allocation11 + $0x1e8] sm:$0xff]  }
 0x2e9   :  { %4199 = vmatpush2.bf16.msra.mxu1 %v5398_v37  ;;  %5521 = vmatprep.subr.bf16.mxu0 %v5622_v5  ;;  %v5659_v37 = vld [vmem:[#allocation11 + $0x128] sm:$0xff]   ;;  %v5660_v5 = vld [vmem:[#allocation11 + $0x160] sm:$0xff]  }
 0x2ea   :  { %5543 = vmatprep.subr.bf16.mxu1 %v5623_v54  ;;  %v5675_v54 = vld [vmem:[#allocation11 + $0x1a8] sm:$0xff]  }
 0x2eb   :  { %v6070_v15 = vpop.f32.mrf.mxu0  ;;  %4160 = vmatmul.mubr.bf16.vlgmr.msra.gmra.mxu0 %v6005_v17 }
 0x2ec   :  { %v6073_v10 = vpop.f32.mrf.mxu1  ;;  %4201 = vmatmul.mubr.bf16.vlgmr.msra.gmra.mxu1 %v6003_v9  ;;  %5522 = vmatpush3.bf16.msra.mxu0 %v5624_v23  ;;  %v5662_v23 = vld [vmem:[#allocation11 + $0x158] sm:$0xff]  }
 0x2ed   :  { %4776 = vmatprep.mubr.bf16.mxu0 %v4218_v18  ;;  %5544 = vmatpush3.bf16.msra.mxu1 %v5625_v3  ;;  %v6076_v12 = vpop.f32.mrf.mxu0  ;;  %v5677_v3 = vld [vmem:[#allocation11 + $0x1a0] sm:$0xff]   ;;  %v5663_v18 = vld [vmem:[#allocation11 + $0x118] sm:$0xff]  }
 0x2ee   :  { %4816 = vmatprep.mubr.bf16.mxu1 %v4220_v8  ;;  %v6078_v22 = vpop.f32.mrf.mxu1  ;;  %5523 = vmatprep.subr.bf16.mxu0 %v5626_v6  ;;  %v5678_v6 = vld [vmem:[#allocation11 + $0x1d8] sm:$0xff]  }
 0x2ef   :  { %v3919_v17 = vpop.f32.mrf.mxu0  ;;  %5545 = vmatprep.subr.bf16.mxu1 %v5627_v7  ;;  %v5664_v7 = vld [vmem:[#allocation11 + $0x150] sm:$0xff]   ;;  %v5679_v8 = vld [vmem:[#allocation11 + $0x198] sm:$0xff]  }
 0x2f0   :  { %v3960_v24 = vpop.f32.mrf.mxu1  ;;  %5524 = vmatpush3.bf16.msra.mxu0 %v5628_v14  ;;  %v5665_v14 = vld [vmem:[#allocation11 + $0x110] sm:$0xff]   ;;  %v5686_v17 = vld [vmem:[#allocation10] sm:$0xff] }
 0x2f1   :  { %5546 = vmatpush3.bf16.msra.mxu1 %v5629_v20  ;;  %v3920_v9 = vpop.f32.mrf.mxu0  ;;  %5525 = vmatprep.subr.bf16.mxu0 %v5630_v21  ;;  %v5666_v20 = vld [vmem:[#allocation11 + $0x148] sm:$0xff]   ;;  %v972_v24 = vrot.slane %v5686_v17, %v153_v31  ;;  %v5681_v31 = vld [vmem:[#allocation11 + $0x190] sm:$0xff]  }
 0x2f2   :  { %v3961_v27 = vpop.f32.mrf.mxu1  ;;  %5547 = vmatprep.subr.bf16.mxu1 %v5631_v16  ;;  %v5667_v21 = vld [vmem:[#allocation11 + $0x108] sm:$0xff]   ;;  %v5668_v16 = vld [vmem:[#allocation11 + $0x140] sm:$0xff]  }
 0x2f3   :  { %v5669_v9 = vld [vmem:[#allocation11 + $0x100] sm:$0xff]  }
 0x2f4   :  { %5526 = vmatpush3.bf16.msra.mxu0 %v5632_v13  ;;  %v976_v13 = vrot.slane %v5686_v17, %v157_v61 }
 0x2f5   :  { %5548 = vmatpush3.bf16.msra.mxu1 %v5633_v25  ;;  %5527 = vmatprep.subr.bf16.mxu0 %v5634_v26  ;;  %v3916_v25 = vadd.f32 %v6070_v15, %v972_v24  ;;  %v5682_v15 = vld [vmem:[#allocation11 + $0x1c8] sm:$0xff]  }
 0x2f6   :  { %5549 = vmatprep.subr.bf16.mxu1 %v5635_v28  ;;  %v3918_v26 = vadd.f32 %v6076_v12, %v976_v13 }
 0x2f7   :  { %v3957_v27 = vadd.f32 %v6073_v10, %v3916_v25 }
 0x2f8   :  { %5528 = vmatpush3.bf16.msra.mxu0 %v5636_v30  ;;  %v5680_v30 = vld [vmem:[#allocation11 + $0x1d0] sm:$0xff]  }
 0x2f9   :  { %5550 = vmatpush3.bf16.msra.mxu1 %v5637_v32  ;;  %5529 = vmatprep.subr.bf16.mxu0 %v5638_v33  ;;  %v3959_v32 = vadd.f32 %v6078_v22, %v3918_v26  ;;  %v5684_v22 = vld [vmem:[#allocation11 + $0x1c0] sm:$0xff]  }
 0x2fa   :  { %5551 = vmatprep.subr.bf16.mxu1 %v5639_v34 }
 0x2fc   :  { %5530 = vmatpush3.bf16.msra.mxu0 %v5640_v35 }
 0x2fd   :  { %5552 = vmatpush3.bf16.msra.mxu1 %v5641_v36  ;;  %5531 = vmatprep.subr.bf16.mxu0 %v5642_v38 }
 0x2fe   :  { %5553 = vmatprep.subr.bf16.mxu1 %v5643_v39 }
 0x300   :  { %5532 = vmatpush3.bf16.msra.mxu0 %v5644_v42 }
 0x301   :  { %5554 = vmatpush3.bf16.msra.mxu1 %v5645_v43  ;;  %5533 = vmatprep.subr.bf16.mxu0 %v5646_v50  ;;  %v5683_v43 = vld [vmem:[#allocation11 + $0x188] sm:$0xff]  }
 0x302   :  { %5555 = vmatprep.subr.bf16.mxu1 %v5647_v40 }
 0x304   :  { %5534 = vmatpush3.bf16.msra.mxu0 %v5648_v41 }
 0x305   :  { %5556 = vmatpush3.bf16.msra.mxu1 %v5649_v52  ;;  %5535 = vmatprep.subr.bf16.mxu0 %v5650_v53  ;;  %v5685_v53 = vld [vmem:[#allocation11 + $0x180] sm:$0xff]  }
 0x306   :  { %5557 = vmatprep.subr.bf16.mxu1 %v5651_v55 }
 0x308   :  { %5536 = vmatpush3.bf16.msra.mxu0 %v5652_v56 }
 0x309   :  { %5558 = vmatpush3.bf16.msra.mxu1 %v5653_v59  ;;  %5565 = vmatprep.subr.bf16.mxu0 %v5654_v46 }
 0x30a   :  { %5587 = vmatprep.subr.bf16.mxu1 %v5670_v45 }
 0x30b   :  { %4777 = vmatmul.mubr.bf16.vlgmr.msra.gmra.mxu0 %v4217_v11 }
 0x30c   :  { %4817 = vmatmul.mubr.bf16.vlgmr.msra.gmra.mxu1 %v4219_v51  ;;  %5566 = vmatpush3.bf16.msra.mxu0 %v5655_v47 }
 0x30d   :  { %5567 = vmatprep.subr.bf16.mxu0 %v5656_v62  ;;  %5588 = vmatpush3.bf16.msra.mxu1 %v5671_v63  ;;  %v980_v62 = vrot.slane %v5686_v17, %v161_v29  ;;  %v984_v63 = vrot.slane %v5686_v17, %v165_v2 }
 0x30e   :  { %5589 = vmatprep.subr.bf16.mxu1 %v5672_v0 }
 0x310   :  { %5568 = vmatpush3.bf16.msra.mxu0 %v5657_v4 }
 0x311   :  { %5569 = vmatprep.subr.bf16.mxu0 %v5658_v48  ;;  %5590 = vmatpush3.bf16.msra.mxu1 %v5673_v60 }
 0x312   :  { %5591 = vmatprep.subr.bf16.mxu1 %v5674_v49 }
 0x314   :  { %5570 = vmatpush3.bf16.msra.mxu0 %v5659_v37 }
 0x315   :  { %5571 = vmatprep.subr.bf16.mxu0 %v5660_v5  ;;  %5592 = vmatpush3.bf16.msra.mxu1 %v5675_v54 }
 0x316   :  { %5593 = vmatprep.subr.bf16.mxu1 %v5676_v19 }
 0x318   :  { %5572 = vmatpush3.bf16.msra.mxu0 %v5661_v58 }
 0x319   :  { %5573 = vmatprep.subr.bf16.mxu0 %v5662_v23  ;;  %5594 = vmatpush3.bf16.msra.mxu1 %v5677_v3 }
 0x31a   :  { %5595 = vmatprep.subr.bf16.mxu1 %v5678_v6 }
 0x31c   :  { %5574 = vmatpush3.bf16.msra.mxu0 %v5663_v18 }
 0x31d   :  { %5575 = vmatprep.subr.bf16.mxu0 %v5664_v7  ;;  %5596 = vmatpush3.bf16.msra.mxu1 %v5679_v8 }
 0x31e   :  { %5597 = vmatprep.subr.bf16.mxu1 %v5680_v30 }
 0x320   :  { %5576 = vmatpush3.bf16.msra.mxu0 %v5665_v14 }
 0x321   :  { %5577 = vmatprep.subr.bf16.mxu0 %v5666_v20  ;;  %5598 = vmatpush3.bf16.msra.mxu1 %v5681_v31 }
 0x322   :  { %5599 = vmatprep.subr.bf16.mxu1 %v5682_v15 }
 0x324   :  { %5578 = vmatpush3.bf16.msra.mxu0 %v5667_v21  ;;  %v5456_v21 = vld [vmem:[#allocation13] ss:$0 sm:$0xff] }
 0x325   :  { %5579 = vmatprep.subr.bf16.mxu0 %v5668_v16  ;;  %5600 = vmatpush3.bf16.msra.mxu1 %v5683_v43 }
 0x326   :  { %5601 = vmatprep.subr.bf16.mxu1 %v5684_v22 }
 0x328   :  { %5580 = vmatpush3.bf16.msra.mxu0 %v5669_v9 }
 0x329   :  { %5602 = vmatpush3.bf16.msra.mxu1 %v5685_v53 }
 0x32b   :  { %v3997_v28 = vpop.f32.mrf.mxu0 }
 0x32c   :  { %v3998_v33 = vadd.f32 %v3997_v28, %v3957_v27  ;;  %v4038_v34 = vpop.f32.mrf.mxu1 }
 0x32d   :  { %v3999_v35 = vpop.f32.mrf.mxu0 }
 0x32e   :  { %v4039_v61 = vadd.f32 %v4038_v34, %v3998_v33  ;;  %v4000_v36 = vadd.f32 %v3999_v35, %v3959_v32  ;;  %v4040_v38 = vpop.f32.mrf.mxu1 }
 0x32f   :  { %v4001_v39 = vpop.f32.mrf.mxu0 }
 0x330   :  { %v4041_v42 = vadd.f32 %v4040_v38, %v4000_v36  ;;  %v4042_v12 = vpop.f32.mrf.mxu1  ;;  %v4213_v50 = vmax.f32 %v4039_v61, 0.0 }
 0x331   :  { %v4002_v10 = vpop.f32.mrf.mxu0 }
 0x332   :  { %v4214_v40 = vmax.f32 %v4041_v42, 0.0  ;;  %v4043_v41 = vpop.f32.mrf.mxu1  ;;  %v4221_v55 = vpack.c.bf16 %v4213_v50, %v4213_v50 }
 0x334   :  { %v4222_v52 = vpack.c.bf16 %v4214_v40, %v4214_v40 }
 0x336   :  { %4856 = vmatprep.mubr.bf16.mxu0 %v4222_v52 }
 0x337   :  { %4857 = vmatmul.mubr.bf16.vlgmr.msra.gmra.mxu0 %v4221_v55 }
 0x36b   :  { %v4079_v56 = vpop.f32.mrf.mxu0 }
 0x36c   :  { %v4120_v57 = vpop.f32.mrf.mxu1  ;;  %v4080_v51 = vadd.f32 %v4079_v56, %v980_v62 }
 0x36d   :  { %v4081_v59 = vpop.f32.mrf.mxu0 }
 0x36e   :  { %v4122_v46 = vpop.f32.mrf.mxu1  ;;  %v4082_v0 = vadd.f32 %v4081_v59, %v984_v63  ;;  %v4121_v4 = vadd.f32 %v4120_v57, %v4080_v51 }
 0x36f   :  { %v4083_v1 = vpop.f32.mrf.mxu0 }
 0x370   :  { %v4124_v45 = vpop.f32.mrf.mxu1  ;;  %v4123_v60 = vadd.f32 %v4122_v46, %v4082_v0 }
 0x371   :  { %v4084_v47 = vpop.f32.mrf.mxu0 }
 0x372   :  { %v4125_v11 = vpop.f32.mrf.mxu1 }
 0x3ab   :  { %v4161_v48 = vpop.f32.mrf.mxu0 }
 0x3ac   :  { %v4162_v49 = vadd.f32 %v4161_v48, %v4121_v4  ;;  %v4202_v37 = vpop.f32.mrf.mxu1 }
 0x3ad   :  { %v4163_v5 = vpop.f32.mrf.mxu0 }
 0x3ae   :  { %v4203_v54 = vadd.f32 %v4202_v37, %v4162_v49  ;;  %v4164_v19 = vadd.f32 %v4163_v5, %v4123_v60  ;;  %v4204_v58 = vpop.f32.mrf.mxu1 }
 0x3af   :  { %v4165_v23 = vpop.f32.mrf.mxu0 }
 0x3b0   :  { %v4205_v3 = vadd.f32 %v4204_v58, %v4164_v19  ;;  %v4206_v6 = vpop.f32.mrf.mxu1  ;;  %v4215_v18 = vmax.f32 %v4203_v54, 0.0 }
 0x3b1   :  { %v4166_v7 = vpop.f32.mrf.mxu0 }
 0x3b2   :  { %v4216_v29 = vmax.f32 %v4205_v3, 0.0  ;;  %v4207_v8 = vpop.f32.mrf.mxu1  ;;  %v4223_v2 = vpack.c.bf16 %v4215_v18, %v4215_v18 }
 0x3b4   :  { %v4224_v44 = vpack.c.bf16 %v4216_v29, %v4216_v29 }
 0x3b6   :  { %4896 = vmatprep.mubr.bf16.mxu1 %v4224_v44 }
 0x3b7   :  { %4897 = vmatmul.mubr.bf16.vlgmr.msra.gmra.mxu1 %v4223_v2 }
 0x3cb   :  { %v5537_v14 = vpop.f32.mrf.mxu0 }
 0x3cc   :  { %v5559_v20 = vpop.f32.mrf.mxu1 }
 0x3cd   :  { %v5538_v16 = vpop.f32.mrf.mxu0 }
 0x3ce   :  { %v5539_v17 = vadd.f32 %v5538_v16, %v5537_v14  ;;  %v5560_v24 = vpop.f32.mrf.mxu1 }
 0x3cf   :  { %v5561_v13 = vadd.f32 %v5560_v24, %v5559_v20  ;;  %v5540_v9 = vpop.f32.mrf.mxu0 }
 0x3d0   :  { %v4779_v25 = vadd.f32 %v5539_v17, %v5456_v21  ;;  %v5562_v26 = vpop.f32.mrf.mxu1 }
 0x3d1   :  { %v5541_v27 = vpop.f32.mrf.mxu0 }
 0x3d2   :  { %v4819_v28 = vadd.f32 %v5561_v13, %v4779_v25  ;;  %v5563_v30 = vpop.f32.mrf.mxu1 }
 0x3f7   :  { %v5581_v32 = vpop.f32.mrf.mxu0 }
 0x3f9   :  { %v5582_v33 = vpop.f32.mrf.mxu0 }
 0x3fa   :  { %v5583_v34 = vadd.f32 %v5582_v33, %v5581_v32 }
 0x3fb   :  { %v5584_v31 = vpop.f32.mrf.mxu0 }
 0x3fc   :  { %v4859_v35 = vadd.f32 %v5583_v34, %v4819_v28 }
 0x3fd   :  { %v5585_v61 = vpop.f32.mrf.mxu0 }
 0x477   :  { %v5603_v36 = vpop.f32.mrf.mxu1 }
 0x479   :  { %v5604_v38 = vpop.f32.mrf.mxu1 }
 0x47a   :  { %v5605_v39 = vadd.f32 %v5604_v38, %v5603_v36 }
 0x47b   :  { %v5606_v15 = vpop.f32.mrf.mxu1 }
 0x47c   :  { %v4899_v42 = vadd.f32 %v5605_v39, %v4859_v35 }
 0x47d   :  { %v5607_v12 = vpop.f32.mrf.mxu1 }
 0x47e   :  { %v4904_v43 = vpack.c.bf16 %v4899_v42, %v4899_v42 }
 0x480   :  { %4905 = vst [vmem:[#allocation14] sm:$0xf] %v4904_v43 }
 0x481   :  { %5838 = shalt.err (!%p5835_p11)
}
 0x482   :  { %4915 = dma.vmem_to_hbm [thread:$0]  %s4913_s6, 64, %s6104_s7, [#allocation4]  }
 0x483   :  { %5855 = dma.done.wait [#allocation4], 64  }
 0x484   :  { %5856 = vsyncadd [#allocation4], 4294967232 }
 0x485   :  { %4919 = vsyncpa [#allocation3], 1 }
 0x486   :  { %4920 = vsyncpa [#allocation6], 1 }
 0x487   :  { %4921 = vsyncpa [#allocation9], 1 }
 0x488   :  { %4922 = vsyncpa [#allocation12], 1 }
 0x489   :  { %4923 = vsyncpa [#allocation4], 1 }

</bundles_post_ra>
